<compile_context>
chip_gen: v7x
topology: tpu7x:2x2x1
jax: 0.10.0
libtpu: 0.0.40
codegen_flags: <defaults>
</compile_context>

<pallas_src>
import functools
import math

import jax
import jax.numpy as jnp
import numpy as np
from jax.experimental import pallas as pl
from jax.experimental.pallas import tpu as pltpu

_LANE = 128
_SUBLANE = 8


def _round_up(x, m):
    return ((x + m - 1) // m) * m


def mapping_kernel(z_ref, w_ref, b_ref, out_ref, *, n_fc, d_true, inv_dim,
                   use_mxu, matmul_dtype):
    """One batch tile: PixelNorm, then n_fc x (scaled linear + LeakyReLU(0.2)).

    z_ref:   (TM, Dk)        input latents (caller dtype; upcast to f32 here)
    w_ref:   (n_fc, Dk, Dk)  scale-folded, pre-transposed weights (VMEM-resident)
    b_ref:   (n_fc, 1, Dk)   biases, f32 (VMEM-resident)
    out_ref: (TM, Dk)        output latents in the caller's dtype
    """
    x = z_ref[...].astype(jnp.float32)
    # PixelNorm over the true feature count (padded lanes, if any, are zero).
    ssq = jnp.sum(x * x, axis=1, keepdims=True)
    x = x * jax.lax.rsqrt(ssq * inv_dim + 1e-8)

    if use_mxu:
        # MXU path: one matmul per layer, f32 accumulation, f32 epilogue.
        for l in range(n_fc):
            y = jnp.dot(x.astype(matmul_dtype), w_ref[l],
                        preferred_element_type=jnp.float32)
            y = y + b_ref[l]
            x = jnp.maximum(y, 0.2 * y)            # LeakyReLU(0.2)
    else:
        # Small-problem VPU path: broadcast-multiply-accumulate over the true D
        # input features. All f32, no MXU involvement (statically unrolled; only
        # selected when D is small so the unroll stays modest).
        for l in range(n_fc):
            wl = w_ref[l].astype(jnp.float32)       # (Dk, Dk)
            acc = x[:, 0:1] * wl[0:1, :]
            for i in range(1, d_true):
                acc = acc + x[:, i:i + 1] * wl[i:i + 1, :]
            y = acc + b_ref[l]
            x = jnp.maximum(y, 0.2 * y)

    out_ref[...] = x.astype(out_ref.dtype)


def mapping_network(latent_z, weights, biases, *, block_batch=None,
                    matmul_dtype=None, use_mxu=None):
    """StyleGAN MappingNetwork forward.

    latent_z: (B, D)        input latents.
    weights:  (n_fc, D, D)  nn.Linear weight layout (out_features, in_features).
    biases:   (n_fc, D)     nn.Linear biases.

    use_mxu=None auto-selects: a VPU broadcast-multiply path for small problems
    (B <= 32 and D <= 128, where the MXU is latency-bound), MXU matmuls otherwise.
    matmul_dtype=None defaults to float32 on the VPU path (faithful to the PyTorch
    module) and bfloat16 on the MXU path (performance default; rounds every layer).
    """
    B, D = latent_z.shape
    n_fc = weights.shape[0]
    scale = math.sqrt(2.0 / D)                      # ScaleWeight: fan_in = D

    if use_mxu is None:
        use_mxu = not (B <= 32 and D <= _LANE)
    if matmul_dtype is None:
        matmul_dtype = jnp.bfloat16 if use_mxu else jnp.float32

    # Feature padding is only needed on the MXU path when D is not lane-dense.
    # The VPU path and lane-dense MXU configs (D % 128 == 0) run fully unpadded.
    d_k = _round_up(D, _LANE) if (use_mxu and D % _LANE != 0) else D

    # Batch tile: up to 256 rows (fills the 256-wide MXU M dim on v6e/v7x); ensure
    # the "parallel" batch grid has >= 2 steps when there is enough batch to split
    # so v7x's two TensorCores both get work (costs one ~0.35us step on 1-TC chips).
    if block_batch is None:
        tm = min(256, _round_up(B, _SUBLANE))
        if B >= 64 and pl.cdiv(B, tm) < 2:
            tm = _round_up(pl.cdiv(B, 2), _SUBLANE)
    else:
        tm = block_batch
    grid = (pl.cdiv(B, tm),)

    # One-shot parameter prep (cheap XLA ops): fold the ScaleWeight factor,
    # transpose to (n_fc, D_in, D_out), optionally lane-pad, cast.
    w_prep = (weights.astype(jnp.float32) * scale).transpose(0, 2, 1)
    b_prep = biases.astype(jnp.float32).reshape(n_fc, 1, D)
    z_in = latent_z
    if d_k != D:
        w_prep = jnp.pad(w_prep, ((0, 0), (0, d_k - D), (0, d_k - D)))
        b_prep = jnp.pad(b_prep, ((0, 0), (0, 0), (0, d_k - D)))
        z_in = jnp.pad(latent_z, ((0, 0), (0, d_k - D)))
    w_prep = w_prep.astype(matmul_dtype)

    kernel = functools.partial(
        mapping_kernel, n_fc=n_fc, d_true=D, inv_dim=1.0 / D,
        use_mxu=use_mxu, matmul_dtype=matmul_dtype)

    io_isz = np.dtype(latent_z.dtype).itemsize
    w_isz = np.dtype(matmul_dtype).itemsize
    cost = pl.CostEstimate(
        flops=int(2 * n_fc * B * D * D + 4 * (n_fc + 1) * B * D),
        transcendentals=int(B),
        bytes_accessed=int(2 * B * d_k * io_isz + n_fc * d_k * d_k * w_isz
                           + n_fc * d_k * 4),
    )

    # VMEM budget from the actual buffer sizes (+ live f32 activations + headroom),
    # clamped so the request stays valid on v7x (64 MiB physical VMEM).
    est = (2 * 2 * tm * d_k * io_isz                              # z/out double buffers
           + 2 * (n_fc * d_k * d_k * w_isz + n_fc * d_k * 4)      # params (<= 2 bufs)
           + 8 * tm * d_k * 4)                                    # live f32 activations
    vmem_limit = int(max(8 << 20, min(est * 3 // 2 + (2 << 20), 64 << 20)))

    def _build(param_spec_kwargs):
        in_specs = [
            pl.BlockSpec((tm, d_k), lambda i: (i, 0)),                    # z tile
            pl.BlockSpec((n_fc, d_k, d_k), lambda i: (0, 0, 0),
                         **param_spec_kwargs),                            # weights
            pl.BlockSpec((n_fc, 1, d_k), lambda i: (0, 0, 0),
                         **param_spec_kwargs),                            # biases
        ]
        return pl.pallas_call(
            kernel,
            out_shape=jax.ShapeDtypeStruct((B, d_k), latent_z.dtype),
            grid_spec=pltpu.PrefetchScalarGridSpec(
                num_scalar_prefetch=0,
                grid=grid,
                in_specs=in_specs,
                out_specs=pl.BlockSpec((tm, d_k), lambda i: (i, 0)),
            ),
            compiler_params=pltpu.CompilerParams(
                dimension_semantics=("parallel",),
                vmem_limit_bytes=vmem_limit,
            ),
            cost_estimate=cost,
        )

    try:
        # Constant-index weight/bias blocks gain nothing from double buffering;
        # single-buffer them (halves their VMEM footprint -- matters on v7x).
        out = _build(dict(pipeline_mode=pl.Buffered(1)))(z_in, w_prep, b_prep)
    except Exception:
        # Fallback if this JAX build rejects Buffered(1) on pallas_call BlockSpecs.
        out = _build({})(z_in, w_prep, b_prep)

    return out if d_k == D else out[:, :D]


def mapping_network_ref(latent_z, weights, biases, matmul_dtype=jnp.float32):
    """Pure-JAX reference of the PyTorch forward. With float32 operands the
    contraction is an explicit broadcast-multiply-sum (no MXU precision ambiguity);
    other dtypes mirror the kernel's reduced-precision operands."""
    D = latent_z.shape[1]
    scale = math.sqrt(2.0 / D)
    x = latent_z.astype(jnp.float32)
    x = x / jnp.sqrt(jnp.mean(x * x, axis=1, keepdims=True) + 1e-8)
    exact = np.dtype(matmul_dtype) == np.dtype(np.float32)
    for i in range(weights.shape[0]):
        w = (weights[i].astype(jnp.float32) * scale).T
        if exact:
            y = jnp.sum(x[:, :, None] * w[None, :, :], axis=1)
        else:
            y = jnp.dot(x.astype(matmul_dtype), w.astype(matmul_dtype),
                        preferred_element_type=jnp.float32)
        y = y + biases[i].astype(jnp.float32)
        x = jnp.maximum(y, 0.2 * y)
    return x


if __name__ == "__main__":
    n_fc = 4          # number of ScaledLinear + LeakyReLU blocks
    dim_latent = 32
    batch = 8

    key = jax.random.PRNGKey(0)
    kz, kw, kb = jax.random.split(key, 3)
    latent_z = jax.random.normal(kz, (batch, dim_latent), dtype=jnp.float32)
    # nn.Linear weight init per module: weight.data.normal_(). Biases are zero-init
    # in the module; small nonzero values are used here so the bias add is exercised.
    weights = jax.random.normal(kw, (n_fc, dim_latent, dim_latent), dtype=jnp.float32)
    biases = 0.1 * jax.random.normal(kb, (n_fc, dim_latent), dtype=jnp.float32)

    ref = mapping_network_ref(latent_z, weights, biases)

    # 1) Default path at this size: small-problem VPU kernel, f32, fully unpadded.
    out_vpu = jax.block_until_ready(mapping_network(latent_z, weights, biases))
    assert out_vpu.shape == (batch, dim_latent) and out_vpu.dtype == latent_z.dtype
    assert jnp.allclose(out_vpu, ref, atol=1e-3, rtol=1e-3), "VPU path mismatch"

    # 2) MXU path (what large-D StyleGAN configs use), f32 operands.
    out_mxu = jax.block_until_ready(
        mapping_network(latent_z, weights, biases, use_mxu=True,
                        matmul_dtype=jnp.float32))
    assert out_mxu.shape == (batch, dim_latent)
    assert jnp.allclose(out_mxu, ref, atol=3e-2, rtol=3e-2), "MXU f32 path mismatch"

    # 3) MXU path with bf16 operands vs a matching bf16-operand reference.
    out_bf16 = jax.block_until_ready(
        mapping_network(latent_z, weights, biases, use_mxu=True,
                        matmul_dtype=jnp.bfloat16))
    ref_bf16 = mapping_network_ref(latent_z, weights, biases,
                                   matmul_dtype=jnp.bfloat16)
    assert out_bf16.shape == (batch, dim_latent)
    assert jnp.allclose(out_bf16, ref_bf16, atol=2e-2, rtol=2e-2), "bf16 path mismatch"

    print("KERNEL_OK")
</pallas_src>

<mosaic_0001>
module attributes {stable_mosaic.version = 11 : i64} {
  func.func @mapping_kernel(%arg0: i32, %arg1: memref<8x32xf32, #tpu.memory_space<vmem>>, %arg2: memref<4x32x32xf32, #tpu.memory_space<vmem>>, %arg3: memref<4x1x32xf32, #tpu.memory_space<vmem>>, %arg4: memref<8x32xf32, #tpu.memory_space<vmem>>) attributes {dimension_semantics = [#tpu.dimension_semantics<parallel>], iteration_bounds = array<i64: 1>, scalar_prefetch = 0 : i64, scratch_operands = 0 : i64, tpu.core_type = #tpu.core_type<tc>, window_params = [{transform_indices = @transform_0, window_bounds = array<i64: 8, 32>}, {pipeline_mode = #tpu.pipeline_mode<synchronous>, transform_indices = @transform_1, window_bounds = array<i64: 4, 32, 32>}, {pipeline_mode = #tpu.pipeline_mode<synchronous>, transform_indices = @transform_2, window_bounds = array<i64: 4, 1, 32>}, {transform_indices = @transform_3, window_bounds = array<i64: 8, 32>}]} {
    %c0 = arith.constant 0 : index
    %c0_0 = arith.constant 0 : index
    %0 = vector.load %arg1[%c0, %c0_0] : memref<8x32xf32, #tpu.memory_space<vmem>>, vector<8x32xf32>
    %1 = arith.mulf %0, %0 : vector<8x32xf32>
    %cst = arith.constant dense<0.000000e+00> : vector<8xf32>
    %2 = vector.multi_reduction <add>, %1, %cst [1] : vector<8x32xf32> to vector<8xf32>
    %3 = vector.shape_cast %2 : vector<8xf32> to vector<8x1xf32>
    %cst_1 = arith.constant 3.125000e-02 : f32
    %4 = vector.broadcast %cst_1 : f32 to vector<8x1xf32>
    %5 = arith.mulf %3, %4 : vector<8x1xf32>
    %cst_2 = arith.constant 9.99999993E-9 : f32
    %6 = vector.broadcast %cst_2 : f32 to vector<8x1xf32>
    %7 = arith.addf %5, %6 : vector<8x1xf32>
    %8 = math.rsqrt %7 : vector<8x1xf32>
    %9 = vector.broadcast %8 : vector<8x1xf32> to vector<8x32xf32>
    %10 = arith.mulf %0, %9 : vector<8x32xf32>
    %c0_3 = arith.constant 0 : index
    %c0_4 = arith.constant 0 : index
    %c0_5 = arith.constant 0 : index
    %11 = vector.load %arg2[%c0_3, %c0_4, %c0_5] : memref<4x32x32xf32, #tpu.memory_space<vmem>>, vector<1x32x32xf32>
    %12 = vector.shape_cast %11 : vector<1x32x32xf32> to vector<32x32xf32>
    %13 = vector.extract_strided_slice %10 {offsets = [0, 0], sizes = [8, 1], strides = [1, 1]} : vector<8x32xf32> to vector<8x1xf32>
    %14 = vector.extract_strided_slice %12 {offsets = [0, 0], sizes = [1, 32], strides = [1, 1]} : vector<32x32xf32> to vector<1x32xf32>
    %15 = vector.broadcast %13 : vector<8x1xf32> to vector<8x32xf32>
    %16 = vector.broadcast %14 : vector<1x32xf32> to vector<8x32xf32>
    %17 = arith.mulf %15, %16 : vector<8x32xf32>
    %18 = vector.extract_strided_slice %10 {offsets = [0, 1], sizes = [8, 1], strides = [1, 1]} : vector<8x32xf32> to vector<8x1xf32>
    %19 = vector.extract_strided_slice %12 {offsets = [1, 0], sizes = [1, 32], strides = [1, 1]} : vector<32x32xf32> to vector<1x32xf32>
    %20 = vector.broadcast %18 : vector<8x1xf32> to vector<8x32xf32>
    %21 = vector.broadcast %19 : vector<1x32xf32> to vector<8x32xf32>
    %22 = arith.mulf %20, %21 : vector<8x32xf32>
    %23 = arith.addf %17, %22 : vector<8x32xf32>
    %24 = vector.extract_strided_slice %10 {offsets = [0, 2], sizes = [8, 1], strides = [1, 1]} : vector<8x32xf32> to vector<8x1xf32>
    %25 = vector.extract_strided_slice %12 {offsets = [2, 0], sizes = [1, 32], strides = [1, 1]} : vector<32x32xf32> to vector<1x32xf32>
    %26 = vector.broadcast %24 : vector<8x1xf32> to vector<8x32xf32>
    %27 = vector.broadcast %25 : vector<1x32xf32> to vector<8x32xf32>
    %28 = arith.mulf %26, %27 : vector<8x32xf32>
    %29 = arith.addf %23, %28 : vector<8x32xf32>
    %30 = vector.extract_strided_slice %10 {offsets = [0, 3], sizes = [8, 1], strides = [1, 1]} : vector<8x32xf32> to vector<8x1xf32>
    %31 = vector.extract_strided_slice %12 {offsets = [3, 0], sizes = [1, 32], strides = [1, 1]} : vector<32x32xf32> to vector<1x32xf32>
    %32 = vector.broadcast %30 : vector<8x1xf32> to vector<8x32xf32>
    %33 = vector.broadcast %31 : vector<1x32xf32> to vector<8x32xf32>
    %34 = arith.mulf %32, %33 : vector<8x32xf32>
    %35 = arith.addf %29, %34 : vector<8x32xf32>
    %36 = vector.extract_strided_slice %10 {offsets = [0, 4], sizes = [8, 1], strides = [1, 1]} : vector<8x32xf32> to vector<8x1xf32>
    %37 = vector.extract_strided_slice %12 {offsets = [4, 0], sizes = [1, 32], strides = [1, 1]} : vector<32x32xf32> to vector<1x32xf32>
    %38 = vector.broadcast %36 : vector<8x1xf32> to vector<8x32xf32>
    %39 = vector.broadcast %37 : vector<1x32xf32> to vector<8x32xf32>
    %40 = arith.mulf %38, %39 : vector<8x32xf32>
    %41 = arith.addf %35, %40 : vector<8x32xf32>
    %42 = vector.extract_strided_slice %10 {offsets = [0, 5], sizes = [8, 1], strides = [1, 1]} : vector<8x32xf32> to vector<8x1xf32>
    %43 = vector.extract_strided_slice %12 {offsets = [5, 0], sizes = [1, 32], strides = [1, 1]} : vector<32x32xf32> to vector<1x32xf32>
    %44 = vector.broadcast %42 : vector<8x1xf32> to vector<8x32xf32>
    %45 = vector.broadcast %43 : vector<1x32xf32> to vector<8x32xf32>
    %46 = arith.mulf %44, %45 : vector<8x32xf32>
    %47 = arith.addf %41, %46 : vector<8x32xf32>
    %48 = vector.extract_strided_slice %10 {offsets = [0, 6], sizes = [8, 1], strides = [1, 1]} : vector<8x32xf32> to vector<8x1xf32>
    %49 = vector.extract_strided_slice %12 {offsets = [6, 0], sizes = [1, 32], strides = [1, 1]} : vector<32x32xf32> to vector<1x32xf32>
    %50 = vector.broadcast %48 : vector<8x1xf32> to vector<8x32xf32>
    %51 = vector.broadcast %49 : vector<1x32xf32> to vector<8x32xf32>
    %52 = arith.mulf %50, %51 : vector<8x32xf32>
    %53 = arith.addf %47, %52 : vector<8x32xf32>
    %54 = vector.extract_strided_slice %10 {offsets = [0, 7], sizes = [8, 1], strides = [1, 1]} : vector<8x32xf32> to vector<8x1xf32>
    %55 = vector.extract_strided_slice %12 {offsets = [7, 0], sizes = [1, 32], strides = [1, 1]} : vector<32x32xf32> to vector<1x32xf32>
    %56 = vector.broadcast %54 : vector<8x1xf32> to vector<8x32xf32>
    %57 = vector.broadcast %55 : vector<1x32xf32> to vector<8x32xf32>
    %58 = arith.mulf %56, %57 : vector<8x32xf32>
    %59 = arith.addf %53, %58 : vector<8x32xf32>
    %60 = vector.extract_strided_slice %10 {offsets = [0, 8], sizes = [8, 1], strides = [1, 1]} : vector<8x32xf32> to vector<8x1xf32>
    %61 = vector.extract_strided_slice %12 {offsets = [8, 0], sizes = [1, 32], strides = [1, 1]} : vector<32x32xf32> to vector<1x32xf32>
    %62 = vector.broadcast %60 : vector<8x1xf32> to vector<8x32xf32>
    %63 = vector.broadcast %61 : vector<1x32xf32> to vector<8x32xf32>
    %64 = arith.mulf %62, %63 : vector<8x32xf32>
    %65 = arith.addf %59, %64 : vector<8x32xf32>
    %66 = vector.extract_strided_slice %10 {offsets = [0, 9], sizes = [8, 1], strides = [1, 1]} : vector<8x32xf32> to vector<8x1xf32>
    %67 = vector.extract_strided_slice %12 {offsets = [9, 0], sizes = [1, 32], strides = [1, 1]} : vector<32x32xf32> to vector<1x32xf32>
    %68 = vector.broadcast %66 : vector<8x1xf32> to vector<8x32xf32>
    %69 = vector.broadcast %67 : vector<1x32xf32> to vector<8x32xf32>
    %70 = arith.mulf %68, %69 : vector<8x32xf32>
    %71 = arith.addf %65, %70 : vector<8x32xf32>
    %72 = vector.extract_strided_slice %10 {offsets = [0, 10], sizes = [8, 1], strides = [1, 1]} : vector<8x32xf32> to vector<8x1xf32>
    %73 = vector.extract_strided_slice %12 {offsets = [10, 0], sizes = [1, 32], strides = [1, 1]} : vector<32x32xf32> to vector<1x32xf32>
    %74 = vector.broadcast %72 : vector<8x1xf32> to vector<8x32xf32>
    %75 = vector.broadcast %73 : vector<1x32xf32> to vector<8x32xf32>
    %76 = arith.mulf %74, %75 : vector<8x32xf32>
    %77 = arith.addf %71, %76 : vector<8x32xf32>
    %78 = vector.extract_strided_slice %10 {offsets = [0, 11], sizes = [8, 1], strides = [1, 1]} : vector<8x32xf32> to vector<8x1xf32>
    %79 = vector.extract_strided_slice %12 {offsets = [11, 0], sizes = [1, 32], strides = [1, 1]} : vector<32x32xf32> to vector<1x32xf32>
    %80 = vector.broadcast %78 : vector<8x1xf32> to vector<8x32xf32>
    %81 = vector.broadcast %79 : vector<1x32xf32> to vector<8x32xf32>
    %82 = arith.mulf %80, %81 : vector<8x32xf32>
    %83 = arith.addf %77, %82 : vector<8x32xf32>
    %84 = vector.extract_strided_slice %10 {offsets = [0, 12], sizes = [8, 1], strides = [1, 1]} : vector<8x32xf32> to vector<8x1xf32>
    %85 = vector.extract_strided_slice %12 {offsets = [12, 0], sizes = [1, 32], strides = [1, 1]} : vector<32x32xf32> to vector<1x32xf32>
    %86 = vector.broadcast %84 : vector<8x1xf32> to vector<8x32xf32>
    %87 = vector.broadcast %85 : vector<1x32xf32> to vector<8x32xf32>
    %88 = arith.mulf %86, %87 : vector<8x32xf32>
    %89 = arith.addf %83, %88 : vector<8x32xf32>
    %90 = vector.extract_strided_slice %10 {offsets = [0, 13], sizes = [8, 1], strides = [1, 1]} : vector<8x32xf32> to vector<8x1xf32>
    %91 = vector.extract_strided_slice %12 {offsets = [13, 0], sizes = [1, 32], strides = [1, 1]} : vector<32x32xf32> to vector<1x32xf32>
    %92 = vector.broadcast %90 : vector<8x1xf32> to vector<8x32xf32>
    %93 = vector.broadcast %91 : vector<1x32xf32> to vector<8x32xf32>
    %94 = arith.mulf %92, %93 : vector<8x32xf32>
    %95 = arith.addf %89, %94 : vector<8x32xf32>
    %96 = vector.extract_strided_slice %10 {offsets = [0, 14], sizes = [8, 1], strides = [1, 1]} : vector<8x32xf32> to vector<8x1xf32>
    %97 = vector.extract_strided_slice %12 {offsets = [14, 0], sizes = [1, 32], strides = [1, 1]} : vector<32x32xf32> to vector<1x32xf32>
    %98 = vector.broadcast %96 : vector<8x1xf32> to vector<8x32xf32>
    %99 = vector.broadcast %97 : vector<1x32xf32> to vector<8x32xf32>
    %100 = arith.mulf %98, %99 : vector<8x32xf32>
    %101 = arith.addf %95, %100 : vector<8x32xf32>
    %102 = vector.extract_strided_slice %10 {offsets = [0, 15], sizes = [8, 1], strides = [1, 1]} : vector<8x32xf32> to vector<8x1xf32>
    %103 = vector.extract_strided_slice %12 {offsets = [15, 0], sizes = [1, 32], strides = [1, 1]} : vector<32x32xf32> to vector<1x32xf32>
    %104 = vector.broadcast %102 : vector<8x1xf32> to vector<8x32xf32>
    %105 = vector.broadcast %103 : vector<1x32xf32> to vector<8x32xf32>
    %106 = arith.mulf %104, %105 : vector<8x32xf32>
    %107 = arith.addf %101, %106 : vector<8x32xf32>
    %108 = vector.extract_strided_slice %10 {offsets = [0, 16], sizes = [8, 1], strides = [1, 1]} : vector<8x32xf32> to vector<8x1xf32>
    %109 = vector.extract_strided_slice %12 {offsets = [16, 0], sizes = [1, 32], strides = [1, 1]} : vector<32x32xf32> to vector<1x32xf32>
    %110 = vector.broadcast %108 : vector<8x1xf32> to vector<8x32xf32>
    %111 = vector.broadcast %109 : vector<1x32xf32> to vector<8x32xf32>
    %112 = arith.mulf %110, %111 : vector<8x32xf32>
    %113 = arith.addf %107, %112 : vector<8x32xf32>
    %114 = vector.extract_strided_slice %10 {offsets = [0, 17], sizes = [8, 1], strides = [1, 1]} : vector<8x32xf32> to vector<8x1xf32>
    %115 = vector.extract_strided_slice %12 {offsets = [17, 0], sizes = [1, 32], strides = [1, 1]} : vector<32x32xf32> to vector<1x32xf32>
    %116 = vector.broadcast %114 : vector<8x1xf32> to vector<8x32xf32>
    %117 = vector.broadcast %115 : vector<1x32xf32> to vector<8x32xf32>
    %118 = arith.mulf %116, %117 : vector<8x32xf32>
    %119 = arith.addf %113, %118 : vector<8x32xf32>
    %120 = vector.extract_strided_slice %10 {offsets = [0, 18], sizes = [8, 1], strides = [1, 1]} : vector<8x32xf32> to vector<8x1xf32>
    %121 = vector.extract_strided_slice %12 {offsets = [18, 0], sizes = [1, 32], strides = [1, 1]} : vector<32x32xf32> to vector<1x32xf32>
    %122 = vector.broadcast %120 : vector<8x1xf32> to vector<8x32xf32>
    %123 = vector.broadcast %121 : vector<1x32xf32> to vector<8x32xf32>
    %124 = arith.mulf %122, %123 : vector<8x32xf32>
    %125 = arith.addf %119, %124 : vector<8x32xf32>
    %126 = vector.extract_strided_slice %10 {offsets = [0, 19], sizes = [8, 1], strides = [1, 1]} : vector<8x32xf32> to vector<8x1xf32>
    %127 = vector.extract_strided_slice %12 {offsets = [19, 0], sizes = [1, 32], strides = [1, 1]} : vector<32x32xf32> to vector<1x32xf32>
    %128 = vector.broadcast %126 : vector<8x1xf32> to vector<8x32xf32>
    %129 = vector.broadcast %127 : vector<1x32xf32> to vector<8x32xf32>
    %130 = arith.mulf %128, %129 : vector<8x32xf32>
    %131 = arith.addf %125, %130 : vector<8x32xf32>
    %132 = vector.extract_strided_slice %10 {offsets = [0, 20], sizes = [8, 1], strides = [1, 1]} : vector<8x32xf32> to vector<8x1xf32>
    %133 = vector.extract_strided_slice %12 {offsets = [20, 0], sizes = [1, 32], strides = [1, 1]} : vector<32x32xf32> to vector<1x32xf32>
    %134 = vector.broadcast %132 : vector<8x1xf32> to vector<8x32xf32>
    %135 = vector.broadcast %133 : vector<1x32xf32> to vector<8x32xf32>
    %136 = arith.mulf %134, %135 : vector<8x32xf32>
    %137 = arith.addf %131, %136 : vector<8x32xf32>
    %138 = vector.extract_strided_slice %10 {offsets = [0, 21], sizes = [8, 1], strides = [1, 1]} : vector<8x32xf32> to vector<8x1xf32>
    %139 = vector.extract_strided_slice %12 {offsets = [21, 0], sizes = [1, 32], strides = [1, 1]} : vector<32x32xf32> to vector<1x32xf32>
    %140 = vector.broadcast %138 : vector<8x1xf32> to vector<8x32xf32>
    %141 = vector.broadcast %139 : vector<1x32xf32> to vector<8x32xf32>
    %142 = arith.mulf %140, %141 : vector<8x32xf32>
    %143 = arith.addf %137, %142 : vector<8x32xf32>
    %144 = vector.extract_strided_slice %10 {offsets = [0, 22], sizes = [8, 1], strides = [1, 1]} : vector<8x32xf32> to vector<8x1xf32>
    %145 = vector.extract_strided_slice %12 {offsets = [22, 0], sizes = [1, 32], strides = [1, 1]} : vector<32x32xf32> to vector<1x32xf32>
    %146 = vector.broadcast %144 : vector<8x1xf32> to vector<8x32xf32>
    %147 = vector.broadcast %145 : vector<1x32xf32> to vector<8x32xf32>
    %148 = arith.mulf %146, %147 : vector<8x32xf32>
    %149 = arith.addf %143, %148 : vector<8x32xf32>
    %150 = vector.extract_strided_slice %10 {offsets = [0, 23], sizes = [8, 1], strides = [1, 1]} : vector<8x32xf32> to vector<8x1xf32>
    %151 = vector.extract_strided_slice %12 {offsets = [23, 0], sizes = [1, 32], strides = [1, 1]} : vector<32x32xf32> to vector<1x32xf32>
    %152 = vector.broadcast %150 : vector<8x1xf32> to vector<8x32xf32>
    %153 = vector.broadcast %151 : vector<1x32xf32> to vector<8x32xf32>
    %154 = arith.mulf %152, %153 : vector<8x32xf32>
    %155 = arith.addf %149, %154 : vector<8x32xf32>
    %156 = vector.extract_strided_slice %10 {offsets = [0, 24], sizes = [8, 1], strides = [1, 1]} : vector<8x32xf32> to vector<8x1xf32>
    %157 = vector.extract_strided_slice %12 {offsets = [24, 0], sizes = [1, 32], strides = [1, 1]} : vector<32x32xf32> to vector<1x32xf32>
    %158 = vector.broadcast %156 : vector<8x1xf32> to vector<8x32xf32>
    %159 = vector.broadcast %157 : vector<1x32xf32> to vector<8x32xf32>
    %160 = arith.mulf %158, %159 : vector<8x32xf32>
    %161 = arith.addf %155, %160 : vector<8x32xf32>
    %162 = vector.extract_strided_slice %10 {offsets = [0, 25], sizes = [8, 1], strides = [1, 1]} : vector<8x32xf32> to vector<8x1xf32>
    %163 = vector.extract_strided_slice %12 {offsets = [25, 0], sizes = [1, 32], strides = [1, 1]} : vector<32x32xf32> to vector<1x32xf32>
    %164 = vector.broadcast %162 : vector<8x1xf32> to vector<8x32xf32>
    %165 = vector.broadcast %163 : vector<1x32xf32> to vector<8x32xf32>
    %166 = arith.mulf %164, %165 : vector<8x32xf32>
    %167 = arith.addf %161, %166 : vector<8x32xf32>
    %168 = vector.extract_strided_slice %10 {offsets = [0, 26], sizes = [8, 1], strides = [1, 1]} : vector<8x32xf32> to vector<8x1xf32>
    %169 = vector.extract_strided_slice %12 {offsets = [26, 0], sizes = [1, 32], strides = [1, 1]} : vector<32x32xf32> to vector<1x32xf32>
    %170 = vector.broadcast %168 : vector<8x1xf32> to vector<8x32xf32>
    %171 = vector.broadcast %169 : vector<1x32xf32> to vector<8x32xf32>
    %172 = arith.mulf %170, %171 : vector<8x32xf32>
    %173 = arith.addf %167, %172 : vector<8x32xf32>
    %174 = vector.extract_strided_slice %10 {offsets = [0, 27], sizes = [8, 1], strides = [1, 1]} : vector<8x32xf32> to vector<8x1xf32>
    %175 = vector.extract_strided_slice %12 {offsets = [27, 0], sizes = [1, 32], strides = [1, 1]} : vector<32x32xf32> to vector<1x32xf32>
    %176 = vector.broadcast %174 : vector<8x1xf32> to vector<8x32xf32>
    %177 = vector.broadcast %175 : vector<1x32xf32> to vector<8x32xf32>
    %178 = arith.mulf %176, %177 : vector<8x32xf32>
    %179 = arith.addf %173, %178 : vector<8x32xf32>
    %180 = vector.extract_strided_slice %10 {offsets = [0, 28], sizes = [8, 1], strides = [1, 1]} : vector<8x32xf32> to vector<8x1xf32>
    %181 = vector.extract_strided_slice %12 {offsets = [28, 0], sizes = [1, 32], strides = [1, 1]} : vector<32x32xf32> to vector<1x32xf32>
    %182 = vector.broadcast %180 : vector<8x1xf32> to vector<8x32xf32>
    %183 = vector.broadcast %181 : vector<1x32xf32> to vector<8x32xf32>
    %184 = arith.mulf %182, %183 : vector<8x32xf32>
    %185 = arith.addf %179, %184 : vector<8x32xf32>
    %186 = vector.extract_strided_slice %10 {offsets = [0, 29], sizes = [8, 1], strides = [1, 1]} : vector<8x32xf32> to vector<8x1xf32>
    %187 = vector.extract_strided_slice %12 {offsets = [29, 0], sizes = [1, 32], strides = [1, 1]} : vector<32x32xf32> to vector<1x32xf32>
    %188 = vector.broadcast %186 : vector<8x1xf32> to vector<8x32xf32>
    %189 = vector.broadcast %187 : vector<1x32xf32> to vector<8x32xf32>
    %190 = arith.mulf %188, %189 : vector<8x32xf32>
    %191 = arith.addf %185, %190 : vector<8x32xf32>
    %192 = vector.extract_strided_slice %10 {offsets = [0, 30], sizes = [8, 1], strides = [1, 1]} : vector<8x32xf32> to vector<8x1xf32>
    %193 = vector.extract_strided_slice %12 {offsets = [30, 0], sizes = [1, 32], strides = [1, 1]} : vector<32x32xf32> to vector<1x32xf32>
    %194 = vector.broadcast %192 : vector<8x1xf32> to vector<8x32xf32>
    %195 = vector.broadcast %193 : vector<1x32xf32> to vector<8x32xf32>
    %196 = arith.mulf %194, %195 : vector<8x32xf32>
    %197 = arith.addf %191, %196 : vector<8x32xf32>
    %198 = vector.extract_strided_slice %10 {offsets = [0, 31], sizes = [8, 1], strides = [1, 1]} : vector<8x32xf32> to vector<8x1xf32>
    %199 = vector.extract_strided_slice %12 {offsets = [31, 0], sizes = [1, 32], strides = [1, 1]} : vector<32x32xf32> to vector<1x32xf32>
    %200 = vector.broadcast %198 : vector<8x1xf32> to vector<8x32xf32>
    %201 = vector.broadcast %199 : vector<1x32xf32> to vector<8x32xf32>
    %202 = arith.mulf %200, %201 : vector<8x32xf32>
    %203 = arith.addf %197, %202 : vector<8x32xf32>
    %c0_6 = arith.constant 0 : index
    %c0_7 = arith.constant 0 : index
    %c0_8 = arith.constant 0 : index
    %204 = vector.load %arg3[%c0_6, %c0_7, %c0_8] : memref<4x1x32xf32, #tpu.memory_space<vmem>>, vector<1x1x32xf32>
    %205 = vector.shape_cast %204 : vector<1x1x32xf32> to vector<1x32xf32>
    %206 = vector.broadcast %205 : vector<1x32xf32> to vector<8x32xf32>
    %207 = arith.addf %203, %206 : vector<8x32xf32>
    %cst_9 = arith.constant 2.000000e-01 : f32
    %208 = vector.broadcast %cst_9 : f32 to vector<8x32xf32>
    %209 = arith.mulf %208, %207 : vector<8x32xf32>
    %210 = arith.maximumf %207, %209 : vector<8x32xf32>
    %c1 = arith.constant 1 : index
    %c0_10 = arith.constant 0 : index
    %c0_11 = arith.constant 0 : index
    %211 = vector.load %arg2[%c1, %c0_10, %c0_11] : memref<4x32x32xf32, #tpu.memory_space<vmem>>, vector<1x32x32xf32>
    %212 = vector.shape_cast %211 : vector<1x32x32xf32> to vector<32x32xf32>
    %213 = vector.extract_strided_slice %210 {offsets = [0, 0], sizes = [8, 1], strides = [1, 1]} : vector<8x32xf32> to vector<8x1xf32>
    %214 = vector.extract_strided_slice %212 {offsets = [0, 0], sizes = [1, 32], strides = [1, 1]} : vector<32x32xf32> to vector<1x32xf32>
    %215 = vector.broadcast %213 : vector<8x1xf32> to vector<8x32xf32>
    %216 = vector.broadcast %214 : vector<1x32xf32> to vector<8x32xf32>
    %217 = arith.mulf %215, %216 : vector<8x32xf32>
    %218 = vector.extract_strided_slice %210 {offsets = [0, 1], sizes = [8, 1], strides = [1, 1]} : vector<8x32xf32> to vector<8x1xf32>
    %219 = vector.extract_strided_slice %212 {offsets = [1, 0], sizes = [1, 32], strides = [1, 1]} : vector<32x32xf32> to vector<1x32xf32>
    %220 = vector.broadcast %218 : vector<8x1xf32> to vector<8x32xf32>
    %221 = vector.broadcast %219 : vector<1x32xf32> to vector<8x32xf32>
    %222 = arith.mulf %220, %221 : vector<8x32xf32>
    %223 = arith.addf %217, %222 : vector<8x32xf32>
    %224 = vector.extract_strided_slice %210 {offsets = [0, 2], sizes = [8, 1], strides = [1, 1]} : vector<8x32xf32> to vector<8x1xf32>
    %225 = vector.extract_strided_slice %212 {offsets = [2, 0], sizes = [1, 32], strides = [1, 1]} : vector<32x32xf32> to vector<1x32xf32>
    %226 = vector.broadcast %224 : vector<8x1xf32> to vector<8x32xf32>
    %227 = vector.broadcast %225 : vector<1x32xf32> to vector<8x32xf32>
    %228 = arith.mulf %226, %227 : vector<8x32xf32>
    %229 = arith.addf %223, %228 : vector<8x32xf32>
    %230 = vector.extract_strided_slice %210 {offsets = [0, 3], sizes = [8, 1], strides = [1, 1]} : vector<8x32xf32> to vector<8x1xf32>
    %231 = vector.extract_strided_slice %212 {offsets = [3, 0], sizes = [1, 32], strides = [1, 1]} : vector<32x32xf32> to vector<1x32xf32>
    %232 = vector.broadcast %230 : vector<8x1xf32> to vector<8x32xf32>
    %233 = vector.broadcast %231 : vector<1x32xf32> to vector<8x32xf32>
    %234 = arith.mulf %232, %233 : vector<8x32xf32>
    %235 = arith.addf %229, %234 : vector<8x32xf32>
    %236 = vector.extract_strided_slice %210 {offsets = [0, 4], sizes = [8, 1], strides = [1, 1]} : vector<8x32xf32> to vector<8x1xf32>
    %237 = vector.extract_strided_slice %212 {offsets = [4, 0], sizes = [1, 32], strides = [1, 1]} : vector<32x32xf32> to vector<1x32xf32>
    %238 = vector.broadcast %236 : vector<8x1xf32> to vector<8x32xf32>
    %239 = vector.broadcast %237 : vector<1x32xf32> to vector<8x32xf32>
    %240 = arith.mulf %238, %239 : vector<8x32xf32>
    %241 = arith.addf %235, %240 : vector<8x32xf32>
    %242 = vector.extract_strided_slice %210 {offsets = [0, 5], sizes = [8, 1], strides = [1, 1]} : vector<8x32xf32> to vector<8x1xf32>
    %243 = vector.extract_strided_slice %212 {offsets = [5, 0], sizes = [1, 32], strides = [1, 1]} : vector<32x32xf32> to vector<1x32xf32>
    %244 = vector.broadcast %242 : vector<8x1xf32> to vector<8x32xf32>
    %245 = vector.broadcast %243 : vector<1x32xf32> to vector<8x32xf32>
    %246 = arith.mulf %244, %245 : vector<8x32xf32>
    %247 = arith.addf %241, %246 : vector<8x32xf32>
    %248 = vector.extract_strided_slice %210 {offsets = [0, 6], sizes = [8, 1], strides = [1, 1]} : vector<8x32xf32> to vector<8x1xf32>
    %249 = vector.extract_strided_slice %212 {offsets = [6, 0], sizes = [1, 32], strides = [1, 1]} : vector<32x32xf32> to vector<1x32xf32>
    %250 = vector.broadcast %248 : vector<8x1xf32> to vector<8x32xf32>
    %251 = vector.broadcast %249 : vector<1x32xf32> to vector<8x32xf32>
    %252 = arith.mulf %250, %251 : vector<8x32xf32>
    %253 = arith.addf %247, %252 : vector<8x32xf32>
    %254 = vector.extract_strided_slice %210 {offsets = [0, 7], sizes = [8, 1], strides = [1, 1]} : vector<8x32xf32> to vector<8x1xf32>
    %255 = vector.extract_strided_slice %212 {offsets = [7, 0], sizes = [1, 32], strides = [1, 1]} : vector<32x32xf32> to vector<1x32xf32>
    %256 = vector.broadcast %254 : vector<8x1xf32> to vector<8x32xf32>
    %257 = vector.broadcast %255 : vector<1x32xf32> to vector<8x32xf32>
    %258 = arith.mulf %256, %257 : vector<8x32xf32>
    %259 = arith.addf %253, %258 : vector<8x32xf32>
    %260 = vector.extract_strided_slice %210 {offsets = [0, 8], sizes = [8, 1], strides = [1, 1]} : vector<8x32xf32> to vector<8x1xf32>
    %261 = vector.extract_strided_slice %212 {offsets = [8, 0], sizes = [1, 32], strides = [1, 1]} : vector<32x32xf32> to vector<1x32xf32>
    %262 = vector.broadcast %260 : vector<8x1xf32> to vector<8x32xf32>
    %263 = vector.broadcast %261 : vector<1x32xf32> to vector<8x32xf32>
    %264 = arith.mulf %262, %263 : vector<8x32xf32>
    %265 = arith.addf %259, %264 : vector<8x32xf32>
    %266 = vector.extract_strided_slice %210 {offsets = [0, 9], sizes = [8, 1], strides = [1, 1]} : vector<8x32xf32> to vector<8x1xf32>
    %267 = vector.extract_strided_slice %212 {offsets = [9, 0], sizes = [1, 32], strides = [1, 1]} : vector<32x32xf32> to vector<1x32xf32>
    %268 = vector.broadcast %266 : vector<8x1xf32> to vector<8x32xf32>
    %269 = vector.broadcast %267 : vector<1x32xf32> to vector<8x32xf32>
    %270 = arith.mulf %268, %269 : vector<8x32xf32>
    %271 = arith.addf %265, %270 : vector<8x32xf32>
    %272 = vector.extract_strided_slice %210 {offsets = [0, 10], sizes = [8, 1], strides = [1, 1]} : vector<8x32xf32> to vector<8x1xf32>
    %273 = vector.extract_strided_slice %212 {offsets = [10, 0], sizes = [1, 32], strides = [1, 1]} : vector<32x32xf32> to vector<1x32xf32>
    %274 = vector.broadcast %272 : vector<8x1xf32> to vector<8x32xf32>
    %275 = vector.broadcast %273 : vector<1x32xf32> to vector<8x32xf32>
    %276 = arith.mulf %274, %275 : vector<8x32xf32>
    %277 = arith.addf %271, %276 : vector<8x32xf32>
    %278 = vector.extract_strided_slice %210 {offsets = [0, 11], sizes = [8, 1], strides = [1, 1]} : vector<8x32xf32> to vector<8x1xf32>
    %279 = vector.extract_strided_slice %212 {offsets = [11, 0], sizes = [1, 32], strides = [1, 1]} : vector<32x32xf32> to vector<1x32xf32>
    %280 = vector.broadcast %278 : vector<8x1xf32> to vector<8x32xf32>
    %281 = vector.broadcast %279 : vector<1x32xf32> to vector<8x32xf32>
    %282 = arith.mulf %280, %281 : vector<8x32xf32>
    %283 = arith.addf %277, %282 : vector<8x32xf32>
    %284 = vector.extract_strided_slice %210 {offsets = [0, 12], sizes = [8, 1], strides = [1, 1]} : vector<8x32xf32> to vector<8x1xf32>
    %285 = vector.extract_strided_slice %212 {offsets = [12, 0], sizes = [1, 32], strides = [1, 1]} : vector<32x32xf32> to vector<1x32xf32>
    %286 = vector.broadcast %284 : vector<8x1xf32> to vector<8x32xf32>
    %287 = vector.broadcast %285 : vector<1x32xf32> to vector<8x32xf32>
    %288 = arith.mulf %286, %287 : vector<8x32xf32>
    %289 = arith.addf %283, %288 : vector<8x32xf32>
    %290 = vector.extract_strided_slice %210 {offsets = [0, 13], sizes = [8, 1], strides = [1, 1]} : vector<8x32xf32> to vector<8x1xf32>
    %291 = vector.extract_strided_slice %212 {offsets = [13, 0], sizes = [1, 32], strides = [1, 1]} : vector<32x32xf32> to vector<1x32xf32>
    %292 = vector.broadcast %290 : vector<8x1xf32> to vector<8x32xf32>
    %293 = vector.broadcast %291 : vector<1x32xf32> to vector<8x32xf32>
    %294 = arith.mulf %292, %293 : vector<8x32xf32>
    %295 = arith.addf %289, %294 : vector<8x32xf32>
    %296 = vector.extract_strided_slice %210 {offsets = [0, 14], sizes = [8, 1], strides = [1, 1]} : vector<8x32xf32> to vector<8x1xf32>
    %297 = vector.extract_strided_slice %212 {offsets = [14, 0], sizes = [1, 32], strides = [1, 1]} : vector<32x32xf32> to vector<1x32xf32>
    %298 = vector.broadcast %296 : vector<8x1xf32> to vector<8x32xf32>
    %299 = vector.broadcast %297 : vector<1x32xf32> to vector<8x32xf32>
    %300 = arith.mulf %298, %299 : vector<8x32xf32>
    %301 = arith.addf %295, %300 : vector<8x32xf32>
    %302 = vector.extract_strided_slice %210 {offsets = [0, 15], sizes = [8, 1], strides = [1, 1]} : vector<8x32xf32> to vector<8x1xf32>
    %303 = vector.extract_strided_slice %212 {offsets = [15, 0], sizes = [1, 32], strides = [1, 1]} : vector<32x32xf32> to vector<1x32xf32>
    %304 = vector.broadcast %302 : vector<8x1xf32> to vector<8x32xf32>
    %305 = vector.broadcast %303 : vector<1x32xf32> to vector<8x32xf32>
    %306 = arith.mulf %304, %305 : vector<8x32xf32>
    %307 = arith.addf %301, %306 : vector<8x32xf32>
    %308 = vector.extract_strided_slice %210 {offsets = [0, 16], sizes = [8, 1], strides = [1, 1]} : vector<8x32xf32> to vector<8x1xf32>
    %309 = vector.extract_strided_slice %212 {offsets = [16, 0], sizes = [1, 32], strides = [1, 1]} : vector<32x32xf32> to vector<1x32xf32>
    %310 = vector.broadcast %308 : vector<8x1xf32> to vector<8x32xf32>
    %311 = vector.broadcast %309 : vector<1x32xf32> to vector<8x32xf32>
    %312 = arith.mulf %310, %311 : vector<8x32xf32>
    %313 = arith.addf %307, %312 : vector<8x32xf32>
    %314 = vector.extract_strided_slice %210 {offsets = [0, 17], sizes = [8, 1], strides = [1, 1]} : vector<8x32xf32> to vector<8x1xf32>
    %315 = vector.extract_strided_slice %212 {offsets = [17, 0], sizes = [1, 32], strides = [1, 1]} : vector<32x32xf32> to vector<1x32xf32>
    %316 = vector.broadcast %314 : vector<8x1xf32> to vector<8x32xf32>
    %317 = vector.broadcast %315 : vector<1x32xf32> to vector<8x32xf32>
    %318 = arith.mulf %316, %317 : vector<8x32xf32>
    %319 = arith.addf %313, %318 : vector<8x32xf32>
    %320 = vector.extract_strided_slice %210 {offsets = [0, 18], sizes = [8, 1], strides = [1, 1]} : vector<8x32xf32> to vector<8x1xf32>
    %321 = vector.extract_strided_slice %212 {offsets = [18, 0], sizes = [1, 32], strides = [1, 1]} : vector<32x32xf32> to vector<1x32xf32>
    %322 = vector.broadcast %320 : vector<8x1xf32> to vector<8x32xf32>
    %323 = vector.broadcast %321 : vector<1x32xf32> to vector<8x32xf32>
    %324 = arith.mulf %322, %323 : vector<8x32xf32>
    %325 = arith.addf %319, %324 : vector<8x32xf32>
    %326 = vector.extract_strided_slice %210 {offsets = [0, 19], sizes = [8, 1], strides = [1, 1]} : vector<8x32xf32> to vector<8x1xf32>
    %327 = vector.extract_strided_slice %212 {offsets = [19, 0], sizes = [1, 32], strides = [1, 1]} : vector<32x32xf32> to vector<1x32xf32>
    %328 = vector.broadcast %326 : vector<8x1xf32> to vector<8x32xf32>
    %329 = vector.broadcast %327 : vector<1x32xf32> to vector<8x32xf32>
    %330 = arith.mulf %328, %329 : vector<8x32xf32>
    %331 = arith.addf %325, %330 : vector<8x32xf32>
    %332 = vector.extract_strided_slice %210 {offsets = [0, 20], sizes = [8, 1], strides = [1, 1]} : vector<8x32xf32> to vector<8x1xf32>
    %333 = vector.extract_strided_slice %212 {offsets = [20, 0], sizes = [1, 32], strides = [1, 1]} : vector<32x32xf32> to vector<1x32xf32>
    %334 = vector.broadcast %332 : vector<8x1xf32> to vector<8x32xf32>
    %335 = vector.broadcast %333 : vector<1x32xf32> to vector<8x32xf32>
    %336 = arith.mulf %334, %335 : vector<8x32xf32>
    %337 = arith.addf %331, %336 : vector<8x32xf32>
    %338 = vector.extract_strided_slice %210 {offsets = [0, 21], sizes = [8, 1], strides = [1, 1]} : vector<8x32xf32> to vector<8x1xf32>
    %339 = vector.extract_strided_slice %212 {offsets = [21, 0], sizes = [1, 32], strides = [1, 1]} : vector<32x32xf32> to vector<1x32xf32>
    %340 = vector.broadcast %338 : vector<8x1xf32> to vector<8x32xf32>
    %341 = vector.broadcast %339 : vector<1x32xf32> to vector<8x32xf32>
    %342 = arith.mulf %340, %341 : vector<8x32xf32>
    %343 = arith.addf %337, %342 : vector<8x32xf32>
    %344 = vector.extract_strided_slice %210 {offsets = [0, 22], sizes = [8, 1], strides = [1, 1]} : vector<8x32xf32> to vector<8x1xf32>
    %345 = vector.extract_strided_slice %212 {offsets = [22, 0], sizes = [1, 32], strides = [1, 1]} : vector<32x32xf32> to vector<1x32xf32>
    %346 = vector.broadcast %344 : vector<8x1xf32> to vector<8x32xf32>
    %347 = vector.broadcast %345 : vector<1x32xf32> to vector<8x32xf32>
    %348 = arith.mulf %346, %347 : vector<8x32xf32>
    %349 = arith.addf %343, %348 : vector<8x32xf32>
    %350 = vector.extract_strided_slice %210 {offsets = [0, 23], sizes = [8, 1], strides = [1, 1]} : vector<8x32xf32> to vector<8x1xf32>
    %351 = vector.extract_strided_slice %212 {offsets = [23, 0], sizes = [1, 32], strides = [1, 1]} : vector<32x32xf32> to vector<1x32xf32>
    %352 = vector.broadcast %350 : vector<8x1xf32> to vector<8x32xf32>
    %353 = vector.broadcast %351 : vector<1x32xf32> to vector<8x32xf32>
    %354 = arith.mulf %352, %353 : vector<8x32xf32>
    %355 = arith.addf %349, %354 : vector<8x32xf32>
    %356 = vector.extract_strided_slice %210 {offsets = [0, 24], sizes = [8, 1], strides = [1, 1]} : vector<8x32xf32> to vector<8x1xf32>
    %357 = vector.extract_strided_slice %212 {offsets = [24, 0], sizes = [1, 32], strides = [1, 1]} : vector<32x32xf32> to vector<1x32xf32>
    %358 = vector.broadcast %356 : vector<8x1xf32> to vector<8x32xf32>
    %359 = vector.broadcast %357 : vector<1x32xf32> to vector<8x32xf32>
    %360 = arith.mulf %358, %359 : vector<8x32xf32>
    %361 = arith.addf %355, %360 : vector<8x32xf32>
    %362 = vector.extract_strided_slice %210 {offsets = [0, 25], sizes = [8, 1], strides = [1, 1]} : vector<8x32xf32> to vector<8x1xf32>
    %363 = vector.extract_strided_slice %212 {offsets = [25, 0], sizes = [1, 32], strides = [1, 1]} : vector<32x32xf32> to vector<1x32xf32>
    %364 = vector.broadcast %362 : vector<8x1xf32> to vector<8x32xf32>
    %365 = vector.broadcast %363 : vector<1x32xf32> to vector<8x32xf32>
    %366 = arith.mulf %364, %365 : vector<8x32xf32>
    %367 = arith.addf %361, %366 : vector<8x32xf32>
    %368 = vector.extract_strided_slice %210 {offsets = [0, 26], sizes = [8, 1], strides = [1, 1]} : vector<8x32xf32> to vector<8x1xf32>
    %369 = vector.extract_strided_slice %212 {offsets = [26, 0], sizes = [1, 32], strides = [1, 1]} : vector<32x32xf32> to vector<1x32xf32>
    %370 = vector.broadcast %368 : vector<8x1xf32> to vector<8x32xf32>
    %371 = vector.broadcast %369 : vector<1x32xf32> to vector<8x32xf32>
    %372 = arith.mulf %370, %371 : vector<8x32xf32>
    %373 = arith.addf %367, %372 : vector<8x32xf32>
    %374 = vector.extract_strided_slice %210 {offsets = [0, 27], sizes = [8, 1], strides = [1, 1]} : vector<8x32xf32> to vector<8x1xf32>
    %375 = vector.extract_strided_slice %212 {offsets = [27, 0], sizes = [1, 32], strides = [1, 1]} : vector<32x32xf32> to vector<1x32xf32>
    %376 = vector.broadcast %374 : vector<8x1xf32> to vector<8x32xf32>
    %377 = vector.broadcast %375 : vector<1x32xf32> to vector<8x32xf32>
    %378 = arith.mulf %376, %377 : vector<8x32xf32>
    %379 = arith.addf %373, %378 : vector<8x32xf32>
    %380 = vector.extract_strided_slice %210 {offsets = [0, 28], sizes = [8, 1], strides = [1, 1]} : vector<8x32xf32> to vector<8x1xf32>
    %381 = vector.extract_strided_slice %212 {offsets = [28, 0], sizes = [1, 32], strides = [1, 1]} : vector<32x32xf32> to vector<1x32xf32>
    %382 = vector.broadcast %380 : vector<8x1xf32> to vector<8x32xf32>
    %383 = vector.broadcast %381 : vector<1x32xf32> to vector<8x32xf32>
    %384 = arith.mulf %382, %383 : vector<8x32xf32>
    %385 = arith.addf %379, %384 : vector<8x32xf32>
    %386 = vector.extract_strided_slice %210 {offsets = [0, 29], sizes = [8, 1], strides = [1, 1]} : vector<8x32xf32> to vector<8x1xf32>
    %387 = vector.extract_strided_slice %212 {offsets = [29, 0], sizes = [1, 32], strides = [1, 1]} : vector<32x32xf32> to vector<1x32xf32>
    %388 = vector.broadcast %386 : vector<8x1xf32> to vector<8x32xf32>
    %389 = vector.broadcast %387 : vector<1x32xf32> to vector<8x32xf32>
    %390 = arith.mulf %388, %389 : vector<8x32xf32>
    %391 = arith.addf %385, %390 : vector<8x32xf32>
    %392 = vector.extract_strided_slice %210 {offsets = [0, 30], sizes = [8, 1], strides = [1, 1]} : vector<8x32xf32> to vector<8x1xf32>
    %393 = vector.extract_strided_slice %212 {offsets = [30, 0], sizes = [1, 32], strides = [1, 1]} : vector<32x32xf32> to vector<1x32xf32>
    %394 = vector.broadcast %392 : vector<8x1xf32> to vector<8x32xf32>
    %395 = vector.broadcast %393 : vector<1x32xf32> to vector<8x32xf32>
    %396 = arith.mulf %394, %395 : vector<8x32xf32>
    %397 = arith.addf %391, %396 : vector<8x32xf32>
    %398 = vector.extract_strided_slice %210 {offsets = [0, 31], sizes = [8, 1], strides = [1, 1]} : vector<8x32xf32> to vector<8x1xf32>
    %399 = vector.extract_strided_slice %212 {offsets = [31, 0], sizes = [1, 32], strides = [1, 1]} : vector<32x32xf32> to vector<1x32xf32>
    %400 = vector.broadcast %398 : vector<8x1xf32> to vector<8x32xf32>
    %401 = vector.broadcast %399 : vector<1x32xf32> to vector<8x32xf32>
    %402 = arith.mulf %400, %401 : vector<8x32xf32>
    %403 = arith.addf %397, %402 : vector<8x32xf32>
    %c1_12 = arith.constant 1 : index
    %c0_13 = arith.constant 0 : index
    %c0_14 = arith.constant 0 : index
    %404 = vector.load %arg3[%c1_12, %c0_13, %c0_14] : memref<4x1x32xf32, #tpu.memory_space<vmem>>, vector<1x1x32xf32>
    %405 = vector.shape_cast %404 : vector<1x1x32xf32> to vector<1x32xf32>
    %406 = vector.broadcast %405 : vector<1x32xf32> to vector<8x32xf32>
    %407 = arith.addf %403, %406 : vector<8x32xf32>
    %cst_15 = arith.constant 2.000000e-01 : f32
    %408 = vector.broadcast %cst_15 : f32 to vector<8x32xf32>
    %409 = arith.mulf %408, %407 : vector<8x32xf32>
    %410 = arith.maximumf %407, %409 : vector<8x32xf32>
    %c2 = arith.constant 2 : index
    %c0_16 = arith.constant 0 : index
    %c0_17 = arith.constant 0 : index
    %411 = vector.load %arg2[%c2, %c0_16, %c0_17] : memref<4x32x32xf32, #tpu.memory_space<vmem>>, vector<1x32x32xf32>
    %412 = vector.shape_cast %411 : vector<1x32x32xf32> to vector<32x32xf32>
    %413 = vector.extract_strided_slice %410 {offsets = [0, 0], sizes = [8, 1], strides = [1, 1]} : vector<8x32xf32> to vector<8x1xf32>
    %414 = vector.extract_strided_slice %412 {offsets = [0, 0], sizes = [1, 32], strides = [1, 1]} : vector<32x32xf32> to vector<1x32xf32>
    %415 = vector.broadcast %413 : vector<8x1xf32> to vector<8x32xf32>
    %416 = vector.broadcast %414 : vector<1x32xf32> to vector<8x32xf32>
    %417 = arith.mulf %415, %416 : vector<8x32xf32>
    %418 = vector.extract_strided_slice %410 {offsets = [0, 1], sizes = [8, 1], strides = [1, 1]} : vector<8x32xf32> to vector<8x1xf32>
    %419 = vector.extract_strided_slice %412 {offsets = [1, 0], sizes = [1, 32], strides = [1, 1]} : vector<32x32xf32> to vector<1x32xf32>
    %420 = vector.broadcast %418 : vector<8x1xf32> to vector<8x32xf32>
    %421 = vector.broadcast %419 : vector<1x32xf32> to vector<8x32xf32>
    %422 = arith.mulf %420, %421 : vector<8x32xf32>
    %423 = arith.addf %417, %422 : vector<8x32xf32>
    %424 = vector.extract_strided_slice %410 {offsets = [0, 2], sizes = [8, 1], strides = [1, 1]} : vector<8x32xf32> to vector<8x1xf32>
    %425 = vector.extract_strided_slice %412 {offsets = [2, 0], sizes = [1, 32], strides = [1, 1]} : vector<32x32xf32> to vector<1x32xf32>
    %426 = vector.broadcast %424 : vector<8x1xf32> to vector<8x32xf32>
    %427 = vector.broadcast %425 : vector<1x32xf32> to vector<8x32xf32>
    %428 = arith.mulf %426, %427 : vector<8x32xf32>
    %429 = arith.addf %423, %428 : vector<8x32xf32>
    %430 = vector.extract_strided_slice %410 {offsets = [0, 3], sizes = [8, 1], strides = [1, 1]} : vector<8x32xf32> to vector<8x1xf32>
    %431 = vector.extract_strided_slice %412 {offsets = [3, 0], sizes = [1, 32], strides = [1, 1]} : vector<32x32xf32> to vector<1x32xf32>
    %432 = vector.broadcast %430 : vector<8x1xf32> to vector<8x32xf32>
    %433 = vector.broadcast %431 : vector<1x32xf32> to vector<8x32xf32>
    %434 = arith.mulf %432, %433 : vector<8x32xf32>
    %435 = arith.addf %429, %434 : vector<8x32xf32>
    %436 = vector.extract_strided_slice %410 {offsets = [0, 4], sizes = [8, 1], strides = [1, 1]} : vector<8x32xf32> to vector<8x1xf32>
    %437 = vector.extract_strided_slice %412 {offsets = [4, 0], sizes = [1, 32], strides = [1, 1]} : vector<32x32xf32> to vector<1x32xf32>
    %438 = vector.broadcast %436 : vector<8x1xf32> to vector<8x32xf32>
    %439 = vector.broadcast %437 : vector<1x32xf32> to vector<8x32xf32>
    %440 = arith.mulf %438, %439 : vector<8x32xf32>
    %441 = arith.addf %435, %440 : vector<8x32xf32>
    %442 = vector.extract_strided_slice %410 {offsets = [0, 5], sizes = [8, 1], strides = [1, 1]} : vector<8x32xf32> to vector<8x1xf32>
    %443 = vector.extract_strided_slice %412 {offsets = [5, 0], sizes = [1, 32], strides = [1, 1]} : vector<32x32xf32> to vector<1x32xf32>
    %444 = vector.broadcast %442 : vector<8x1xf32> to vector<8x32xf32>
    %445 = vector.broadcast %443 : vector<1x32xf32> to vector<8x32xf32>
    %446 = arith.mulf %444, %445 : vector<8x32xf32>
    %447 = arith.addf %441, %446 : vector<8x32xf32>
    %448 = vector.extract_strided_slice %410 {offsets = [0, 6], sizes = [8, 1], strides = [1, 1]} : vector<8x32xf32> to vector<8x1xf32>
    %449 = vector.extract_strided_slice %412 {offsets = [6, 0], sizes = [1, 32], strides = [1, 1]} : vector<32x32xf32> to vector<1x32xf32>
    %450 = vector.broadcast %448 : vector<8x1xf32> to vector<8x32xf32>
    %451 = vector.broadcast %449 : vector<1x32xf32> to vector<8x32xf32>
    %452 = arith.mulf %450, %451 : vector<8x32xf32>
    %453 = arith.addf %447, %452 : vector<8x32xf32>
    %454 = vector.extract_strided_slice %410 {offsets = [0, 7], sizes = [8, 1], strides = [1, 1]} : vector<8x32xf32> to vector<8x1xf32>
    %455 = vector.extract_strided_slice %412 {offsets = [7, 0], sizes = [1, 32], strides = [1, 1]} : vector<32x32xf32> to vector<1x32xf32>
    %456 = vector.broadcast %454 : vector<8x1xf32> to vector<8x32xf32>
    %457 = vector.broadcast %455 : vector<1x32xf32> to vector<8x32xf32>
    %458 = arith.mulf %456, %457 : vector<8x32xf32>
    %459 = arith.addf %453, %458 : vector<8x32xf32>
    %460 = vector.extract_strided_slice %410 {offsets = [0, 8], sizes = [8, 1], strides = [1, 1]} : vector<8x32xf32> to vector<8x1xf32>
    %461 = vector.extract_strided_slice %412 {offsets = [8, 0], sizes = [1, 32], strides = [1, 1]} : vector<32x32xf32> to vector<1x32xf32>
    %462 = vector.broadcast %460 : vector<8x1xf32> to vector<8x32xf32>
    %463 = vector.broadcast %461 : vector<1x32xf32> to vector<8x32xf32>
    %464 = arith.mulf %462, %463 : vector<8x32xf32>
    %465 = arith.addf %459, %464 : vector<8x32xf32>
    %466 = vector.extract_strided_slice %410 {offsets = [0, 9], sizes = [8, 1], strides = [1, 1]} : vector<8x32xf32> to vector<8x1xf32>
    %467 = vector.extract_strided_slice %412 {offsets = [9, 0], sizes = [1, 32], strides = [1, 1]} : vector<32x32xf32> to vector<1x32xf32>
    %468 = vector.broadcast %466 : vector<8x1xf32> to vector<8x32xf32>
    %469 = vector.broadcast %467 : vector<1x32xf32> to vector<8x32xf32>
    %470 = arith.mulf %468, %469 : vector<8x32xf32>
    %471 = arith.addf %465, %470 : vector<8x32xf32>
    %472 = vector.extract_strided_slice %410 {offsets = [0, 10], sizes = [8, 1], strides = [1, 1]} : vector<8x32xf32> to vector<8x1xf32>
    %473 = vector.extract_strided_slice %412 {offsets = [10, 0], sizes = [1, 32], strides = [1, 1]} : vector<32x32xf32> to vector<1x32xf32>
    %474 = vector.broadcast %472 : vector<8x1xf32> to vector<8x32xf32>
    %475 = vector.broadcast %473 : vector<1x32xf32> to vector<8x32xf32>
    %476 = arith.mulf %474, %475 : vector<8x32xf32>
    %477 = arith.addf %471, %476 : vector<8x32xf32>
    %478 = vector.extract_strided_slice %410 {offsets = [0, 11], sizes = [8, 1], strides = [1, 1]} : vector<8x32xf32> to vector<8x1xf32>
    %479 = vector.extract_strided_slice %412 {offsets = [11, 0], sizes = [1, 32], strides = [1, 1]} : vector<32x32xf32> to vector<1x32xf32>
    %480 = vector.broadcast %478 : vector<8x1xf32> to vector<8x32xf32>
    %481 = vector.broadcast %479 : vector<1x32xf32> to vector<8x32xf32>
    %482 = arith.mulf %480, %481 : vector<8x32xf32>
    %483 = arith.addf %477, %482 : vector<8x32xf32>
    %484 = vector.extract_strided_slice %410 {offsets = [0, 12], sizes = [8, 1], strides = [1, 1]} : vector<8x32xf32> to vector<8x1xf32>
    %485 = vector.extract_strided_slice %412 {offsets = [12, 0], sizes = [1, 32], strides = [1, 1]} : vector<32x32xf32> to vector<1x32xf32>
    %486 = vector.broadcast %484 : vector<8x1xf32> to vector<8x32xf32>
    %487 = vector.broadcast %485 : vector<1x32xf32> to vector<8x32xf32>
    %488 = arith.mulf %486, %487 : vector<8x32xf32>
    %489 = arith.addf %483, %488 : vector<8x32xf32>
    %490 = vector.extract_strided_slice %410 {offsets = [0, 13], sizes = [8, 1], strides = [1, 1]} : vector<8x32xf32> to vector<8x1xf32>
    %491 = vector.extract_strided_slice %412 {offsets = [13, 0], sizes = [1, 32], strides = [1, 1]} : vector<32x32xf32> to vector<1x32xf32>
    %492 = vector.broadcast %490 : vector<8x1xf32> to vector<8x32xf32>
    %493 = vector.broadcast %491 : vector<1x32xf32> to vector<8x32xf32>
    %494 = arith.mulf %492, %493 : vector<8x32xf32>
    %495 = arith.addf %489, %494 : vector<8x32xf32>
    %496 = vector.extract_strided_slice %410 {offsets = [0, 14], sizes = [8, 1], strides = [1, 1]} : vector<8x32xf32> to vector<8x1xf32>
    %497 = vector.extract_strided_slice %412 {offsets = [14, 0], sizes = [1, 32], strides = [1, 1]} : vector<32x32xf32> to vector<1x32xf32>
    %498 = vector.broadcast %496 : vector<8x1xf32> to vector<8x32xf32>
    %499 = vector.broadcast %497 : vector<1x32xf32> to vector<8x32xf32>
    %500 = arith.mulf %498, %499 : vector<8x32xf32>
    %501 = arith.addf %495, %500 : vector<8x32xf32>
    %502 = vector.extract_strided_slice %410 {offsets = [0, 15], sizes = [8, 1], strides = [1, 1]} : vector<8x32xf32> to vector<8x1xf32>
    %503 = vector.extract_strided_slice %412 {offsets = [15, 0], sizes = [1, 32], strides = [1, 1]} : vector<32x32xf32> to vector<1x32xf32>
    %504 = vector.broadcast %502 : vector<8x1xf32> to vector<8x32xf32>
    %505 = vector.broadcast %503 : vector<1x32xf32> to vector<8x32xf32>
    %506 = arith.mulf %504, %505 : vector<8x32xf32>
    %507 = arith.addf %501, %506 : vector<8x32xf32>
    %508 = vector.extract_strided_slice %410 {offsets = [0, 16], sizes = [8, 1], strides = [1, 1]} : vector<8x32xf32> to vector<8x1xf32>
    %509 = vector.extract_strided_slice %412 {offsets = [16, 0], sizes = [1, 32], strides = [1, 1]} : vector<32x32xf32> to vector<1x32xf32>
    %510 = vector.broadcast %508 : vector<8x1xf32> to vector<8x32xf32>
    %511 = vector.broadcast %509 : vector<1x32xf32> to vector<8x32xf32>
    %512 = arith.mulf %510, %511 : vector<8x32xf32>
    %513 = arith.addf %507, %512 : vector<8x32xf32>
    %514 = vector.extract_strided_slice %410 {offsets = [0, 17], sizes = [8, 1], strides = [1, 1]} : vector<8x32xf32> to vector<8x1xf32>
    %515 = vector.extract_strided_slice %412 {offsets = [17, 0], sizes = [1, 32], strides = [1, 1]} : vector<32x32xf32> to vector<1x32xf32>
    %516 = vector.broadcast %514 : vector<8x1xf32> to vector<8x32xf32>
    %517 = vector.broadcast %515 : vector<1x32xf32> to vector<8x32xf32>
    %518 = arith.mulf %516, %517 : vector<8x32xf32>
    %519 = arith.addf %513, %518 : vector<8x32xf32>
    %520 = vector.extract_strided_slice %410 {offsets = [0, 18], sizes = [8, 1], strides = [1, 1]} : vector<8x32xf32> to vector<8x1xf32>
    %521 = vector.extract_strided_slice %412 {offsets = [18, 0], sizes = [1, 32], strides = [1, 1]} : vector<32x32xf32> to vector<1x32xf32>
    %522 = vector.broadcast %520 : vector<8x1xf32> to vector<8x32xf32>
    %523 = vector.broadcast %521 : vector<1x32xf32> to vector<8x32xf32>
    %524 = arith.mulf %522, %523 : vector<8x32xf32>
    %525 = arith.addf %519, %524 : vector<8x32xf32>
    %526 = vector.extract_strided_slice %410 {offsets = [0, 19], sizes = [8, 1], strides = [1, 1]} : vector<8x32xf32> to vector<8x1xf32>
    %527 = vector.extract_strided_slice %412 {offsets = [19, 0], sizes = [1, 32], strides = [1, 1]} : vector<32x32xf32> to vector<1x32xf32>
    %528 = vector.broadcast %526 : vector<8x1xf32> to vector<8x32xf32>
    %529 = vector.broadcast %527 : vector<1x32xf32> to vector<8x32xf32>
    %530 = arith.mulf %528, %529 : vector<8x32xf32>
    %531 = arith.addf %525, %530 : vector<8x32xf32>
    %532 = vector.extract_strided_slice %410 {offsets = [0, 20], sizes = [8, 1], strides = [1, 1]} : vector<8x32xf32> to vector<8x1xf32>
    %533 = vector.extract_strided_slice %412 {offsets = [20, 0], sizes = [1, 32], strides = [1, 1]} : vector<32x32xf32> to vector<1x32xf32>
    %534 = vector.broadcast %532 : vector<8x1xf32> to vector<8x32xf32>
    %535 = vector.broadcast %533 : vector<1x32xf32> to vector<8x32xf32>
    %536 = arith.mulf %534, %535 : vector<8x32xf32>
    %537 = arith.addf %531, %536 : vector<8x32xf32>
    %538 = vector.extract_strided_slice %410 {offsets = [0, 21], sizes = [8, 1], strides = [1, 1]} : vector<8x32xf32> to vector<8x1xf32>
    %539 = vector.extract_strided_slice %412 {offsets = [21, 0], sizes = [1, 32], strides = [1, 1]} : vector<32x32xf32> to vector<1x32xf32>
    %540 = vector.broadcast %538 : vector<8x1xf32> to vector<8x32xf32>
    %541 = vector.broadcast %539 : vector<1x32xf32> to vector<8x32xf32>
    %542 = arith.mulf %540, %541 : vector<8x32xf32>
    %543 = arith.addf %537, %542 : vector<8x32xf32>
    %544 = vector.extract_strided_slice %410 {offsets = [0, 22], sizes = [8, 1], strides = [1, 1]} : vector<8x32xf32> to vector<8x1xf32>
    %545 = vector.extract_strided_slice %412 {offsets = [22, 0], sizes = [1, 32], strides = [1, 1]} : vector<32x32xf32> to vector<1x32xf32>
    %546 = vector.broadcast %544 : vector<8x1xf32> to vector<8x32xf32>
    %547 = vector.broadcast %545 : vector<1x32xf32> to vector<8x32xf32>
    %548 = arith.mulf %546, %547 : vector<8x32xf32>
    %549 = arith.addf %543, %548 : vector<8x32xf32>
    %550 = vector.extract_strided_slice %410 {offsets = [0, 23], sizes = [8, 1], strides = [1, 1]} : vector<8x32xf32> to vector<8x1xf32>
    %551 = vector.extract_strided_slice %412 {offsets = [23, 0], sizes = [1, 32], strides = [1, 1]} : vector<32x32xf32> to vector<1x32xf32>
    %552 = vector.broadcast %550 : vector<8x1xf32> to vector<8x32xf32>
    %553 = vector.broadcast %551 : vector<1x32xf32> to vector<8x32xf32>
    %554 = arith.mulf %552, %553 : vector<8x32xf32>
    %555 = arith.addf %549, %554 : vector<8x32xf32>
    %556 = vector.extract_strided_slice %410 {offsets = [0, 24], sizes = [8, 1], strides = [1, 1]} : vector<8x32xf32> to vector<8x1xf32>
    %557 = vector.extract_strided_slice %412 {offsets = [24, 0], sizes = [1, 32], strides = [1, 1]} : vector<32x32xf32> to vector<1x32xf32>
    %558 = vector.broadcast %556 : vector<8x1xf32> to vector<8x32xf32>
    %559 = vector.broadcast %557 : vector<1x32xf32> to vector<8x32xf32>
    %560 = arith.mulf %558, %559 : vector<8x32xf32>
    %561 = arith.addf %555, %560 : vector<8x32xf32>
    %562 = vector.extract_strided_slice %410 {offsets = [0, 25], sizes = [8, 1], strides = [1, 1]} : vector<8x32xf32> to vector<8x1xf32>
    %563 = vector.extract_strided_slice %412 {offsets = [25, 0], sizes = [1, 32], strides = [1, 1]} : vector<32x32xf32> to vector<1x32xf32>
    %564 = vector.broadcast %562 : vector<8x1xf32> to vector<8x32xf32>
    %565 = vector.broadcast %563 : vector<1x32xf32> to vector<8x32xf32>
    %566 = arith.mulf %564, %565 : vector<8x32xf32>
    %567 = arith.addf %561, %566 : vector<8x32xf32>
    %568 = vector.extract_strided_slice %410 {offsets = [0, 26], sizes = [8, 1], strides = [1, 1]} : vector<8x32xf32> to vector<8x1xf32>
    %569 = vector.extract_strided_slice %412 {offsets = [26, 0], sizes = [1, 32], strides = [1, 1]} : vector<32x32xf32> to vector<1x32xf32>
    %570 = vector.broadcast %568 : vector<8x1xf32> to vector<8x32xf32>
    %571 = vector.broadcast %569 : vector<1x32xf32> to vector<8x32xf32>
    %572 = arith.mulf %570, %571 : vector<8x32xf32>
    %573 = arith.addf %567, %572 : vector<8x32xf32>
    %574 = vector.extract_strided_slice %410 {offsets = [0, 27], sizes = [8, 1], strides = [1, 1]} : vector<8x32xf32> to vector<8x1xf32>
    %575 = vector.extract_strided_slice %412 {offsets = [27, 0], sizes = [1, 32], strides = [1, 1]} : vector<32x32xf32> to vector<1x32xf32>
    %576 = vector.broadcast %574 : vector<8x1xf32> to vector<8x32xf32>
    %577 = vector.broadcast %575 : vector<1x32xf32> to vector<8x32xf32>
    %578 = arith.mulf %576, %577 : vector<8x32xf32>
    %579 = arith.addf %573, %578 : vector<8x32xf32>
    %580 = vector.extract_strided_slice %410 {offsets = [0, 28], sizes = [8, 1], strides = [1, 1]} : vector<8x32xf32> to vector<8x1xf32>
    %581 = vector.extract_strided_slice %412 {offsets = [28, 0], sizes = [1, 32], strides = [1, 1]} : vector<32x32xf32> to vector<1x32xf32>
    %582 = vector.broadcast %580 : vector<8x1xf32> to vector<8x32xf32>
    %583 = vector.broadcast %581 : vector<1x32xf32> to vector<8x32xf32>
    %584 = arith.mulf %582, %583 : vector<8x32xf32>
    %585 = arith.addf %579, %584 : vector<8x32xf32>
    %586 = vector.extract_strided_slice %410 {offsets = [0, 29], sizes = [8, 1], strides = [1, 1]} : vector<8x32xf32> to vector<8x1xf32>
    %587 = vector.extract_strided_slice %412 {offsets = [29, 0], sizes = [1, 32], strides = [1, 1]} : vector<32x32xf32> to vector<1x32xf32>
    %588 = vector.broadcast %586 : vector<8x1xf32> to vector<8x32xf32>
    %589 = vector.broadcast %587 : vector<1x32xf32> to vector<8x32xf32>
    %590 = arith.mulf %588, %589 : vector<8x32xf32>
    %591 = arith.addf %585, %590 : vector<8x32xf32>
    %592 = vector.extract_strided_slice %410 {offsets = [0, 30], sizes = [8, 1], strides = [1, 1]} : vector<8x32xf32> to vector<8x1xf32>
    %593 = vector.extract_strided_slice %412 {offsets = [30, 0], sizes = [1, 32], strides = [1, 1]} : vector<32x32xf32> to vector<1x32xf32>
    %594 = vector.broadcast %592 : vector<8x1xf32> to vector<8x32xf32>
    %595 = vector.broadcast %593 : vector<1x32xf32> to vector<8x32xf32>
    %596 = arith.mulf %594, %595 : vector<8x32xf32>
    %597 = arith.addf %591, %596 : vector<8x32xf32>
    %598 = vector.extract_strided_slice %410 {offsets = [0, 31], sizes = [8, 1], strides = [1, 1]} : vector<8x32xf32> to vector<8x1xf32>
    %599 = vector.extract_strided_slice %412 {offsets = [31, 0], sizes = [1, 32], strides = [1, 1]} : vector<32x32xf32> to vector<1x32xf32>
    %600 = vector.broadcast %598 : vector<8x1xf32> to vector<8x32xf32>
    %601 = vector.broadcast %599 : vector<1x32xf32> to vector<8x32xf32>
    %602 = arith.mulf %600, %601 : vector<8x32xf32>
    %603 = arith.addf %597, %602 : vector<8x32xf32>
    %c2_18 = arith.constant 2 : index
    %c0_19 = arith.constant 0 : index
    %c0_20 = arith.constant 0 : index
    %604 = vector.load %arg3[%c2_18, %c0_19, %c0_20] : memref<4x1x32xf32, #tpu.memory_space<vmem>>, vector<1x1x32xf32>
    %605 = vector.shape_cast %604 : vector<1x1x32xf32> to vector<1x32xf32>
    %606 = vector.broadcast %605 : vector<1x32xf32> to vector<8x32xf32>
    %607 = arith.addf %603, %606 : vector<8x32xf32>
    %cst_21 = arith.constant 2.000000e-01 : f32
    %608 = vector.broadcast %cst_21 : f32 to vector<8x32xf32>
    %609 = arith.mulf %608, %607 : vector<8x32xf32>
    %610 = arith.maximumf %607, %609 : vector<8x32xf32>
    %c3 = arith.constant 3 : index
    %c0_22 = arith.constant 0 : index
    %c0_23 = arith.constant 0 : index
    %611 = vector.load %arg2[%c3, %c0_22, %c0_23] : memref<4x32x32xf32, #tpu.memory_space<vmem>>, vector<1x32x32xf32>
    %612 = vector.shape_cast %611 : vector<1x32x32xf32> to vector<32x32xf32>
    %613 = vector.extract_strided_slice %610 {offsets = [0, 0], sizes = [8, 1], strides = [1, 1]} : vector<8x32xf32> to vector<8x1xf32>
    %614 = vector.extract_strided_slice %612 {offsets = [0, 0], sizes = [1, 32], strides = [1, 1]} : vector<32x32xf32> to vector<1x32xf32>
    %615 = vector.broadcast %613 : vector<8x1xf32> to vector<8x32xf32>
    %616 = vector.broadcast %614 : vector<1x32xf32> to vector<8x32xf32>
    %617 = arith.mulf %615, %616 : vector<8x32xf32>
    %618 = vector.extract_strided_slice %610 {offsets = [0, 1], sizes = [8, 1], strides = [1, 1]} : vector<8x32xf32> to vector<8x1xf32>
    %619 = vector.extract_strided_slice %612 {offsets = [1, 0], sizes = [1, 32], strides = [1, 1]} : vector<32x32xf32> to vector<1x32xf32>
    %620 = vector.broadcast %618 : vector<8x1xf32> to vector<8x32xf32>
    %621 = vector.broadcast %619 : vector<1x32xf32> to vector<8x32xf32>
    %622 = arith.mulf %620, %621 : vector<8x32xf32>
    %623 = arith.addf %617, %622 : vector<8x32xf32>
    %624 = vector.extract_strided_slice %610 {offsets = [0, 2], sizes = [8, 1], strides = [1, 1]} : vector<8x32xf32> to vector<8x1xf32>
    %625 = vector.extract_strided_slice %612 {offsets = [2, 0], sizes = [1, 32], strides = [1, 1]} : vector<32x32xf32> to vector<1x32xf32>
    %626 = vector.broadcast %624 : vector<8x1xf32> to vector<8x32xf32>
    %627 = vector.broadcast %625 : vector<1x32xf32> to vector<8x32xf32>
    %628 = arith.mulf %626, %627 : vector<8x32xf32>
    %629 = arith.addf %623, %628 : vector<8x32xf32>
    %630 = vector.extract_strided_slice %610 {offsets = [0, 3], sizes = [8, 1], strides = [1, 1]} : vector<8x32xf32> to vector<8x1xf32>
    %631 = vector.extract_strided_slice %612 {offsets = [3, 0], sizes = [1, 32], strides = [1, 1]} : vector<32x32xf32> to vector<1x32xf32>
    %632 = vector.broadcast %630 : vector<8x1xf32> to vector<8x32xf32>
    %633 = vector.broadcast %631 : vector<1x32xf32> to vector<8x32xf32>
    %634 = arith.mulf %632, %633 : vector<8x32xf32>
    %635 = arith.addf %629, %634 : vector<8x32xf32>
    %636 = vector.extract_strided_slice %610 {offsets = [0, 4], sizes = [8, 1], strides = [1, 1]} : vector<8x32xf32> to vector<8x1xf32>
    %637 = vector.extract_strided_slice %612 {offsets = [4, 0], sizes = [1, 32], strides = [1, 1]} : vector<32x32xf32> to vector<1x32xf32>
    %638 = vector.broadcast %636 : vector<8x1xf32> to vector<8x32xf32>
    %639 = vector.broadcast %637 : vector<1x32xf32> to vector<8x32xf32>
    %640 = arith.mulf %638, %639 : vector<8x32xf32>
    %641 = arith.addf %635, %640 : vector<8x32xf32>
    %642 = vector.extract_strided_slice %610 {offsets = [0, 5], sizes = [8, 1], strides = [1, 1]} : vector<8x32xf32> to vector<8x1xf32>
    %643 = vector.extract_strided_slice %612 {offsets = [5, 0], sizes = [1, 32], strides = [1, 1]} : vector<32x32xf32> to vector<1x32xf32>
    %644 = vector.broadcast %642 : vector<8x1xf32> to vector<8x32xf32>
    %645 = vector.broadcast %643 : vector<1x32xf32> to vector<8x32xf32>
    %646 = arith.mulf %644, %645 : vector<8x32xf32>
    %647 = arith.addf %641, %646 : vector<8x32xf32>
    %648 = vector.extract_strided_slice %610 {offsets = [0, 6], sizes = [8, 1], strides = [1, 1]} : vector<8x32xf32> to vector<8x1xf32>
    %649 = vector.extract_strided_slice %612 {offsets = [6, 0], sizes = [1, 32], strides = [1, 1]} : vector<32x32xf32> to vector<1x32xf32>
    %650 = vector.broadcast %648 : vector<8x1xf32> to vector<8x32xf32>
    %651 = vector.broadcast %649 : vector<1x32xf32> to vector<8x32xf32>
    %652 = arith.mulf %650, %651 : vector<8x32xf32>
    %653 = arith.addf %647, %652 : vector<8x32xf32>
    %654 = vector.extract_strided_slice %610 {offsets = [0, 7], sizes = [8, 1], strides = [1, 1]} : vector<8x32xf32> to vector<8x1xf32>
    %655 = vector.extract_strided_slice %612 {offsets = [7, 0], sizes = [1, 32], strides = [1, 1]} : vector<32x32xf32> to vector<1x32xf32>
    %656 = vector.broadcast %654 : vector<8x1xf32> to vector<8x32xf32>
    %657 = vector.broadcast %655 : vector<1x32xf32> to vector<8x32xf32>
    %658 = arith.mulf %656, %657 : vector<8x32xf32>
    %659 = arith.addf %653, %658 : vector<8x32xf32>
    %660 = vector.extract_strided_slice %610 {offsets = [0, 8], sizes = [8, 1], strides = [1, 1]} : vector<8x32xf32> to vector<8x1xf32>
    %661 = vector.extract_strided_slice %612 {offsets = [8, 0], sizes = [1, 32], strides = [1, 1]} : vector<32x32xf32> to vector<1x32xf32>
    %662 = vector.broadcast %660 : vector<8x1xf32> to vector<8x32xf32>
    %663 = vector.broadcast %661 : vector<1x32xf32> to vector<8x32xf32>
    %664 = arith.mulf %662, %663 : vector<8x32xf32>
    %665 = arith.addf %659, %664 : vector<8x32xf32>
    %666 = vector.extract_strided_slice %610 {offsets = [0, 9], sizes = [8, 1], strides = [1, 1]} : vector<8x32xf32> to vector<8x1xf32>
    %667 = vector.extract_strided_slice %612 {offsets = [9, 0], sizes = [1, 32], strides = [1, 1]} : vector<32x32xf32> to vector<1x32xf32>
    %668 = vector.broadcast %666 : vector<8x1xf32> to vector<8x32xf32>
    %669 = vector.broadcast %667 : vector<1x32xf32> to vector<8x32xf32>
    %670 = arith.mulf %668, %669 : vector<8x32xf32>
    %671 = arith.addf %665, %670 : vector<8x32xf32>
    %672 = vector.extract_strided_slice %610 {offsets = [0, 10], sizes = [8, 1], strides = [1, 1]} : vector<8x32xf32> to vector<8x1xf32>
    %673 = vector.extract_strided_slice %612 {offsets = [10, 0], sizes = [1, 32], strides = [1, 1]} : vector<32x32xf32> to vector<1x32xf32>
    %674 = vector.broadcast %672 : vector<8x1xf32> to vector<8x32xf32>
    %675 = vector.broadcast %673 : vector<1x32xf32> to vector<8x32xf32>
    %676 = arith.mulf %674, %675 : vector<8x32xf32>
    %677 = arith.addf %671, %676 : vector<8x32xf32>
    %678 = vector.extract_strided_slice %610 {offsets = [0, 11], sizes = [8, 1], strides = [1, 1]} : vector<8x32xf32> to vector<8x1xf32>
    %679 = vector.extract_strided_slice %612 {offsets = [11, 0], sizes = [1, 32], strides = [1, 1]} : vector<32x32xf32> to vector<1x32xf32>
    %680 = vector.broadcast %678 : vector<8x1xf32> to vector<8x32xf32>
    %681 = vector.broadcast %679 : vector<1x32xf32> to vector<8x32xf32>
    %682 = arith.mulf %680, %681 : vector<8x32xf32>
    %683 = arith.addf %677, %682 : vector<8x32xf32>
    %684 = vector.extract_strided_slice %610 {offsets = [0, 12], sizes = [8, 1], strides = [1, 1]} : vector<8x32xf32> to vector<8x1xf32>
    %685 = vector.extract_strided_slice %612 {offsets = [12, 0], sizes = [1, 32], strides = [1, 1]} : vector<32x32xf32> to vector<1x32xf32>
    %686 = vector.broadcast %684 : vector<8x1xf32> to vector<8x32xf32>
    %687 = vector.broadcast %685 : vector<1x32xf32> to vector<8x32xf32>
    %688 = arith.mulf %686, %687 : vector<8x32xf32>
    %689 = arith.addf %683, %688 : vector<8x32xf32>
    %690 = vector.extract_strided_slice %610 {offsets = [0, 13], sizes = [8, 1], strides = [1, 1]} : vector<8x32xf32> to vector<8x1xf32>
    %691 = vector.extract_strided_slice %612 {offsets = [13, 0], sizes = [1, 32], strides = [1, 1]} : vector<32x32xf32> to vector<1x32xf32>
    %692 = vector.broadcast %690 : vector<8x1xf32> to vector<8x32xf32>
    %693 = vector.broadcast %691 : vector<1x32xf32> to vector<8x32xf32>
    %694 = arith.mulf %692, %693 : vector<8x32xf32>
    %695 = arith.addf %689, %694 : vector<8x32xf32>
    %696 = vector.extract_strided_slice %610 {offsets = [0, 14], sizes = [8, 1], strides = [1, 1]} : vector<8x32xf32> to vector<8x1xf32>
    %697 = vector.extract_strided_slice %612 {offsets = [14, 0], sizes = [1, 32], strides = [1, 1]} : vector<32x32xf32> to vector<1x32xf32>
    %698 = vector.broadcast %696 : vector<8x1xf32> to vector<8x32xf32>
    %699 = vector.broadcast %697 : vector<1x32xf32> to vector<8x32xf32>
    %700 = arith.mulf %698, %699 : vector<8x32xf32>
    %701 = arith.addf %695, %700 : vector<8x32xf32>
    %702 = vector.extract_strided_slice %610 {offsets = [0, 15], sizes = [8, 1], strides = [1, 1]} : vector<8x32xf32> to vector<8x1xf32>
    %703 = vector.extract_strided_slice %612 {offsets = [15, 0], sizes = [1, 32], strides = [1, 1]} : vector<32x32xf32> to vector<1x32xf32>
    %704 = vector.broadcast %702 : vector<8x1xf32> to vector<8x32xf32>
    %705 = vector.broadcast %703 : vector<1x32xf32> to vector<8x32xf32>
    %706 = arith.mulf %704, %705 : vector<8x32xf32>
    %707 = arith.addf %701, %706 : vector<8x32xf32>
    %708 = vector.extract_strided_slice %610 {offsets = [0, 16], sizes = [8, 1], strides = [1, 1]} : vector<8x32xf32> to vector<8x1xf32>
    %709 = vector.extract_strided_slice %612 {offsets = [16, 0], sizes = [1, 32], strides = [1, 1]} : vector<32x32xf32> to vector<1x32xf32>
    %710 = vector.broadcast %708 : vector<8x1xf32> to vector<8x32xf32>
    %711 = vector.broadcast %709 : vector<1x32xf32> to vector<8x32xf32>
    %712 = arith.mulf %710, %711 : vector<8x32xf32>
    %713 = arith.addf %707, %712 : vector<8x32xf32>
    %714 = vector.extract_strided_slice %610 {offsets = [0, 17], sizes = [8, 1], strides = [1, 1]} : vector<8x32xf32> to vector<8x1xf32>
    %715 = vector.extract_strided_slice %612 {offsets = [17, 0], sizes = [1, 32], strides = [1, 1]} : vector<32x32xf32> to vector<1x32xf32>
    %716 = vector.broadcast %714 : vector<8x1xf32> to vector<8x32xf32>
    %717 = vector.broadcast %715 : vector<1x32xf32> to vector<8x32xf32>
    %718 = arith.mulf %716, %717 : vector<8x32xf32>
    %719 = arith.addf %713, %718 : vector<8x32xf32>
    %720 = vector.extract_strided_slice %610 {offsets = [0, 18], sizes = [8, 1], strides = [1, 1]} : vector<8x32xf32> to vector<8x1xf32>
    %721 = vector.extract_strided_slice %612 {offsets = [18, 0], sizes = [1, 32], strides = [1, 1]} : vector<32x32xf32> to vector<1x32xf32>
    %722 = vector.broadcast %720 : vector<8x1xf32> to vector<8x32xf32>
    %723 = vector.broadcast %721 : vector<1x32xf32> to vector<8x32xf32>
    %724 = arith.mulf %722, %723 : vector<8x32xf32>
    %725 = arith.addf %719, %724 : vector<8x32xf32>
    %726 = vector.extract_strided_slice %610 {offsets = [0, 19], sizes = [8, 1], strides = [1, 1]} : vector<8x32xf32> to vector<8x1xf32>
    %727 = vector.extract_strided_slice %612 {offsets = [19, 0], sizes = [1, 32], strides = [1, 1]} : vector<32x32xf32> to vector<1x32xf32>
    %728 = vector.broadcast %726 : vector<8x1xf32> to vector<8x32xf32>
    %729 = vector.broadcast %727 : vector<1x32xf32> to vector<8x32xf32>
    %730 = arith.mulf %728, %729 : vector<8x32xf32>
    %731 = arith.addf %725, %730 : vector<8x32xf32>
    %732 = vector.extract_strided_slice %610 {offsets = [0, 20], sizes = [8, 1], strides = [1, 1]} : vector<8x32xf32> to vector<8x1xf32>
    %733 = vector.extract_strided_slice %612 {offsets = [20, 0], sizes = [1, 32], strides = [1, 1]} : vector<32x32xf32> to vector<1x32xf32>
    %734 = vector.broadcast %732 : vector<8x1xf32> to vector<8x32xf32>
    %735 = vector.broadcast %733 : vector<1x32xf32> to vector<8x32xf32>
    %736 = arith.mulf %734, %735 : vector<8x32xf32>
    %737 = arith.addf %731, %736 : vector<8x32xf32>
    %738 = vector.extract_strided_slice %610 {offsets = [0, 21], sizes = [8, 1], strides = [1, 1]} : vector<8x32xf32> to vector<8x1xf32>
    %739 = vector.extract_strided_slice %612 {offsets = [21, 0], sizes = [1, 32], strides = [1, 1]} : vector<32x32xf32> to vector<1x32xf32>
    %740 = vector.broadcast %738 : vector<8x1xf32> to vector<8x32xf32>
    %741 = vector.broadcast %739 : vector<1x32xf32> to vector<8x32xf32>
    %742 = arith.mulf %740, %741 : vector<8x32xf32>
    %743 = arith.addf %737, %742 : vector<8x32xf32>
    %744 = vector.extract_strided_slice %610 {offsets = [0, 22], sizes = [8, 1], strides = [1, 1]} : vector<8x32xf32> to vector<8x1xf32>
    %745 = vector.extract_strided_slice %612 {offsets = [22, 0], sizes = [1, 32], strides = [1, 1]} : vector<32x32xf32> to vector<1x32xf32>
    %746 = vector.broadcast %744 : vector<8x1xf32> to vector<8x32xf32>
    %747 = vector.broadcast %745 : vector<1x32xf32> to vector<8x32xf32>
    %748 = arith.mulf %746, %747 : vector<8x32xf32>
    %749 = arith.addf %743, %748 : vector<8x32xf32>
    %750 = vector.extract_strided_slice %610 {offsets = [0, 23], sizes = [8, 1], strides = [1, 1]} : vector<8x32xf32> to vector<8x1xf32>
    %751 = vector.extract_strided_slice %612 {offsets = [23, 0], sizes = [1, 32], strides = [1, 1]} : vector<32x32xf32> to vector<1x32xf32>
    %752 = vector.broadcast %750 : vector<8x1xf32> to vector<8x32xf32>
    %753 = vector.broadcast %751 : vector<1x32xf32> to vector<8x32xf32>
    %754 = arith.mulf %752, %753 : vector<8x32xf32>
    %755 = arith.addf %749, %754 : vector<8x32xf32>
    %756 = vector.extract_strided_slice %610 {offsets = [0, 24], sizes = [8, 1], strides = [1, 1]} : vector<8x32xf32> to vector<8x1xf32>
    %757 = vector.extract_strided_slice %612 {offsets = [24, 0], sizes = [1, 32], strides = [1, 1]} : vector<32x32xf32> to vector<1x32xf32>
    %758 = vector.broadcast %756 : vector<8x1xf32> to vector<8x32xf32>
    %759 = vector.broadcast %757 : vector<1x32xf32> to vector<8x32xf32>
    %760 = arith.mulf %758, %759 : vector<8x32xf32>
    %761 = arith.addf %755, %760 : vector<8x32xf32>
    %762 = vector.extract_strided_slice %610 {offsets = [0, 25], sizes = [8, 1], strides = [1, 1]} : vector<8x32xf32> to vector<8x1xf32>
    %763 = vector.extract_strided_slice %612 {offsets = [25, 0], sizes = [1, 32], strides = [1, 1]} : vector<32x32xf32> to vector<1x32xf32>
    %764 = vector.broadcast %762 : vector<8x1xf32> to vector<8x32xf32>
    %765 = vector.broadcast %763 : vector<1x32xf32> to vector<8x32xf32>
    %766 = arith.mulf %764, %765 : vector<8x32xf32>
    %767 = arith.addf %761, %766 : vector<8x32xf32>
    %768 = vector.extract_strided_slice %610 {offsets = [0, 26], sizes = [8, 1], strides = [1, 1]} : vector<8x32xf32> to vector<8x1xf32>
    %769 = vector.extract_strided_slice %612 {offsets = [26, 0], sizes = [1, 32], strides = [1, 1]} : vector<32x32xf32> to vector<1x32xf32>
    %770 = vector.broadcast %768 : vector<8x1xf32> to vector<8x32xf32>
    %771 = vector.broadcast %769 : vector<1x32xf32> to vector<8x32xf32>
    %772 = arith.mulf %770, %771 : vector<8x32xf32>
    %773 = arith.addf %767, %772 : vector<8x32xf32>
    %774 = vector.extract_strided_slice %610 {offsets = [0, 27], sizes = [8, 1], strides = [1, 1]} : vector<8x32xf32> to vector<8x1xf32>
    %775 = vector.extract_strided_slice %612 {offsets = [27, 0], sizes = [1, 32], strides = [1, 1]} : vector<32x32xf32> to vector<1x32xf32>
    %776 = vector.broadcast %774 : vector<8x1xf32> to vector<8x32xf32>
    %777 = vector.broadcast %775 : vector<1x32xf32> to vector<8x32xf32>
    %778 = arith.mulf %776, %777 : vector<8x32xf32>
    %779 = arith.addf %773, %778 : vector<8x32xf32>
    %780 = vector.extract_strided_slice %610 {offsets = [0, 28], sizes = [8, 1], strides = [1, 1]} : vector<8x32xf32> to vector<8x1xf32>
    %781 = vector.extract_strided_slice %612 {offsets = [28, 0], sizes = [1, 32], strides = [1, 1]} : vector<32x32xf32> to vector<1x32xf32>
    %782 = vector.broadcast %780 : vector<8x1xf32> to vector<8x32xf32>
    %783 = vector.broadcast %781 : vector<1x32xf32> to vector<8x32xf32>
    %784 = arith.mulf %782, %783 : vector<8x32xf32>
    %785 = arith.addf %779, %784 : vector<8x32xf32>
    %786 = vector.extract_strided_slice %610 {offsets = [0, 29], sizes = [8, 1], strides = [1, 1]} : vector<8x32xf32> to vector<8x1xf32>
    %787 = vector.extract_strided_slice %612 {offsets = [29, 0], sizes = [1, 32], strides = [1, 1]} : vector<32x32xf32> to vector<1x32xf32>
    %788 = vector.broadcast %786 : vector<8x1xf32> to vector<8x32xf32>
    %789 = vector.broadcast %787 : vector<1x32xf32> to vector<8x32xf32>
    %790 = arith.mulf %788, %789 : vector<8x32xf32>
    %791 = arith.addf %785, %790 : vector<8x32xf32>
    %792 = vector.extract_strided_slice %610 {offsets = [0, 30], sizes = [8, 1], strides = [1, 1]} : vector<8x32xf32> to vector<8x1xf32>
    %793 = vector.extract_strided_slice %612 {offsets = [30, 0], sizes = [1, 32], strides = [1, 1]} : vector<32x32xf32> to vector<1x32xf32>
    %794 = vector.broadcast %792 : vector<8x1xf32> to vector<8x32xf32>
    %795 = vector.broadcast %793 : vector<1x32xf32> to vector<8x32xf32>
    %796 = arith.mulf %794, %795 : vector<8x32xf32>
    %797 = arith.addf %791, %796 : vector<8x32xf32>
    %798 = vector.extract_strided_slice %610 {offsets = [0, 31], sizes = [8, 1], strides = [1, 1]} : vector<8x32xf32> to vector<8x1xf32>
    %799 = vector.extract_strided_slice %612 {offsets = [31, 0], sizes = [1, 32], strides = [1, 1]} : vector<32x32xf32> to vector<1x32xf32>
    %800 = vector.broadcast %798 : vector<8x1xf32> to vector<8x32xf32>
    %801 = vector.broadcast %799 : vector<1x32xf32> to vector<8x32xf32>
    %802 = arith.mulf %800, %801 : vector<8x32xf32>
    %803 = arith.addf %797, %802 : vector<8x32xf32>
    %c3_24 = arith.constant 3 : index
    %c0_25 = arith.constant 0 : index
    %c0_26 = arith.constant 0 : index
    %804 = vector.load %arg3[%c3_24, %c0_25, %c0_26] : memref<4x1x32xf32, #tpu.memory_space<vmem>>, vector<1x1x32xf32>
    %805 = vector.shape_cast %804 : vector<1x1x32xf32> to vector<1x32xf32>
    %806 = vector.broadcast %805 : vector<1x32xf32> to vector<8x32xf32>
    %807 = arith.addf %803, %806 : vector<8x32xf32>
    %cst_27 = arith.constant 2.000000e-01 : f32
    %808 = vector.broadcast %cst_27 : f32 to vector<8x32xf32>
    %809 = arith.mulf %808, %807 : vector<8x32xf32>
    %810 = arith.maximumf %807, %809 : vector<8x32xf32>
    %c0_28 = arith.constant 0 : index
    %c0_29 = arith.constant 0 : index
    %811 = vector.load %arg4[%c0_28, %c0_29] : memref<8x32xf32, #tpu.memory_space<vmem>>, vector<8x32xf32>
    tpu.vector_store %arg4[%c0_28, %c0_29], %810 {strides = array<i32>} : memref<8x32xf32, #tpu.memory_space<vmem>>, vector<8x32xf32>,
    return
  }
  func.func @transform_0(%arg0: i32) -> (i32, i32) {
    %c0_i32 = arith.constant 0 : i32
    %c0_i32_0 = arith.constant 0 : i32
    return %arg0, %c0_i32 : i32, i32
  }
  func.func @transform_1(%arg0: i32) -> (i32, i32, i32) {
    %c0_i32 = arith.constant 0 : i32
    %c0_i32_0 = arith.constant 0 : i32
    %c0_i32_1 = arith.constant 0 : i32
    %c0_i32_2 = arith.constant 0 : i32
    return %c0_i32, %c0_i32_0, %c0_i32_1 : i32, i32, i32
  }
  func.func @transform_2(%arg0: i32) -> (i32, i32, i32) {
    %c0_i32 = arith.constant 0 : i32
    %c0_i32_0 = arith.constant 0 : i32
    %c0_i32_1 = arith.constant 0 : i32
    %c0_i32_2 = arith.constant 0 : i32
    return %c0_i32, %c0_i32_0, %c0_i32_1 : i32, i32, i32
  }
  func.func @transform_3(%arg0: i32) -> (i32, i32) {
    %c0_i32 = arith.constant 0 : i32
    %c0_i32_0 = arith.constant 0 : i32
    return %arg0, %c0_i32 : i32, i32
  }
}

module attributes {stable_mosaic.version = 11 : i64} {
  func.func @mapping_kernel(%arg0: i32, %arg1: memref<8x32xf32, #tpu.memory_space<vmem>>, %arg2: memref<4x32x32xf32, #tpu.memory_space<vmem>>, %arg3: memref<4x1x32xf32, #tpu.memory_space<vmem>>, %arg4: memref<8x32xf32, #tpu.memory_space<vmem>>) attributes {dimension_semantics = [#tpu.dimension_semantics<parallel>], iteration_bounds = array<i64: 1>, scalar_prefetch = 0 : i64, scratch_operands = 0 : i64, tpu.core_type = #tpu.core_type<tc>, window_params = [{transform_indices = @transform_0, window_bounds = array<i64: 8, 32>}, {pipeline_mode = #tpu.pipeline_mode<synchronous>, transform_indices = @transform_1, window_bounds = array<i64: 4, 32, 32>}, {pipeline_mode = #tpu.pipeline_mode<synchronous>, transform_indices = @transform_2, window_bounds = array<i64: 4, 1, 32>}, {transform_indices = @transform_3, window_bounds = array<i64: 8, 32>}]} {
    %c0 = arith.constant 0 : index
    %c0_0 = arith.constant 0 : index
    %0 = vector.load %arg1[%c0, %c0_0] : memref<8x32xf32, #tpu.memory_space<vmem>>, vector<8x32xf32>
    %1 = arith.mulf %0, %0 : vector<8x32xf32>
    %cst = arith.constant dense<0.000000e+00> : vector<8xf32>
    %2 = vector.multi_reduction <add>, %1, %cst [1] : vector<8x32xf32> to vector<8xf32>
    %3 = vector.shape_cast %2 : vector<8xf32> to vector<8x1xf32>
    %cst_1 = arith.constant 3.125000e-02 : f32
    %4 = vector.broadcast %cst_1 : f32 to vector<8x1xf32>
    %5 = arith.mulf %3, %4 : vector<8x1xf32>
    %cst_2 = arith.constant 9.99999993E-9 : f32
    %6 = vector.broadcast %cst_2 : f32 to vector<8x1xf32>
    %7 = arith.addf %5, %6 : vector<8x1xf32>
    %8 = math.rsqrt %7 : vector<8x1xf32>
    %9 = vector.broadcast %8 : vector<8x1xf32> to vector<8x32xf32>
    %10 = arith.mulf %0, %9 : vector<8x32xf32>
    %c0_3 = arith.constant 0 : index
    %c0_4 = arith.constant 0 : index
    %c0_5 = arith.constant 0 : index
    %11 = vector.load %arg2[%c0_3, %c0_4, %c0_5] : memref<4x32x32xf32, #tpu.memory_space<vmem>>, vector<1x32x32xf32>
    %12 = vector.shape_cast %11 : vector<1x32x32xf32> to vector<32x32xf32>
    %13 = vector.extract_strided_slice %10 {offsets = [0, 0], sizes = [8, 1], strides = [1, 1]} : vector<8x32xf32> to vector<8x1xf32>
    %14 = vector.extract_strided_slice %12 {offsets = [0, 0], sizes = [1, 32], strides = [1, 1]} : vector<32x32xf32> to vector<1x32xf32>
    %15 = vector.broadcast %13 : vector<8x1xf32> to vector<8x32xf32>
    %16 = vector.broadcast %14 : vector<1x32xf32> to vector<8x32xf32>
    %17 = arith.mulf %15, %16 : vector<8x32xf32>
    %18 = vector.extract_strided_slice %10 {offsets = [0, 1], sizes = [8, 1], strides = [1, 1]} : vector<8x32xf32> to vector<8x1xf32>
    %19 = vector.extract_strided_slice %12 {offsets = [1, 0], sizes = [1, 32], strides = [1, 1]} : vector<32x32xf32> to vector<1x32xf32>
    %20 = vector.broadcast %18 : vector<8x1xf32> to vector<8x32xf32>
    %21 = vector.broadcast %19 : vector<1x32xf32> to vector<8x32xf32>
    %22 = arith.mulf %20, %21 : vector<8x32xf32>
    %23 = arith.addf %17, %22 : vector<8x32xf32>
    %24 = vector.extract_strided_slice %10 {offsets = [0, 2], sizes = [8, 1], strides = [1, 1]} : vector<8x32xf32> to vector<8x1xf32>
    %25 = vector.extract_strided_slice %12 {offsets = [2, 0], sizes = [1, 32], strides = [1, 1]} : vector<32x32xf32> to vector<1x32xf32>
    %26 = vector.broadcast %24 : vector<8x1xf32> to vector<8x32xf32>
    %27 = vector.broadcast %25 : vector<1x32xf32> to vector<8x32xf32>
    %28 = arith.mulf %26, %27 : vector<8x32xf32>
    %29 = arith.addf %23, %28 : vector<8x32xf32>
    %30 = vector.extract_strided_slice %10 {offsets = [0, 3], sizes = [8, 1], strides = [1, 1]} : vector<8x32xf32> to vector<8x1xf32>
    %31 = vector.extract_strided_slice %12 {offsets = [3, 0], sizes = [1, 32], strides = [1, 1]} : vector<32x32xf32> to vector<1x32xf32>
    %32 = vector.broadcast %30 : vector<8x1xf32> to vector<8x32xf32>
    %33 = vector.broadcast %31 : vector<1x32xf32> to vector<8x32xf32>
    %34 = arith.mulf %32, %33 : vector<8x32xf32>
    %35 = arith.addf %29, %34 : vector<8x32xf32>
    %36 = vector.extract_strided_slice %10 {offsets = [0, 4], sizes = [8, 1], strides = [1, 1]} : vector<8x32xf32> to vector<8x1xf32>
    %37 = vector.extract_strided_slice %12 {offsets = [4, 0], sizes = [1, 32], strides = [1, 1]} : vector<32x32xf32> to vector<1x32xf32>
    %38 = vector.broadcast %36 : vector<8x1xf32> to vector<8x32xf32>
    %39 = vector.broadcast %37 : vector<1x32xf32> to vector<8x32xf32>
    %40 = arith.mulf %38, %39 : vector<8x32xf32>
    %41 = arith.addf %35, %40 : vector<8x32xf32>
    %42 = vector.extract_strided_slice %10 {offsets = [0, 5], sizes = [8, 1], strides = [1, 1]} : vector<8x32xf32> to vector<8x1xf32>
    %43 = vector.extract_strided_slice %12 {offsets = [5, 0], sizes = [1, 32], strides = [1, 1]} : vector<32x32xf32> to vector<1x32xf32>
    %44 = vector.broadcast %42 : vector<8x1xf32> to vector<8x32xf32>
    %45 = vector.broadcast %43 : vector<1x32xf32> to vector<8x32xf32>
    %46 = arith.mulf %44, %45 : vector<8x32xf32>
    %47 = arith.addf %41, %46 : vector<8x32xf32>
    %48 = vector.extract_strided_slice %10 {offsets = [0, 6], sizes = [8, 1], strides = [1, 1]} : vector<8x32xf32> to vector<8x1xf32>
    %49 = vector.extract_strided_slice %12 {offsets = [6, 0], sizes = [1, 32], strides = [1, 1]} : vector<32x32xf32> to vector<1x32xf32>
    %50 = vector.broadcast %48 : vector<8x1xf32> to vector<8x32xf32>
    %51 = vector.broadcast %49 : vector<1x32xf32> to vector<8x32xf32>
    %52 = arith.mulf %50, %51 : vector<8x32xf32>
    %53 = arith.addf %47, %52 : vector<8x32xf32>
    %54 = vector.extract_strided_slice %10 {offsets = [0, 7], sizes = [8, 1], strides = [1, 1]} : vector<8x32xf32> to vector<8x1xf32>
    %55 = vector.extract_strided_slice %12 {offsets = [7, 0], sizes = [1, 32], strides = [1, 1]} : vector<32x32xf32> to vector<1x32xf32>
    %56 = vector.broadcast %54 : vector<8x1xf32> to vector<8x32xf32>
    %57 = vector.broadcast %55 : vector<1x32xf32> to vector<8x32xf32>
    %58 = arith.mulf %56, %57 : vector<8x32xf32>
    %59 = arith.addf %53, %58 : vector<8x32xf32>
    %60 = vector.extract_strided_slice %10 {offsets = [0, 8], sizes = [8, 1], strides = [1, 1]} : vector<8x32xf32> to vector<8x1xf32>
    %61 = vector.extract_strided_slice %12 {offsets = [8, 0], sizes = [1, 32], strides = [1, 1]} : vector<32x32xf32> to vector<1x32xf32>
    %62 = vector.broadcast %60 : vector<8x1xf32> to vector<8x32xf32>
    %63 = vector.broadcast %61 : vector<1x32xf32> to vector<8x32xf32>
    %64 = arith.mulf %62, %63 : vector<8x32xf32>
    %65 = arith.addf %59, %64 : vector<8x32xf32>
    %66 = vector.extract_strided_slice %10 {offsets = [0, 9], sizes = [8, 1], strides = [1, 1]} : vector<8x32xf32> to vector<8x1xf32>
    %67 = vector.extract_strided_slice %12 {offsets = [9, 0], sizes = [1, 32], strides = [1, 1]} : vector<32x32xf32> to vector<1x32xf32>
    %68 = vector.broadcast %66 : vector<8x1xf32> to vector<8x32xf32>
    %69 = vector.broadcast %67 : vector<1x32xf32> to vector<8x32xf32>
    %70 = arith.mulf %68, %69 : vector<8x32xf32>
    %71 = arith.addf %65, %70 : vector<8x32xf32>
    %72 = vector.extract_strided_slice %10 {offsets = [0, 10], sizes = [8, 1], strides = [1, 1]} : vector<8x32xf32> to vector<8x1xf32>
    %73 = vector.extract_strided_slice %12 {offsets = [10, 0], sizes = [1, 32], strides = [1, 1]} : vector<32x32xf32> to vector<1x32xf32>
    %74 = vector.broadcast %72 : vector<8x1xf32> to vector<8x32xf32>
    %75 = vector.broadcast %73 : vector<1x32xf32> to vector<8x32xf32>
    %76 = arith.mulf %74, %75 : vector<8x32xf32>
    %77 = arith.addf %71, %76 : vector<8x32xf32>
    %78 = vector.extract_strided_slice %10 {offsets = [0, 11], sizes = [8, 1], strides = [1, 1]} : vector<8x32xf32> to vector<8x1xf32>
    %79 = vector.extract_strided_slice %12 {offsets = [11, 0], sizes = [1, 32], strides = [1, 1]} : vector<32x32xf32> to vector<1x32xf32>
    %80 = vector.broadcast %78 : vector<8x1xf32> to vector<8x32xf32>
    %81 = vector.broadcast %79 : vector<1x32xf32> to vector<8x32xf32>
    %82 = arith.mulf %80, %81 : vector<8x32xf32>
    %83 = arith.addf %77, %82 : vector<8x32xf32>
    %84 = vector.extract_strided_slice %10 {offsets = [0, 12], sizes = [8, 1], strides = [1, 1]} : vector<8x32xf32> to vector<8x1xf32>
    %85 = vector.extract_strided_slice %12 {offsets = [12, 0], sizes = [1, 32], strides = [1, 1]} : vector<32x32xf32> to vector<1x32xf32>
    %86 = vector.broadcast %84 : vector<8x1xf32> to vector<8x32xf32>
    %87 = vector.broadcast %85 : vector<1x32xf32> to vector<8x32xf32>
    %88 = arith.mulf %86, %87 : vector<8x32xf32>
    %89 = arith.addf %83, %88 : vector<8x32xf32>
    %90 = vector.extract_strided_slice %10 {offsets = [0, 13], sizes = [8, 1], strides = [1, 1]} : vector<8x32xf32> to vector<8x1xf32>
    %91 = vector.extract_strided_slice %12 {offsets = [13, 0], sizes = [1, 32], strides = [1, 1]} : vector<32x32xf32> to vector<1x32xf32>
    %92 = vector.broadcast %90 : vector<8x1xf32> to vector<8x32xf32>
    %93 = vector.broadcast %91 : vector<1x32xf32> to vector<8x32xf32>
    %94 = arith.mulf %92, %93 : vector<8x32xf32>
    %95 = arith.addf %89, %94 : vector<8x32xf32>
    %96 = vector.extract_strided_slice %10 {offsets = [0, 14], sizes = [8, 1], strides = [1, 1]} : vector<8x32xf32> to vector<8x1xf32>
    %97 = vector.extract_strided_slice %12 {offsets = [14, 0], sizes = [1, 32], strides = [1, 1]} : vector<32x32xf32> to vector<1x32xf32>
    %98 = vector.broadcast %96 : vector<8x1xf32> to vector<8x32xf32>
    %99 = vector.broadcast %97 : vector<1x32xf32> to vector<8x32xf32>
    %100 = arith.mulf %98, %99 : vector<8x32xf32>
    %101 = arith.addf %95, %100 : vector<8x32xf32>
    %102 = vector.extract_strided_slice %10 {offsets = [0, 15], sizes = [8, 1], strides = [1, 1]} : vector<8x32xf32> to vector<8x1xf32>
    %103 = vector.extract_strided_slice %12 {offsets = [15, 0], sizes = [1, 32], strides = [1, 1]} : vector<32x32xf32> to vector<1x32xf32>
    %104 = vector.broadcast %102 : vector<8x1xf32> to vector<8x32xf32>
    %105 = vector.broadcast %103 : vector<1x32xf32> to vector<8x32xf32>
    %106 = arith.mulf %104, %105 : vector<8x32xf32>
    %107 = arith.addf %101, %106 : vector<8x32xf32>
    %108 = vector.extract_strided_slice %10 {offsets = [0, 16], sizes = [8, 1], strides = [1, 1]} : vector<8x32xf32> to vector<8x1xf32>
    %109 = vector.extract_strided_slice %12 {offsets = [16, 0], sizes = [1, 32], strides = [1, 1]} : vector<32x32xf32> to vector<1x32xf32>
    %110 = vector.broadcast %108 : vector<8x1xf32> to vector<8x32xf32>
    %111 = vector.broadcast %109 : vector<1x32xf32> to vector<8x32xf32>
    %112 = arith.mulf %110, %111 : vector<8x32xf32>
    %113 = arith.addf %107, %112 : vector<8x32xf32>
    %114 = vector.extract_strided_slice %10 {offsets = [0, 17], sizes = [8, 1], strides = [1, 1]} : vector<8x32xf32> to vector<8x1xf32>
    %115 = vector.extract_strided_slice %12 {offsets = [17, 0], sizes = [1, 32], strides = [1, 1]} : vector<32x32xf32> to vector<1x32xf32>
    %116 = vector.broadcast %114 : vector<8x1xf32> to vector<8x32xf32>
    %117 = vector.broadcast %115 : vector<1x32xf32> to vector<8x32xf32>
    %118 = arith.mulf %116, %117 : vector<8x32xf32>
    %119 = arith.addf %113, %118 : vector<8x32xf32>
    %120 = vector.extract_strided_slice %10 {offsets = [0, 18], sizes = [8, 1], strides = [1, 1]} : vector<8x32xf32> to vector<8x1xf32>
    %121 = vector.extract_strided_slice %12 {offsets = [18, 0], sizes = [1, 32], strides = [1, 1]} : vector<32x32xf32> to vector<1x32xf32>
    %122 = vector.broadcast %120 : vector<8x1xf32> to vector<8x32xf32>
    %123 = vector.broadcast %121 : vector<1x32xf32> to vector<8x32xf32>
    %124 = arith.mulf %122, %123 : vector<8x32xf32>
    %125 = arith.addf %119, %124 : vector<8x32xf32>
    %126 = vector.extract_strided_slice %10 {offsets = [0, 19], sizes = [8, 1], strides = [1, 1]} : vector<8x32xf32> to vector<8x1xf32>
    %127 = vector.extract_strided_slice %12 {offsets = [19, 0], sizes = [1, 32], strides = [1, 1]} : vector<32x32xf32> to vector<1x32xf32>
    %128 = vector.broadcast %126 : vector<8x1xf32> to vector<8x32xf32>
    %129 = vector.broadcast %127 : vector<1x32xf32> to vector<8x32xf32>
    %130 = arith.mulf %128, %129 : vector<8x32xf32>
    %131 = arith.addf %125, %130 : vector<8x32xf32>
    %132 = vector.extract_strided_slice %10 {offsets = [0, 20], sizes = [8, 1], strides = [1, 1]} : vector<8x32xf32> to vector<8x1xf32>
    %133 = vector.extract_strided_slice %12 {offsets = [20, 0], sizes = [1, 32], strides = [1, 1]} : vector<32x32xf32> to vector<1x32xf32>
    %134 = vector.broadcast %132 : vector<8x1xf32> to vector<8x32xf32>
    %135 = vector.broadcast %133 : vector<1x32xf32> to vector<8x32xf32>
    %136 = arith.mulf %134, %135 : vector<8x32xf32>
    %137 = arith.addf %131, %136 : vector<8x32xf32>
    %138 = vector.extract_strided_slice %10 {offsets = [0, 21], sizes = [8, 1], strides = [1, 1]} : vector<8x32xf32> to vector<8x1xf32>
    %139 = vector.extract_strided_slice %12 {offsets = [21, 0], sizes = [1, 32], strides = [1, 1]} : vector<32x32xf32> to vector<1x32xf32>
    %140 = vector.broadcast %138 : vector<8x1xf32> to vector<8x32xf32>
    %141 = vector.broadcast %139 : vector<1x32xf32> to vector<8x32xf32>
    %142 = arith.mulf %140, %141 : vector<8x32xf32>
    %143 = arith.addf %137, %142 : vector<8x32xf32>
    %144 = vector.extract_strided_slice %10 {offsets = [0, 22], sizes = [8, 1], strides = [1, 1]} : vector<8x32xf32> to vector<8x1xf32>
    %145 = vector.extract_strided_slice %12 {offsets = [22, 0], sizes = [1, 32], strides = [1, 1]} : vector<32x32xf32> to vector<1x32xf32>
    %146 = vector.broadcast %144 : vector<8x1xf32> to vector<8x32xf32>
    %147 = vector.broadcast %145 : vector<1x32xf32> to vector<8x32xf32>
    %148 = arith.mulf %146, %147 : vector<8x32xf32>
    %149 = arith.addf %143, %148 : vector<8x32xf32>
    %150 = vector.extract_strided_slice %10 {offsets = [0, 23], sizes = [8, 1], strides = [1, 1]} : vector<8x32xf32> to vector<8x1xf32>
    %151 = vector.extract_strided_slice %12 {offsets = [23, 0], sizes = [1, 32], strides = [1, 1]} : vector<32x32xf32> to vector<1x32xf32>
    %152 = vector.broadcast %150 : vector<8x1xf32> to vector<8x32xf32>
    %153 = vector.broadcast %151 : vector<1x32xf32> to vector<8x32xf32>
    %154 = arith.mulf %152, %153 : vector<8x32xf32>
    %155 = arith.addf %149, %154 : vector<8x32xf32>
    %156 = vector.extract_strided_slice %10 {offsets = [0, 24], sizes = [8, 1], strides = [1, 1]} : vector<8x32xf32> to vector<8x1xf32>
    %157 = vector.extract_strided_slice %12 {offsets = [24, 0], sizes = [1, 32], strides = [1, 1]} : vector<32x32xf32> to vector<1x32xf32>
    %158 = vector.broadcast %156 : vector<8x1xf32> to vector<8x32xf32>
    %159 = vector.broadcast %157 : vector<1x32xf32> to vector<8x32xf32>
    %160 = arith.mulf %158, %159 : vector<8x32xf32>
    %161 = arith.addf %155, %160 : vector<8x32xf32>
    %162 = vector.extract_strided_slice %10 {offsets = [0, 25], sizes = [8, 1], strides = [1, 1]} : vector<8x32xf32> to vector<8x1xf32>
    %163 = vector.extract_strided_slice %12 {offsets = [25, 0], sizes = [1, 32], strides = [1, 1]} : vector<32x32xf32> to vector<1x32xf32>
    %164 = vector.broadcast %162 : vector<8x1xf32> to vector<8x32xf32>
    %165 = vector.broadcast %163 : vector<1x32xf32> to vector<8x32xf32>
    %166 = arith.mulf %164, %165 : vector<8x32xf32>
    %167 = arith.addf %161, %166 : vector<8x32xf32>
    %168 = vector.extract_strided_slice %10 {offsets = [0, 26], sizes = [8, 1], strides = [1, 1]} : vector<8x32xf32> to vector<8x1xf32>
    %169 = vector.extract_strided_slice %12 {offsets = [26, 0], sizes = [1, 32], strides = [1, 1]} : vector<32x32xf32> to vector<1x32xf32>
    %170 = vector.broadcast %168 : vector<8x1xf32> to vector<8x32xf32>
    %171 = vector.broadcast %169 : vector<1x32xf32> to vector<8x32xf32>
    %172 = arith.mulf %170, %171 : vector<8x32xf32>
    %173 = arith.addf %167, %172 : vector<8x32xf32>
    %174 = vector.extract_strided_slice %10 {offsets = [0, 27], sizes = [8, 1], strides = [1, 1]} : vector<8x32xf32> to vector<8x1xf32>
    %175 = vector.extract_strided_slice %12 {offsets = [27, 0], sizes = [1, 32], strides = [1, 1]} : vector<32x32xf32> to vector<1x32xf32>
    %176 = vector.broadcast %174 : vector<8x1xf32> to vector<8x32xf32>
    %177 = vector.broadcast %175 : vector<1x32xf32> to vector<8x32xf32>
    %178 = arith.mulf %176, %177 : vector<8x32xf32>
    %179 = arith.addf %173, %178 : vector<8x32xf32>
    %180 = vector.extract_strided_slice %10 {offsets = [0, 28], sizes = [8, 1], strides = [1, 1]} : vector<8x32xf32> to vector<8x1xf32>
    %181 = vector.extract_strided_slice %12 {offsets = [28, 0], sizes = [1, 32], strides = [1, 1]} : vector<32x32xf32> to vector<1x32xf32>
    %182 = vector.broadcast %180 : vector<8x1xf32> to vector<8x32xf32>
    %183 = vector.broadcast %181 : vector<1x32xf32> to vector<8x32xf32>
    %184 = arith.mulf %182, %183 : vector<8x32xf32>
    %185 = arith.addf %179, %184 : vector<8x32xf32>
    %186 = vector.extract_strided_slice %10 {offsets = [0, 29], sizes = [8, 1], strides = [1, 1]} : vector<8x32xf32> to vector<8x1xf32>
    %187 = vector.extract_strided_slice %12 {offsets = [29, 0], sizes = [1, 32], strides = [1, 1]} : vector<32x32xf32> to vector<1x32xf32>
    %188 = vector.broadcast %186 : vector<8x1xf32> to vector<8x32xf32>
    %189 = vector.broadcast %187 : vector<1x32xf32> to vector<8x32xf32>
    %190 = arith.mulf %188, %189 : vector<8x32xf32>
    %191 = arith.addf %185, %190 : vector<8x32xf32>
    %192 = vector.extract_strided_slice %10 {offsets = [0, 30], sizes = [8, 1], strides = [1, 1]} : vector<8x32xf32> to vector<8x1xf32>
    %193 = vector.extract_strided_slice %12 {offsets = [30, 0], sizes = [1, 32], strides = [1, 1]} : vector<32x32xf32> to vector<1x32xf32>
    %194 = vector.broadcast %192 : vector<8x1xf32> to vector<8x32xf32>
    %195 = vector.broadcast %193 : vector<1x32xf32> to vector<8x32xf32>
    %196 = arith.mulf %194, %195 : vector<8x32xf32>
    %197 = arith.addf %191, %196 : vector<8x32xf32>
    %198 = vector.extract_strided_slice %10 {offsets = [0, 31], sizes = [8, 1], strides = [1, 1]} : vector<8x32xf32> to vector<8x1xf32>
    %199 = vector.extract_strided_slice %12 {offsets = [31, 0], sizes = [1, 32], strides = [1, 1]} : vector<32x32xf32> to vector<1x32xf32>
    %200 = vector.broadcast %198 : vector<8x1xf32> to vector<8x32xf32>
    %201 = vector.broadcast %199 : vector<1x32xf32> to vector<8x32xf32>
    %202 = arith.mulf %200, %201 : vector<8x32xf32>
    %203 = arith.addf %197, %202 : vector<8x32xf32>
    %c0_6 = arith.constant 0 : index
    %c0_7 = arith.constant 0 : index
    %c0_8 = arith.constant 0 : index
    %204 = vector.load %arg3[%c0_6, %c0_7, %c0_8] : memref<4x1x32xf32, #tpu.memory_space<vmem>>, vector<1x1x32xf32>
    %205 = vector.shape_cast %204 : vector<1x1x32xf32> to vector<1x32xf32>
    %206 = vector.broadcast %205 : vector<1x32xf32> to vector<8x32xf32>
    %207 = arith.addf %203, %206 : vector<8x32xf32>
    %cst_9 = arith.constant 2.000000e-01 : f32
    %208 = vector.broadcast %cst_9 : f32 to vector<8x32xf32>
    %209 = arith.mulf %208, %207 : vector<8x32xf32>
    %210 = arith.maximumf %207, %209 : vector<8x32xf32>
    %c1 = arith.constant 1 : index
    %c0_10 = arith.constant 0 : index
    %c0_11 = arith.constant 0 : index
    %211 = vector.load %arg2[%c1, %c0_10, %c0_11] : memref<4x32x32xf32, #tpu.memory_space<vmem>>, vector<1x32x32xf32>
    %212 = vector.shape_cast %211 : vector<1x32x32xf32> to vector<32x32xf32>
    %213 = vector.extract_strided_slice %210 {offsets = [0, 0], sizes = [8, 1], strides = [1, 1]} : vector<8x32xf32> to vector<8x1xf32>
    %214 = vector.extract_strided_slice %212 {offsets = [0, 0], sizes = [1, 32], strides = [1, 1]} : vector<32x32xf32> to vector<1x32xf32>
    %215 = vector.broadcast %213 : vector<8x1xf32> to vector<8x32xf32>
    %216 = vector.broadcast %214 : vector<1x32xf32> to vector<8x32xf32>
    %217 = arith.mulf %215, %216 : vector<8x32xf32>
    %218 = vector.extract_strided_slice %210 {offsets = [0, 1], sizes = [8, 1], strides = [1, 1]} : vector<8x32xf32> to vector<8x1xf32>
    %219 = vector.extract_strided_slice %212 {offsets = [1, 0], sizes = [1, 32], strides = [1, 1]} : vector<32x32xf32> to vector<1x32xf32>
    %220 = vector.broadcast %218 : vector<8x1xf32> to vector<8x32xf32>
    %221 = vector.broadcast %219 : vector<1x32xf32> to vector<8x32xf32>
    %222 = arith.mulf %220, %221 : vector<8x32xf32>
    %223 = arith.addf %217, %222 : vector<8x32xf32>
    %224 = vector.extract_strided_slice %210 {offsets = [0, 2], sizes = [8, 1], strides = [1, 1]} : vector<8x32xf32> to vector<8x1xf32>
    %225 = vector.extract_strided_slice %212 {offsets = [2, 0], sizes = [1, 32], strides = [1, 1]} : vector<32x32xf32> to vector<1x32xf32>
    %226 = vector.broadcast %224 : vector<8x1xf32> to vector<8x32xf32>
    %227 = vector.broadcast %225 : vector<1x32xf32> to vector<8x32xf32>
    %228 = arith.mulf %226, %227 : vector<8x32xf32>
    %229 = arith.addf %223, %228 : vector<8x32xf32>
    %230 = vector.extract_strided_slice %210 {offsets = [0, 3], sizes = [8, 1], strides = [1, 1]} : vector<8x32xf32> to vector<8x1xf32>
    %231 = vector.extract_strided_slice %212 {offsets = [3, 0], sizes = [1, 32], strides = [1, 1]} : vector<32x32xf32> to vector<1x32xf32>
    %232 = vector.broadcast %230 : vector<8x1xf32> to vector<8x32xf32>
    %233 = vector.broadcast %231 : vector<1x32xf32> to vector<8x32xf32>
    %234 = arith.mulf %232, %233 : vector<8x32xf32>
    %235 = arith.addf %229, %234 : vector<8x32xf32>
    %236 = vector.extract_strided_slice %210 {offsets = [0, 4], sizes = [8, 1], strides = [1, 1]} : vector<8x32xf32> to vector<8x1xf32>
    %237 = vector.extract_strided_slice %212 {offsets = [4, 0], sizes = [1, 32], strides = [1, 1]} : vector<32x32xf32> to vector<1x32xf32>
    %238 = vector.broadcast %236 : vector<8x1xf32> to vector<8x32xf32>
    %239 = vector.broadcast %237 : vector<1x32xf32> to vector<8x32xf32>
    %240 = arith.mulf %238, %239 : vector<8x32xf32>
    %241 = arith.addf %235, %240 : vector<8x32xf32>
    %242 = vector.extract_strided_slice %210 {offsets = [0, 5], sizes = [8, 1], strides = [1, 1]} : vector<8x32xf32> to vector<8x1xf32>
    %243 = vector.extract_strided_slice %212 {offsets = [5, 0], sizes = [1, 32], strides = [1, 1]} : vector<32x32xf32> to vector<1x32xf32>
    %244 = vector.broadcast %242 : vector<8x1xf32> to vector<8x32xf32>
    %245 = vector.broadcast %243 : vector<1x32xf32> to vector<8x32xf32>
    %246 = arith.mulf %244, %245 : vector<8x32xf32>
    %247 = arith.addf %241, %246 : vector<8x32xf32>
    %248 = vector.extract_strided_slice %210 {offsets = [0, 6], sizes = [8, 1], strides = [1, 1]} : vector<8x32xf32> to vector<8x1xf32>
    %249 = vector.extract_strided_slice %212 {offsets = [6, 0], sizes = [1, 32], strides = [1, 1]} : vector<32x32xf32> to vector<1x32xf32>
    %250 = vector.broadcast %248 : vector<8x1xf32> to vector<8x32xf32>
    %251 = vector.broadcast %249 : vector<1x32xf32> to vector<8x32xf32>
    %252 = arith.mulf %250, %251 : vector<8x32xf32>
    %253 = arith.addf %247, %252 : vector<8x32xf32>
    %254 = vector.extract_strided_slice %210 {offsets = [0, 7], sizes = [8, 1], strides = [1, 1]} : vector<8x32xf32> to vector<8x1xf32>
    %255 = vector.extract_strided_slice %212 {offsets = [7, 0], sizes = [1, 32], strides = [1, 1]} : vector<32x32xf32> to vector<1x32xf32>
    %256 = vector.broadcast %254 : vector<8x1xf32> to vector<8x32xf32>
    %257 = vector.broadcast %255 : vector<1x32xf32> to vector<8x32xf32>
    %258 = arith.mulf %256, %257 : vector<8x32xf32>
    %259 = arith.addf %253, %258 : vector<8x32xf32>
    %260 = vector.extract_strided_slice %210 {offsets = [0, 8], sizes = [8, 1], strides = [1, 1]} : vector<8x32xf32> to vector<8x1xf32>
    %261 = vector.extract_strided_slice %212 {offsets = [8, 0], sizes = [1, 32], strides = [1, 1]} : vector<32x32xf32> to vector<1x32xf32>
    %262 = vector.broadcast %260 : vector<8x1xf32> to vector<8x32xf32>
    %263 = vector.broadcast %261 : vector<1x32xf32> to vector<8x32xf32>
    %264 = arith.mulf %262, %263 : vector<8x32xf32>
    %265 = arith.addf %259, %264 : vector<8x32xf32>
    %266 = vector.extract_strided_slice %210 {offsets = [0, 9], sizes = [8, 1], strides = [1, 1]} : vector<8x32xf32> to vector<8x1xf32>
    %267 = vector.extract_strided_slice %212 {offsets = [9, 0], sizes = [1, 32], strides = [1, 1]} : vector<32x32xf32> to vector<1x32xf32>
    %268 = vector.broadcast %266 : vector<8x1xf32> to vector<8x32xf32>
    %269 = vector.broadcast %267 : vector<1x32xf32> to vector<8x32xf32>
    %270 = arith.mulf %268, %269 : vector<8x32xf32>
    %271 = arith.addf %265, %270 : vector<8x32xf32>
    %272 = vector.extract_strided_slice %210 {offsets = [0, 10], sizes = [8, 1], strides = [1, 1]} : vector<8x32xf32> to vector<8x1xf32>
    %273 = vector.extract_strided_slice %212 {offsets = [10, 0], sizes = [1, 32], strides = [1, 1]} : vector<32x32xf32> to vector<1x32xf32>
    %274 = vector.broadcast %272 : vector<8x1xf32> to vector<8x32xf32>
    %275 = vector.broadcast %273 : vector<1x32xf32> to vector<8x32xf32>
    %276 = arith.mulf %274, %275 : vector<8x32xf32>
    %277 = arith.addf %271, %276 : vector<8x32xf32>
    %278 = vector.extract_strided_slice %210 {offsets = [0, 11], sizes = [8, 1], strides = [1, 1]} : vector<8x32xf32> to vector<8x1xf32>
    %279 = vector.extract_strided_slice %212 {offsets = [11, 0], sizes = [1, 32], strides = [1, 1]} : vector<32x32xf32> to vector<1x32xf32>
    %280 = vector.broadcast %278 : vector<8x1xf32> to vector<8x32xf32>
    %281 = vector.broadcast %279 : vector<1x32xf32> to vector<8x32xf32>
    %282 = arith.mulf %280, %281 : vector<8x32xf32>
    %283 = arith.addf %277, %282 : vector<8x32xf32>
    %284 = vector.extract_strided_slice %210 {offsets = [0, 12], sizes = [8, 1], strides = [1, 1]} : vector<8x32xf32> to vector<8x1xf32>
    %285 = vector.extract_strided_slice %212 {offsets = [12, 0], sizes = [1, 32], strides = [1, 1]} : vector<32x32xf32> to vector<1x32xf32>
    %286 = vector.broadcast %284 : vector<8x1xf32> to vector<8x32xf32>
    %287 = vector.broadcast %285 : vector<1x32xf32> to vector<8x32xf32>
    %288 = arith.mulf %286, %287 : vector<8x32xf32>
    %289 = arith.addf %283, %288 : vector<8x32xf32>
    %290 = vector.extract_strided_slice %210 {offsets = [0, 13], sizes = [8, 1], strides = [1, 1]} : vector<8x32xf32> to vector<8x1xf32>
    %291 = vector.extract_strided_slice %212 {offsets = [13, 0], sizes = [1, 32], strides = [1, 1]} : vector<32x32xf32> to vector<1x32xf32>
    %292 = vector.broadcast %290 : vector<8x1xf32> to vector<8x32xf32>
    %293 = vector.broadcast %291 : vector<1x32xf32> to vector<8x32xf32>
    %294 = arith.mulf %292, %293 : vector<8x32xf32>
    %295 = arith.addf %289, %294 : vector<8x32xf32>
    %296 = vector.extract_strided_slice %210 {offsets = [0, 14], sizes = [8, 1], strides = [1, 1]} : vector<8x32xf32> to vector<8x1xf32>
    %297 = vector.extract_strided_slice %212 {offsets = [14, 0], sizes = [1, 32], strides = [1, 1]} : vector<32x32xf32> to vector<1x32xf32>
    %298 = vector.broadcast %296 : vector<8x1xf32> to vector<8x32xf32>
    %299 = vector.broadcast %297 : vector<1x32xf32> to vector<8x32xf32>
    %300 = arith.mulf %298, %299 : vector<8x32xf32>
    %301 = arith.addf %295, %300 : vector<8x32xf32>
    %302 = vector.extract_strided_slice %210 {offsets = [0, 15], sizes = [8, 1], strides = [1, 1]} : vector<8x32xf32> to vector<8x1xf32>
    %303 = vector.extract_strided_slice %212 {offsets = [15, 0], sizes = [1, 32], strides = [1, 1]} : vector<32x32xf32> to vector<1x32xf32>
    %304 = vector.broadcast %302 : vector<8x1xf32> to vector<8x32xf32>
    %305 = vector.broadcast %303 : vector<1x32xf32> to vector<8x32xf32>
    %306 = arith.mulf %304, %305 : vector<8x32xf32>
    %307 = arith.addf %301, %306 : vector<8x32xf32>
    %308 = vector.extract_strided_slice %210 {offsets = [0, 16], sizes = [8, 1], strides = [1, 1]} : vector<8x32xf32> to vector<8x1xf32>
    %309 = vector.extract_strided_slice %212 {offsets = [16, 0], sizes = [1, 32], strides = [1, 1]} : vector<32x32xf32> to vector<1x32xf32>
    %310 = vector.broadcast %308 : vector<8x1xf32> to vector<8x32xf32>
    %311 = vector.broadcast %309 : vector<1x32xf32> to vector<8x32xf32>
    %312 = arith.mulf %310, %311 : vector<8x32xf32>
    %313 = arith.addf %307, %312 : vector<8x32xf32>
    %314 = vector.extract_strided_slice %210 {offsets = [0, 17], sizes = [8, 1], strides = [1, 1]} : vector<8x32xf32> to vector<8x1xf32>
    %315 = vector.extract_strided_slice %212 {offsets = [17, 0], sizes = [1, 32], strides = [1, 1]} : vector<32x32xf32> to vector<1x32xf32>
    %316 = vector.broadcast %314 : vector<8x1xf32> to vector<8x32xf32>
    %317 = vector.broadcast %315 : vector<1x32xf32> to vector<8x32xf32>
    %318 = arith.mulf %316, %317 : vector<8x32xf32>
    %319 = arith.addf %313, %318 : vector<8x32xf32>
    %320 = vector.extract_strided_slice %210 {offsets = [0, 18], sizes = [8, 1], strides = [1, 1]} : vector<8x32xf32> to vector<8x1xf32>
    %321 = vector.extract_strided_slice %212 {offsets = [18, 0], sizes = [1, 32], strides = [1, 1]} : vector<32x32xf32> to vector<1x32xf32>
    %322 = vector.broadcast %320 : vector<8x1xf32> to vector<8x32xf32>
    %323 = vector.broadcast %321 : vector<1x32xf32> to vector<8x32xf32>
    %324 = arith.mulf %322, %323 : vector<8x32xf32>
    %325 = arith.addf %319, %324 : vector<8x32xf32>
    %326 = vector.extract_strided_slice %210 {offsets = [0, 19], sizes = [8, 1], strides = [1, 1]} : vector<8x32xf32> to vector<8x1xf32>
    %327 = vector.extract_strided_slice %212 {offsets = [19, 0], sizes = [1, 32], strides = [1, 1]} : vector<32x32xf32> to vector<1x32xf32>
    %328 = vector.broadcast %326 : vector<8x1xf32> to vector<8x32xf32>
    %329 = vector.broadcast %327 : vector<1x32xf32> to vector<8x32xf32>
    %330 = arith.mulf %328, %329 : vector<8x32xf32>
    %331 = arith.addf %325, %330 : vector<8x32xf32>
    %332 = vector.extract_strided_slice %210 {offsets = [0, 20], sizes = [8, 1], strides = [1, 1]} : vector<8x32xf32> to vector<8x1xf32>
    %333 = vector.extract_strided_slice %212 {offsets = [20, 0], sizes = [1, 32], strides = [1, 1]} : vector<32x32xf32> to vector<1x32xf32>
    %334 = vector.broadcast %332 : vector<8x1xf32> to vector<8x32xf32>
    %335 = vector.broadcast %333 : vector<1x32xf32> to vector<8x32xf32>
    %336 = arith.mulf %334, %335 : vector<8x32xf32>
    %337 = arith.addf %331, %336 : vector<8x32xf32>
    %338 = vector.extract_strided_slice %210 {offsets = [0, 21], sizes = [8, 1], strides = [1, 1]} : vector<8x32xf32> to vector<8x1xf32>
    %339 = vector.extract_strided_slice %212 {offsets = [21, 0], sizes = [1, 32], strides = [1, 1]} : vector<32x32xf32> to vector<1x32xf32>
    %340 = vector.broadcast %338 : vector<8x1xf32> to vector<8x32xf32>
    %341 = vector.broadcast %339 : vector<1x32xf32> to vector<8x32xf32>
    %342 = arith.mulf %340, %341 : vector<8x32xf32>
    %343 = arith.addf %337, %342 : vector<8x32xf32>
    %344 = vector.extract_strided_slice %210 {offsets = [0, 22], sizes = [8, 1], strides = [1, 1]} : vector<8x32xf32> to vector<8x1xf32>
    %345 = vector.extract_strided_slice %212 {offsets = [22, 0], sizes = [1, 32], strides = [1, 1]} : vector<32x32xf32> to vector<1x32xf32>
    %346 = vector.broadcast %344 : vector<8x1xf32> to vector<8x32xf32>
    %347 = vector.broadcast %345 : vector<1x32xf32> to vector<8x32xf32>
    %348 = arith.mulf %346, %347 : vector<8x32xf32>
    %349 = arith.addf %343, %348 : vector<8x32xf32>
    %350 = vector.extract_strided_slice %210 {offsets = [0, 23], sizes = [8, 1], strides = [1, 1]} : vector<8x32xf32> to vector<8x1xf32>
    %351 = vector.extract_strided_slice %212 {offsets = [23, 0], sizes = [1, 32], strides = [1, 1]} : vector<32x32xf32> to vector<1x32xf32>
    %352 = vector.broadcast %350 : vector<8x1xf32> to vector<8x32xf32>
    %353 = vector.broadcast %351 : vector<1x32xf32> to vector<8x32xf32>
    %354 = arith.mulf %352, %353 : vector<8x32xf32>
    %355 = arith.addf %349, %354 : vector<8x32xf32>
    %356 = vector.extract_strided_slice %210 {offsets = [0, 24], sizes = [8, 1], strides = [1, 1]} : vector<8x32xf32> to vector<8x1xf32>
    %357 = vector.extract_strided_slice %212 {offsets = [24, 0], sizes = [1, 32], strides = [1, 1]} : vector<32x32xf32> to vector<1x32xf32>
    %358 = vector.broadcast %356 : vector<8x1xf32> to vector<8x32xf32>
    %359 = vector.broadcast %357 : vector<1x32xf32> to vector<8x32xf32>
    %360 = arith.mulf %358, %359 : vector<8x32xf32>
    %361 = arith.addf %355, %360 : vector<8x32xf32>
    %362 = vector.extract_strided_slice %210 {offsets = [0, 25], sizes = [8, 1], strides = [1, 1]} : vector<8x32xf32> to vector<8x1xf32>
    %363 = vector.extract_strided_slice %212 {offsets = [25, 0], sizes = [1, 32], strides = [1, 1]} : vector<32x32xf32> to vector<1x32xf32>
    %364 = vector.broadcast %362 : vector<8x1xf32> to vector<8x32xf32>
    %365 = vector.broadcast %363 : vector<1x32xf32> to vector<8x32xf32>
    %366 = arith.mulf %364, %365 : vector<8x32xf32>
    %367 = arith.addf %361, %366 : vector<8x32xf32>
    %368 = vector.extract_strided_slice %210 {offsets = [0, 26], sizes = [8, 1], strides = [1, 1]} : vector<8x32xf32> to vector<8x1xf32>
    %369 = vector.extract_strided_slice %212 {offsets = [26, 0], sizes = [1, 32], strides = [1, 1]} : vector<32x32xf32> to vector<1x32xf32>
    %370 = vector.broadcast %368 : vector<8x1xf32> to vector<8x32xf32>
    %371 = vector.broadcast %369 : vector<1x32xf32> to vector<8x32xf32>
    %372 = arith.mulf %370, %371 : vector<8x32xf32>
    %373 = arith.addf %367, %372 : vector<8x32xf32>
    %374 = vector.extract_strided_slice %210 {offsets = [0, 27], sizes = [8, 1], strides = [1, 1]} : vector<8x32xf32> to vector<8x1xf32>
    %375 = vector.extract_strided_slice %212 {offsets = [27, 0], sizes = [1, 32], strides = [1, 1]} : vector<32x32xf32> to vector<1x32xf32>
    %376 = vector.broadcast %374 : vector<8x1xf32> to vector<8x32xf32>
    %377 = vector.broadcast %375 : vector<1x32xf32> to vector<8x32xf32>
    %378 = arith.mulf %376, %377 : vector<8x32xf32>
    %379 = arith.addf %373, %378 : vector<8x32xf32>
    %380 = vector.extract_strided_slice %210 {offsets = [0, 28], sizes = [8, 1], strides = [1, 1]} : vector<8x32xf32> to vector<8x1xf32>
    %381 = vector.extract_strided_slice %212 {offsets = [28, 0], sizes = [1, 32], strides = [1, 1]} : vector<32x32xf32> to vector<1x32xf32>
    %382 = vector.broadcast %380 : vector<8x1xf32> to vector<8x32xf32>
    %383 = vector.broadcast %381 : vector<1x32xf32> to vector<8x32xf32>
    %384 = arith.mulf %382, %383 : vector<8x32xf32>
    %385 = arith.addf %379, %384 : vector<8x32xf32>
    %386 = vector.extract_strided_slice %210 {offsets = [0, 29], sizes = [8, 1], strides = [1, 1]} : vector<8x32xf32> to vector<8x1xf32>
    %387 = vector.extract_strided_slice %212 {offsets = [29, 0], sizes = [1, 32], strides = [1, 1]} : vector<32x32xf32> to vector<1x32xf32>
    %388 = vector.broadcast %386 : vector<8x1xf32> to vector<8x32xf32>
    %389 = vector.broadcast %387 : vector<1x32xf32> to vector<8x32xf32>
    %390 = arith.mulf %388, %389 : vector<8x32xf32>
    %391 = arith.addf %385, %390 : vector<8x32xf32>
    %392 = vector.extract_strided_slice %210 {offsets = [0, 30], sizes = [8, 1], strides = [1, 1]} : vector<8x32xf32> to vector<8x1xf32>
    %393 = vector.extract_strided_slice %212 {offsets = [30, 0], sizes = [1, 32], strides = [1, 1]} : vector<32x32xf32> to vector<1x32xf32>
    %394 = vector.broadcast %392 : vector<8x1xf32> to vector<8x32xf32>
    %395 = vector.broadcast %393 : vector<1x32xf32> to vector<8x32xf32>
    %396 = arith.mulf %394, %395 : vector<8x32xf32>
    %397 = arith.addf %391, %396 : vector<8x32xf32>
    %398 = vector.extract_strided_slice %210 {offsets = [0, 31], sizes = [8, 1], strides = [1, 1]} : vector<8x32xf32> to vector<8x1xf32>
    %399 = vector.extract_strided_slice %212 {offsets = [31, 0], sizes = [1, 32], strides = [1, 1]} : vector<32x32xf32> to vector<1x32xf32>
    %400 = vector.broadcast %398 : vector<8x1xf32> to vector<8x32xf32>
    %401 = vector.broadcast %399 : vector<1x32xf32> to vector<8x32xf32>
    %402 = arith.mulf %400, %401 : vector<8x32xf32>
    %403 = arith.addf %397, %402 : vector<8x32xf32>
    %c1_12 = arith.constant 1 : index
    %c0_13 = arith.constant 0 : index
    %c0_14 = arith.constant 0 : index
    %404 = vector.load %arg3[%c1_12, %c0_13, %c0_14] : memref<4x1x32xf32, #tpu.memory_space<vmem>>, vector<1x1x32xf32>
    %405 = vector.shape_cast %404 : vector<1x1x32xf32> to vector<1x32xf32>
    %406 = vector.broadcast %405 : vector<1x32xf32> to vector<8x32xf32>
    %407 = arith.addf %403, %406 : vector<8x32xf32>
    %cst_15 = arith.constant 2.000000e-01 : f32
    %408 = vector.broadcast %cst_15 : f32 to vector<8x32xf32>
    %409 = arith.mulf %408, %407 : vector<8x32xf32>
    %410 = arith.maximumf %407, %409 : vector<8x32xf32>
    %c2 = arith.constant 2 : index
    %c0_16 = arith.constant 0 : index
    %c0_17 = arith.constant 0 : index
    %411 = vector.load %arg2[%c2, %c0_16, %c0_17] : memref<4x32x32xf32, #tpu.memory_space<vmem>>, vector<1x32x32xf32>
    %412 = vector.shape_cast %411 : vector<1x32x32xf32> to vector<32x32xf32>
    %413 = vector.extract_strided_slice %410 {offsets = [0, 0], sizes = [8, 1], strides = [1, 1]} : vector<8x32xf32> to vector<8x1xf32>
    %414 = vector.extract_strided_slice %412 {offsets = [0, 0], sizes = [1, 32], strides = [1, 1]} : vector<32x32xf32> to vector<1x32xf32>
    %415 = vector.broadcast %413 : vector<8x1xf32> to vector<8x32xf32>
    %416 = vector.broadcast %414 : vector<1x32xf32> to vector<8x32xf32>
    %417 = arith.mulf %415, %416 : vector<8x32xf32>
    %418 = vector.extract_strided_slice %410 {offsets = [0, 1], sizes = [8, 1], strides = [1, 1]} : vector<8x32xf32> to vector<8x1xf32>
    %419 = vector.extract_strided_slice %412 {offsets = [1, 0], sizes = [1, 32], strides = [1, 1]} : vector<32x32xf32> to vector<1x32xf32>
    %420 = vector.broadcast %418 : vector<8x1xf32> to vector<8x32xf32>
    %421 = vector.broadcast %419 : vector<1x32xf32> to vector<8x32xf32>
    %422 = arith.mulf %420, %421 : vector<8x32xf32>
    %423 = arith.addf %417, %422 : vector<8x32xf32>
    %424 = vector.extract_strided_slice %410 {offsets = [0, 2], sizes = [8, 1], strides = [1, 1]} : vector<8x32xf32> to vector<8x1xf32>
    %425 = vector.extract_strided_slice %412 {offsets = [2, 0], sizes = [1, 32], strides = [1, 1]} : vector<32x32xf32> to vector<1x32xf32>
    %426 = vector.broadcast %424 : vector<8x1xf32> to vector<8x32xf32>
    %427 = vector.broadcast %425 : vector<1x32xf32> to vector<8x32xf32>
    %428 = arith.mulf %426, %427 : vector<8x32xf32>
    %429 = arith.addf %423, %428 : vector<8x32xf32>
    %430 = vector.extract_strided_slice %410 {offsets = [0, 3], sizes = [8, 1], strides = [1, 1]} : vector<8x32xf32> to vector<8x1xf32>
    %431 = vector.extract_strided_slice %412 {offsets = [3, 0], sizes = [1, 32], strides = [1, 1]} : vector<32x32xf32> to vector<1x32xf32>
    %432 = vector.broadcast %430 : vector<8x1xf32> to vector<8x32xf32>
    %433 = vector.broadcast %431 : vector<1x32xf32> to vector<8x32xf32>
    %434 = arith.mulf %432, %433 : vector<8x32xf32>
    %435 = arith.addf %429, %434 : vector<8x32xf32>
    %436 = vector.extract_strided_slice %410 {offsets = [0, 4], sizes = [8, 1], strides = [1, 1]} : vector<8x32xf32> to vector<8x1xf32>
    %437 = vector.extract_strided_slice %412 {offsets = [4, 0], sizes = [1, 32], strides = [1, 1]} : vector<32x32xf32> to vector<1x32xf32>
    %438 = vector.broadcast %436 : vector<8x1xf32> to vector<8x32xf32>
    %439 = vector.broadcast %437 : vector<1x32xf32> to vector<8x32xf32>
    %440 = arith.mulf %438, %439 : vector<8x32xf32>
    %441 = arith.addf %435, %440 : vector<8x32xf32>
    %442 = vector.extract_strided_slice %410 {offsets = [0, 5], sizes = [8, 1], strides = [1, 1]} : vector<8x32xf32> to vector<8x1xf32>
    %443 = vector.extract_strided_slice %412 {offsets = [5, 0], sizes = [1, 32], strides = [1, 1]} : vector<32x32xf32> to vector<1x32xf32>
    %444 = vector.broadcast %442 : vector<8x1xf32> to vector<8x32xf32>
    %445 = vector.broadcast %443 : vector<1x32xf32> to vector<8x32xf32>
    %446 = arith.mulf %444, %445 : vector<8x32xf32>
    %447 = arith.addf %441, %446 : vector<8x32xf32>
    %448 = vector.extract_strided_slice %410 {offsets = [0, 6], sizes = [8, 1], strides = [1, 1]} : vector<8x32xf32> to vector<8x1xf32>
    %449 = vector.extract_strided_slice %412 {offsets = [6, 0], sizes = [1, 32], strides = [1, 1]} : vector<32x32xf32> to vector<1x32xf32>
    %450 = vector.broadcast %448 : vector<8x1xf32> to vector<8x32xf32>
    %451 = vector.broadcast %449 : vector<1x32xf32> to vector<8x32xf32>
    %452 = arith.mulf %450, %451 : vector<8x32xf32>
    %453 = arith.addf %447, %452 : vector<8x32xf32>
    %454 = vector.extract_strided_slice %410 {offsets = [0, 7], sizes = [8, 1], strides = [1, 1]} : vector<8x32xf32> to vector<8x1xf32>
    %455 = vector.extract_strided_slice %412 {offsets = [7, 0], sizes = [1, 32], strides = [1, 1]} : vector<32x32xf32> to vector<1x32xf32>
    %456 = vector.broadcast %454 : vector<8x1xf32> to vector<8x32xf32>
    %457 = vector.broadcast %455 : vector<1x32xf32> to vector<8x32xf32>
    %458 = arith.mulf %456, %457 : vector<8x32xf32>
    %459 = arith.addf %453, %458 : vector<8x32xf32>
    %460 = vector.extract_strided_slice %410 {offsets = [0, 8], sizes = [8, 1], strides = [1, 1]} : vector<8x32xf32> to vector<8x1xf32>
    %461 = vector.extract_strided_slice %412 {offsets = [8, 0], sizes = [1, 32], strides = [1, 1]} : vector<32x32xf32> to vector<1x32xf32>
    %462 = vector.broadcast %460 : vector<8x1xf32> to vector<8x32xf32>
    %463 = vector.broadcast %461 : vector<1x32xf32> to vector<8x32xf32>
    %464 = arith.mulf %462, %463 : vector<8x32xf32>
    %465 = arith.addf %459, %464 : vector<8x32xf32>
    %466 = vector.extract_strided_slice %410 {offsets = [0, 9], sizes = [8, 1], strides = [1, 1]} : vector<8x32xf32> to vector<8x1xf32>
    %467 = vector.extract_strided_slice %412 {offsets = [9, 0], sizes = [1, 32], strides = [1, 1]} : vector<32x32xf32> to vector<1x32xf32>
    %468 = vector.broadcast %466 : vector<8x1xf32> to vector<8x32xf32>
    %469 = vector.broadcast %467 : vector<1x32xf32> to vector<8x32xf32>
    %470 = arith.mulf %468, %469 : vector<8x32xf32>
    %471 = arith.addf %465, %470 : vector<8x32xf32>
    %472 = vector.extract_strided_slice %410 {offsets = [0, 10], sizes = [8, 1], strides = [1, 1]} : vector<8x32xf32> to vector<8x1xf32>
    %473 = vector.extract_strided_slice %412 {offsets = [10, 0], sizes = [1, 32], strides = [1, 1]} : vector<32x32xf32> to vector<1x32xf32>
    %474 = vector.broadcast %472 : vector<8x1xf32> to vector<8x32xf32>
    %475 = vector.broadcast %473 : vector<1x32xf32> to vector<8x32xf32>
    %476 = arith.mulf %474, %475 : vector<8x32xf32>
    %477 = arith.addf %471, %476 : vector<8x32xf32>
    %478 = vector.extract_strided_slice %410 {offsets = [0, 11], sizes = [8, 1], strides = [1, 1]} : vector<8x32xf32> to vector<8x1xf32>
    %479 = vector.extract_strided_slice %412 {offsets = [11, 0], sizes = [1, 32], strides = [1, 1]} : vector<32x32xf32> to vector<1x32xf32>
    %480 = vector.broadcast %478 : vector<8x1xf32> to vector<8x32xf32>
    %481 = vector.broadcast %479 : vector<1x32xf32> to vector<8x32xf32>
    %482 = arith.mulf %480, %481 : vector<8x32xf32>
    %483 = arith.addf %477, %482 : vector<8x32xf32>
    %484 = vector.extract_strided_slice %410 {offsets = [0, 12], sizes = [8, 1], strides = [1, 1]} : vector<8x32xf32> to vector<8x1xf32>
    %485 = vector.extract_strided_slice %412 {offsets = [12, 0], sizes = [1, 32], strides = [1, 1]} : vector<32x32xf32> to vector<1x32xf32>
    %486 = vector.broadcast %484 : vector<8x1xf32> to vector<8x32xf32>
    %487 = vector.broadcast %485 : vector<1x32xf32> to vector<8x32xf32>
    %488 = arith.mulf %486, %487 : vector<8x32xf32>
    %489 = arith.addf %483, %488 : vector<8x32xf32>
    %490 = vector.extract_strided_slice %410 {offsets = [0, 13], sizes = [8, 1], strides = [1, 1]} : vector<8x32xf32> to vector<8x1xf32>
    %491 = vector.extract_strided_slice %412 {offsets = [13, 0], sizes = [1, 32], strides = [1, 1]} : vector<32x32xf32> to vector<1x32xf32>
    %492 = vector.broadcast %490 : vector<8x1xf32> to vector<8x32xf32>
    %493 = vector.broadcast %491 : vector<1x32xf32> to vector<8x32xf32>
    %494 = arith.mulf %492, %493 : vector<8x32xf32>
    %495 = arith.addf %489, %494 : vector<8x32xf32>
    %496 = vector.extract_strided_slice %410 {offsets = [0, 14], sizes = [8, 1], strides = [1, 1]} : vector<8x32xf32> to vector<8x1xf32>
    %497 = vector.extract_strided_slice %412 {offsets = [14, 0], sizes = [1, 32], strides = [1, 1]} : vector<32x32xf32> to vector<1x32xf32>
    %498 = vector.broadcast %496 : vector<8x1xf32> to vector<8x32xf32>
    %499 = vector.broadcast %497 : vector<1x32xf32> to vector<8x32xf32>
    %500 = arith.mulf %498, %499 : vector<8x32xf32>
    %501 = arith.addf %495, %500 : vector<8x32xf32>
    %502 = vector.extract_strided_slice %410 {offsets = [0, 15], sizes = [8, 1], strides = [1, 1]} : vector<8x32xf32> to vector<8x1xf32>
    %503 = vector.extract_strided_slice %412 {offsets = [15, 0], sizes = [1, 32], strides = [1, 1]} : vector<32x32xf32> to vector<1x32xf32>
    %504 = vector.broadcast %502 : vector<8x1xf32> to vector<8x32xf32>
    %505 = vector.broadcast %503 : vector<1x32xf32> to vector<8x32xf32>
    %506 = arith.mulf %504, %505 : vector<8x32xf32>
    %507 = arith.addf %501, %506 : vector<8x32xf32>
    %508 = vector.extract_strided_slice %410 {offsets = [0, 16], sizes = [8, 1], strides = [1, 1]} : vector<8x32xf32> to vector<8x1xf32>
    %509 = vector.extract_strided_slice %412 {offsets = [16, 0], sizes = [1, 32], strides = [1, 1]} : vector<32x32xf32> to vector<1x32xf32>
    %510 = vector.broadcast %508 : vector<8x1xf32> to vector<8x32xf32>
    %511 = vector.broadcast %509 : vector<1x32xf32> to vector<8x32xf32>
    %512 = arith.mulf %510, %511 : vector<8x32xf32>
    %513 = arith.addf %507, %512 : vector<8x32xf32>
    %514 = vector.extract_strided_slice %410 {offsets = [0, 17], sizes = [8, 1], strides = [1, 1]} : vector<8x32xf32> to vector<8x1xf32>
    %515 = vector.extract_strided_slice %412 {offsets = [17, 0], sizes = [1, 32], strides = [1, 1]} : vector<32x32xf32> to vector<1x32xf32>
    %516 = vector.broadcast %514 : vector<8x1xf32> to vector<8x32xf32>
    %517 = vector.broadcast %515 : vector<1x32xf32> to vector<8x32xf32>
    %518 = arith.mulf %516, %517 : vector<8x32xf32>
    %519 = arith.addf %513, %518 : vector<8x32xf32>
    %520 = vector.extract_strided_slice %410 {offsets = [0, 18], sizes = [8, 1], strides = [1, 1]} : vector<8x32xf32> to vector<8x1xf32>
    %521 = vector.extract_strided_slice %412 {offsets = [18, 0], sizes = [1, 32], strides = [1, 1]} : vector<32x32xf32> to vector<1x32xf32>
    %522 = vector.broadcast %520 : vector<8x1xf32> to vector<8x32xf32>
    %523 = vector.broadcast %521 : vector<1x32xf32> to vector<8x32xf32>
    %524 = arith.mulf %522, %523 : vector<8x32xf32>
    %525 = arith.addf %519, %524 : vector<8x32xf32>
    %526 = vector.extract_strided_slice %410 {offsets = [0, 19], sizes = [8, 1], strides = [1, 1]} : vector<8x32xf32> to vector<8x1xf32>
    %527 = vector.extract_strided_slice %412 {offsets = [19, 0], sizes = [1, 32], strides = [1, 1]} : vector<32x32xf32> to vector<1x32xf32>
    %528 = vector.broadcast %526 : vector<8x1xf32> to vector<8x32xf32>
    %529 = vector.broadcast %527 : vector<1x32xf32> to vector<8x32xf32>
    %530 = arith.mulf %528, %529 : vector<8x32xf32>
    %531 = arith.addf %525, %530 : vector<8x32xf32>
    %532 = vector.extract_strided_slice %410 {offsets = [0, 20], sizes = [8, 1], strides = [1, 1]} : vector<8x32xf32> to vector<8x1xf32>
    %533 = vector.extract_strided_slice %412 {offsets = [20, 0], sizes = [1, 32], strides = [1, 1]} : vector<32x32xf32> to vector<1x32xf32>
    %534 = vector.broadcast %532 : vector<8x1xf32> to vector<8x32xf32>
    %535 = vector.broadcast %533 : vector<1x32xf32> to vector<8x32xf32>
    %536 = arith.mulf %534, %535 : vector<8x32xf32>
    %537 = arith.addf %531, %536 : vector<8x32xf32>
    %538 = vector.extract_strided_slice %410 {offsets = [0, 21], sizes = [8, 1], strides = [1, 1]} : vector<8x32xf32> to vector<8x1xf32>
    %539 = vector.extract_strided_slice %412 {offsets = [21, 0], sizes = [1, 32], strides = [1, 1]} : vector<32x32xf32> to vector<1x32xf32>
    %540 = vector.broadcast %538 : vector<8x1xf32> to vector<8x32xf32>
    %541 = vector.broadcast %539 : vector<1x32xf32> to vector<8x32xf32>
    %542 = arith.mulf %540, %541 : vector<8x32xf32>
    %543 = arith.addf %537, %542 : vector<8x32xf32>
    %544 = vector.extract_strided_slice %410 {offsets = [0, 22], sizes = [8, 1], strides = [1, 1]} : vector<8x32xf32> to vector<8x1xf32>
    %545 = vector.extract_strided_slice %412 {offsets = [22, 0], sizes = [1, 32], strides = [1, 1]} : vector<32x32xf32> to vector<1x32xf32>
    %546 = vector.broadcast %544 : vector<8x1xf32> to vector<8x32xf32>
    %547 = vector.broadcast %545 : vector<1x32xf32> to vector<8x32xf32>
    %548 = arith.mulf %546, %547 : vector<8x32xf32>
    %549 = arith.addf %543, %548 : vector<8x32xf32>
    %550 = vector.extract_strided_slice %410 {offsets = [0, 23], sizes = [8, 1], strides = [1, 1]} : vector<8x32xf32> to vector<8x1xf32>
    %551 = vector.extract_strided_slice %412 {offsets = [23, 0], sizes = [1, 32], strides = [1, 1]} : vector<32x32xf32> to vector<1x32xf32>
    %552 = vector.broadcast %550 : vector<8x1xf32> to vector<8x32xf32>
    %553 = vector.broadcast %551 : vector<1x32xf32> to vector<8x32xf32>
    %554 = arith.mulf %552, %553 : vector<8x32xf32>
    %555 = arith.addf %549, %554 : vector<8x32xf32>
    %556 = vector.extract_strided_slice %410 {offsets = [0, 24], sizes = [8, 1], strides = [1, 1]} : vector<8x32xf32> to vector<8x1xf32>
    %557 = vector.extract_strided_slice %412 {offsets = [24, 0], sizes = [1, 32], strides = [1, 1]} : vector<32x32xf32> to vector<1x32xf32>
    %558 = vector.broadcast %556 : vector<8x1xf32> to vector<8x32xf32>
    %559 = vector.broadcast %557 : vector<1x32xf32> to vector<8x32xf32>
    %560 = arith.mulf %558, %559 : vector<8x32xf32>
    %561 = arith.addf %555, %560 : vector<8x32xf32>
    %562 = vector.extract_strided_slice %410 {offsets = [0, 25], sizes = [8, 1], strides = [1, 1]} : vector<8x32xf32> to vector<8x1xf32>
    %563 = vector.extract_strided_slice %412 {offsets = [25, 0], sizes = [1, 32], strides = [1, 1]} : vector<32x32xf32> to vector<1x32xf32>
    %564 = vector.broadcast %562 : vector<8x1xf32> to vector<8x32xf32>
    %565 = vector.broadcast %563 : vector<1x32xf32> to vector<8x32xf32>
    %566 = arith.mulf %564, %565 : vector<8x32xf32>
    %567 = arith.addf %561, %566 : vector<8x32xf32>
    %568 = vector.extract_strided_slice %410 {offsets = [0, 26], sizes = [8, 1], strides = [1, 1]} : vector<8x32xf32> to vector<8x1xf32>
    %569 = vector.extract_strided_slice %412 {offsets = [26, 0], sizes = [1, 32], strides = [1, 1]} : vector<32x32xf32> to vector<1x32xf32>
    %570 = vector.broadcast %568 : vector<8x1xf32> to vector<8x32xf32>
    %571 = vector.broadcast %569 : vector<1x32xf32> to vector<8x32xf32>
    %572 = arith.mulf %570, %571 : vector<8x32xf32>
    %573 = arith.addf %567, %572 : vector<8x32xf32>
    %574 = vector.extract_strided_slice %410 {offsets = [0, 27], sizes = [8, 1], strides = [1, 1]} : vector<8x32xf32> to vector<8x1xf32>
    %575 = vector.extract_strided_slice %412 {offsets = [27, 0], sizes = [1, 32], strides = [1, 1]} : vector<32x32xf32> to vector<1x32xf32>
    %576 = vector.broadcast %574 : vector<8x1xf32> to vector<8x32xf32>
    %577 = vector.broadcast %575 : vector<1x32xf32> to vector<8x32xf32>
    %578 = arith.mulf %576, %577 : vector<8x32xf32>
    %579 = arith.addf %573, %578 : vector<8x32xf32>
    %580 = vector.extract_strided_slice %410 {offsets = [0, 28], sizes = [8, 1], strides = [1, 1]} : vector<8x32xf32> to vector<8x1xf32>
    %581 = vector.extract_strided_slice %412 {offsets = [28, 0], sizes = [1, 32], strides = [1, 1]} : vector<32x32xf32> to vector<1x32xf32>
    %582 = vector.broadcast %580 : vector<8x1xf32> to vector<8x32xf32>
    %583 = vector.broadcast %581 : vector<1x32xf32> to vector<8x32xf32>
    %584 = arith.mulf %582, %583 : vector<8x32xf32>
    %585 = arith.addf %579, %584 : vector<8x32xf32>
    %586 = vector.extract_strided_slice %410 {offsets = [0, 29], sizes = [8, 1], strides = [1, 1]} : vector<8x32xf32> to vector<8x1xf32>
    %587 = vector.extract_strided_slice %412 {offsets = [29, 0], sizes = [1, 32], strides = [1, 1]} : vector<32x32xf32> to vector<1x32xf32>
    %588 = vector.broadcast %586 : vector<8x1xf32> to vector<8x32xf32>
    %589 = vector.broadcast %587 : vector<1x32xf32> to vector<8x32xf32>
    %590 = arith.mulf %588, %589 : vector<8x32xf32>
    %591 = arith.addf %585, %590 : vector<8x32xf32>
    %592 = vector.extract_strided_slice %410 {offsets = [0, 30], sizes = [8, 1], strides = [1, 1]} : vector<8x32xf32> to vector<8x1xf32>
    %593 = vector.extract_strided_slice %412 {offsets = [30, 0], sizes = [1, 32], strides = [1, 1]} : vector<32x32xf32> to vector<1x32xf32>
    %594 = vector.broadcast %592 : vector<8x1xf32> to vector<8x32xf32>
    %595 = vector.broadcast %593 : vector<1x32xf32> to vector<8x32xf32>
    %596 = arith.mulf %594, %595 : vector<8x32xf32>
    %597 = arith.addf %591, %596 : vector<8x32xf32>
    %598 = vector.extract_strided_slice %410 {offsets = [0, 31], sizes = [8, 1], strides = [1, 1]} : vector<8x32xf32> to vector<8x1xf32>
    %599 = vector.extract_strided_slice %412 {offsets = [31, 0], sizes = [1, 32], strides = [1, 1]} : vector<32x32xf32> to vector<1x32xf32>
    %600 = vector.broadcast %598 : vector<8x1xf32> to vector<8x32xf32>
    %601 = vector.broadcast %599 : vector<1x32xf32> to vector<8x32xf32>
    %602 = arith.mulf %600, %601 : vector<8x32xf32>
    %603 = arith.addf %597, %602 : vector<8x32xf32>
    %c2_18 = arith.constant 2 : index
    %c0_19 = arith.constant 0 : index
    %c0_20 = arith.constant 0 : index
    %604 = vector.load %arg3[%c2_18, %c0_19, %c0_20] : memref<4x1x32xf32, #tpu.memory_space<vmem>>, vector<1x1x32xf32>
    %605 = vector.shape_cast %604 : vector<1x1x32xf32> to vector<1x32xf32>
    %606 = vector.broadcast %605 : vector<1x32xf32> to vector<8x32xf32>
    %607 = arith.addf %603, %606 : vector<8x32xf32>
    %cst_21 = arith.constant 2.000000e-01 : f32
    %608 = vector.broadcast %cst_21 : f32 to vector<8x32xf32>
    %609 = arith.mulf %608, %607 : vector<8x32xf32>
    %610 = arith.maximumf %607, %609 : vector<8x32xf32>
    %c3 = arith.constant 3 : index
    %c0_22 = arith.constant 0 : index
    %c0_23 = arith.constant 0 : index
    %611 = vector.load %arg2[%c3, %c0_22, %c0_23] : memref<4x32x32xf32, #tpu.memory_space<vmem>>, vector<1x32x32xf32>
    %612 = vector.shape_cast %611 : vector<1x32x32xf32> to vector<32x32xf32>
    %613 = vector.extract_strided_slice %610 {offsets = [0, 0], sizes = [8, 1], strides = [1, 1]} : vector<8x32xf32> to vector<8x1xf32>
    %614 = vector.extract_strided_slice %612 {offsets = [0, 0], sizes = [1, 32], strides = [1, 1]} : vector<32x32xf32> to vector<1x32xf32>
    %615 = vector.broadcast %613 : vector<8x1xf32> to vector<8x32xf32>
    %616 = vector.broadcast %614 : vector<1x32xf32> to vector<8x32xf32>
    %617 = arith.mulf %615, %616 : vector<8x32xf32>
    %618 = vector.extract_strided_slice %610 {offsets = [0, 1], sizes = [8, 1], strides = [1, 1]} : vector<8x32xf32> to vector<8x1xf32>
    %619 = vector.extract_strided_slice %612 {offsets = [1, 0], sizes = [1, 32], strides = [1, 1]} : vector<32x32xf32> to vector<1x32xf32>
    %620 = vector.broadcast %618 : vector<8x1xf32> to vector<8x32xf32>
    %621 = vector.broadcast %619 : vector<1x32xf32> to vector<8x32xf32>
    %622 = arith.mulf %620, %621 : vector<8x32xf32>
    %623 = arith.addf %617, %622 : vector<8x32xf32>
    %624 = vector.extract_strided_slice %610 {offsets = [0, 2], sizes = [8, 1], strides = [1, 1]} : vector<8x32xf32> to vector<8x1xf32>
    %625 = vector.extract_strided_slice %612 {offsets = [2, 0], sizes = [1, 32], strides = [1, 1]} : vector<32x32xf32> to vector<1x32xf32>
    %626 = vector.broadcast %624 : vector<8x1xf32> to vector<8x32xf32>
    %627 = vector.broadcast %625 : vector<1x32xf32> to vector<8x32xf32>
    %628 = arith.mulf %626, %627 : vector<8x32xf32>
    %629 = arith.addf %623, %628 : vector<8x32xf32>
    %630 = vector.extract_strided_slice %610 {offsets = [0, 3], sizes = [8, 1], strides = [1, 1]} : vector<8x32xf32> to vector<8x1xf32>
    %631 = vector.extract_strided_slice %612 {offsets = [3, 0], sizes = [1, 32], strides = [1, 1]} : vector<32x32xf32> to vector<1x32xf32>
    %632 = vector.broadcast %630 : vector<8x1xf32> to vector<8x32xf32>
    %633 = vector.broadcast %631 : vector<1x32xf32> to vector<8x32xf32>
    %634 = arith.mulf %632, %633 : vector<8x32xf32>
    %635 = arith.addf %629, %634 : vector<8x32xf32>
    %636 = vector.extract_strided_slice %610 {offsets = [0, 4], sizes = [8, 1], strides = [1, 1]} : vector<8x32xf32> to vector<8x1xf32>
    %637 = vector.extract_strided_slice %612 {offsets = [4, 0], sizes = [1, 32], strides = [1, 1]} : vector<32x32xf32> to vector<1x32xf32>
    %638 = vector.broadcast %636 : vector<8x1xf32> to vector<8x32xf32>
    %639 = vector.broadcast %637 : vector<1x32xf32> to vector<8x32xf32>
    %640 = arith.mulf %638, %639 : vector<8x32xf32>
    %641 = arith.addf %635, %640 : vector<8x32xf32>
    %642 = vector.extract_strided_slice %610 {offsets = [0, 5], sizes = [8, 1], strides = [1, 1]} : vector<8x32xf32> to vector<8x1xf32>
    %643 = vector.extract_strided_slice %612 {offsets = [5, 0], sizes = [1, 32], strides = [1, 1]} : vector<32x32xf32> to vector<1x32xf32>
    %644 = vector.broadcast %642 : vector<8x1xf32> to vector<8x32xf32>
    %645 = vector.broadcast %643 : vector<1x32xf32> to vector<8x32xf32>
    %646 = arith.mulf %644, %645 : vector<8x32xf32>
    %647 = arith.addf %641, %646 : vector<8x32xf32>
    %648 = vector.extract_strided_slice %610 {offsets = [0, 6], sizes = [8, 1], strides = [1, 1]} : vector<8x32xf32> to vector<8x1xf32>
    %649 = vector.extract_strided_slice %612 {offsets = [6, 0], sizes = [1, 32], strides = [1, 1]} : vector<32x32xf32> to vector<1x32xf32>
    %650 = vector.broadcast %648 : vector<8x1xf32> to vector<8x32xf32>
    %651 = vector.broadcast %649 : vector<1x32xf32> to vector<8x32xf32>
    %652 = arith.mulf %650, %651 : vector<8x32xf32>
    %653 = arith.addf %647, %652 : vector<8x32xf32>
    %654 = vector.extract_strided_slice %610 {offsets = [0, 7], sizes = [8, 1], strides = [1, 1]} : vector<8x32xf32> to vector<8x1xf32>
    %655 = vector.extract_strided_slice %612 {offsets = [7, 0], sizes = [1, 32], strides = [1, 1]} : vector<32x32xf32> to vector<1x32xf32>
    %656 = vector.broadcast %654 : vector<8x1xf32> to vector<8x32xf32>
    %657 = vector.broadcast %655 : vector<1x32xf32> to vector<8x32xf32>
    %658 = arith.mulf %656, %657 : vector<8x32xf32>
    %659 = arith.addf %653, %658 : vector<8x32xf32>
    %660 = vector.extract_strided_slice %610 {offsets = [0, 8], sizes = [8, 1], strides = [1, 1]} : vector<8x32xf32> to vector<8x1xf32>
    %661 = vector.extract_strided_slice %612 {offsets = [8, 0], sizes = [1, 32], strides = [1, 1]} : vector<32x32xf32> to vector<1x32xf32>
    %662 = vector.broadcast %660 : vector<8x1xf32> to vector<8x32xf32>
    %663 = vector.broadcast %661 : vector<1x32xf32> to vector<8x32xf32>
    %664 = arith.mulf %662, %663 : vector<8x32xf32>
    %665 = arith.addf %659, %664 : vector<8x32xf32>
    %666 = vector.extract_strided_slice %610 {offsets = [0, 9], sizes = [8, 1], strides = [1, 1]} : vector<8x32xf32> to vector<8x1xf32>
    %667 = vector.extract_strided_slice %612 {offsets = [9, 0], sizes = [1, 32], strides = [1, 1]} : vector<32x32xf32> to vector<1x32xf32>
    %668 = vector.broadcast %666 : vector<8x1xf32> to vector<8x32xf32>
    %669 = vector.broadcast %667 : vector<1x32xf32> to vector<8x32xf32>
    %670 = arith.mulf %668, %669 : vector<8x32xf32>
    %671 = arith.addf %665, %670 : vector<8x32xf32>
    %672 = vector.extract_strided_slice %610 {offsets = [0, 10], sizes = [8, 1], strides = [1, 1]} : vector<8x32xf32> to vector<8x1xf32>
    %673 = vector.extract_strided_slice %612 {offsets = [10, 0], sizes = [1, 32], strides = [1, 1]} : vector<32x32xf32> to vector<1x32xf32>
    %674 = vector.broadcast %672 : vector<8x1xf32> to vector<8x32xf32>
    %675 = vector.broadcast %673 : vector<1x32xf32> to vector<8x32xf32>
    %676 = arith.mulf %674, %675 : vector<8x32xf32>
    %677 = arith.addf %671, %676 : vector<8x32xf32>
    %678 = vector.extract_strided_slice %610 {offsets = [0, 11], sizes = [8, 1], strides = [1, 1]} : vector<8x32xf32> to vector<8x1xf32>
    %679 = vector.extract_strided_slice %612 {offsets = [11, 0], sizes = [1, 32], strides = [1, 1]} : vector<32x32xf32> to vector<1x32xf32>
    %680 = vector.broadcast %678 : vector<8x1xf32> to vector<8x32xf32>
    %681 = vector.broadcast %679 : vector<1x32xf32> to vector<8x32xf32>
    %682 = arith.mulf %680, %681 : vector<8x32xf32>
    %683 = arith.addf %677, %682 : vector<8x32xf32>
    %684 = vector.extract_strided_slice %610 {offsets = [0, 12], sizes = [8, 1], strides = [1, 1]} : vector<8x32xf32> to vector<8x1xf32>
    %685 = vector.extract_strided_slice %612 {offsets = [12, 0], sizes = [1, 32], strides = [1, 1]} : vector<32x32xf32> to vector<1x32xf32>
    %686 = vector.broadcast %684 : vector<8x1xf32> to vector<8x32xf32>
    %687 = vector.broadcast %685 : vector<1x32xf32> to vector<8x32xf32>
    %688 = arith.mulf %686, %687 : vector<8x32xf32>
    %689 = arith.addf %683, %688 : vector<8x32xf32>
    %690 = vector.extract_strided_slice %610 {offsets = [0, 13], sizes = [8, 1], strides = [1, 1]} : vector<8x32xf32> to vector<8x1xf32>
    %691 = vector.extract_strided_slice %612 {offsets = [13, 0], sizes = [1, 32], strides = [1, 1]} : vector<32x32xf32> to vector<1x32xf32>
    %692 = vector.broadcast %690 : vector<8x1xf32> to vector<8x32xf32>
    %693 = vector.broadcast %691 : vector<1x32xf32> to vector<8x32xf32>
    %694 = arith.mulf %692, %693 : vector<8x32xf32>
    %695 = arith.addf %689, %694 : vector<8x32xf32>
    %696 = vector.extract_strided_slice %610 {offsets = [0, 14], sizes = [8, 1], strides = [1, 1]} : vector<8x32xf32> to vector<8x1xf32>
    %697 = vector.extract_strided_slice %612 {offsets = [14, 0], sizes = [1, 32], strides = [1, 1]} : vector<32x32xf32> to vector<1x32xf32>
    %698 = vector.broadcast %696 : vector<8x1xf32> to vector<8x32xf32>
    %699 = vector.broadcast %697 : vector<1x32xf32> to vector<8x32xf32>
    %700 = arith.mulf %698, %699 : vector<8x32xf32>
    %701 = arith.addf %695, %700 : vector<8x32xf32>
    %702 = vector.extract_strided_slice %610 {offsets = [0, 15], sizes = [8, 1], strides = [1, 1]} : vector<8x32xf32> to vector<8x1xf32>
    %703 = vector.extract_strided_slice %612 {offsets = [15, 0], sizes = [1, 32], strides = [1, 1]} : vector<32x32xf32> to vector<1x32xf32>
    %704 = vector.broadcast %702 : vector<8x1xf32> to vector<8x32xf32>
    %705 = vector.broadcast %703 : vector<1x32xf32> to vector<8x32xf32>
    %706 = arith.mulf %704, %705 : vector<8x32xf32>
    %707 = arith.addf %701, %706 : vector<8x32xf32>
    %708 = vector.extract_strided_slice %610 {offsets = [0, 16], sizes = [8, 1], strides = [1, 1]} : vector<8x32xf32> to vector<8x1xf32>
    %709 = vector.extract_strided_slice %612 {offsets = [16, 0], sizes = [1, 32], strides = [1, 1]} : vector<32x32xf32> to vector<1x32xf32>
    %710 = vector.broadcast %708 : vector<8x1xf32> to vector<8x32xf32>
    %711 = vector.broadcast %709 : vector<1x32xf32> to vector<8x32xf32>
    %712 = arith.mulf %710, %711 : vector<8x32xf32>
    %713 = arith.addf %707, %712 : vector<8x32xf32>
    %714 = vector.extract_strided_slice %610 {offsets = [0, 17], sizes = [8, 1], strides = [1, 1]} : vector<8x32xf32> to vector<8x1xf32>
    %715 = vector.extract_strided_slice %612 {offsets = [17, 0], sizes = [1, 32], strides = [1, 1]} : vector<32x32xf32> to vector<1x32xf32>
    %716 = vector.broadcast %714 : vector<8x1xf32> to vector<8x32xf32>
    %717 = vector.broadcast %715 : vector<1x32xf32> to vector<8x32xf32>
    %718 = arith.mulf %716, %717 : vector<8x32xf32>
    %719 = arith.addf %713, %718 : vector<8x32xf32>
    %720 = vector.extract_strided_slice %610 {offsets = [0, 18], sizes = [8, 1], strides = [1, 1]} : vector<8x32xf32> to vector<8x1xf32>
    %721 = vector.extract_strided_slice %612 {offsets = [18, 0], sizes = [1, 32], strides = [1, 1]} : vector<32x32xf32> to vector<1x32xf32>
    %722 = vector.broadcast %720 : vector<8x1xf32> to vector<8x32xf32>
    %723 = vector.broadcast %721 : vector<1x32xf32> to vector<8x32xf32>
    %724 = arith.mulf %722, %723 : vector<8x32xf32>
    %725 = arith.addf %719, %724 : vector<8x32xf32>
    %726 = vector.extract_strided_slice %610 {offsets = [0, 19], sizes = [8, 1], strides = [1, 1]} : vector<8x32xf32> to vector<8x1xf32>
    %727 = vector.extract_strided_slice %612 {offsets = [19, 0], sizes = [1, 32], strides = [1, 1]} : vector<32x32xf32> to vector<1x32xf32>
    %728 = vector.broadcast %726 : vector<8x1xf32> to vector<8x32xf32>
    %729 = vector.broadcast %727 : vector<1x32xf32> to vector<8x32xf32>
    %730 = arith.mulf %728, %729 : vector<8x32xf32>
    %731 = arith.addf %725, %730 : vector<8x32xf32>
    %732 = vector.extract_strided_slice %610 {offsets = [0, 20], sizes = [8, 1], strides = [1, 1]} : vector<8x32xf32> to vector<8x1xf32>
    %733 = vector.extract_strided_slice %612 {offsets = [20, 0], sizes = [1, 32], strides = [1, 1]} : vector<32x32xf32> to vector<1x32xf32>
    %734 = vector.broadcast %732 : vector<8x1xf32> to vector<8x32xf32>
    %735 = vector.broadcast %733 : vector<1x32xf32> to vector<8x32xf32>
    %736 = arith.mulf %734, %735 : vector<8x32xf32>
    %737 = arith.addf %731, %736 : vector<8x32xf32>
    %738 = vector.extract_strided_slice %610 {offsets = [0, 21], sizes = [8, 1], strides = [1, 1]} : vector<8x32xf32> to vector<8x1xf32>
    %739 = vector.extract_strided_slice %612 {offsets = [21, 0], sizes = [1, 32], strides = [1, 1]} : vector<32x32xf32> to vector<1x32xf32>
    %740 = vector.broadcast %738 : vector<8x1xf32> to vector<8x32xf32>
    %741 = vector.broadcast %739 : vector<1x32xf32> to vector<8x32xf32>
    %742 = arith.mulf %740, %741 : vector<8x32xf32>
    %743 = arith.addf %737, %742 : vector<8x32xf32>
    %744 = vector.extract_strided_slice %610 {offsets = [0, 22], sizes = [8, 1], strides = [1, 1]} : vector<8x32xf32> to vector<8x1xf32>
    %745 = vector.extract_strided_slice %612 {offsets = [22, 0], sizes = [1, 32], strides = [1, 1]} : vector<32x32xf32> to vector<1x32xf32>
    %746 = vector.broadcast %744 : vector<8x1xf32> to vector<8x32xf32>
    %747 = vector.broadcast %745 : vector<1x32xf32> to vector<8x32xf32>
    %748 = arith.mulf %746, %747 : vector<8x32xf32>
    %749 = arith.addf %743, %748 : vector<8x32xf32>
    %750 = vector.extract_strided_slice %610 {offsets = [0, 23], sizes = [8, 1], strides = [1, 1]} : vector<8x32xf32> to vector<8x1xf32>
    %751 = vector.extract_strided_slice %612 {offsets = [23, 0], sizes = [1, 32], strides = [1, 1]} : vector<32x32xf32> to vector<1x32xf32>
    %752 = vector.broadcast %750 : vector<8x1xf32> to vector<8x32xf32>
    %753 = vector.broadcast %751 : vector<1x32xf32> to vector<8x32xf32>
    %754 = arith.mulf %752, %753 : vector<8x32xf32>
    %755 = arith.addf %749, %754 : vector<8x32xf32>
    %756 = vector.extract_strided_slice %610 {offsets = [0, 24], sizes = [8, 1], strides = [1, 1]} : vector<8x32xf32> to vector<8x1xf32>
    %757 = vector.extract_strided_slice %612 {offsets = [24, 0], sizes = [1, 32], strides = [1, 1]} : vector<32x32xf32> to vector<1x32xf32>
    %758 = vector.broadcast %756 : vector<8x1xf32> to vector<8x32xf32>
    %759 = vector.broadcast %757 : vector<1x32xf32> to vector<8x32xf32>
    %760 = arith.mulf %758, %759 : vector<8x32xf32>
    %761 = arith.addf %755, %760 : vector<8x32xf32>
    %762 = vector.extract_strided_slice %610 {offsets = [0, 25], sizes = [8, 1], strides = [1, 1]} : vector<8x32xf32> to vector<8x1xf32>
    %763 = vector.extract_strided_slice %612 {offsets = [25, 0], sizes = [1, 32], strides = [1, 1]} : vector<32x32xf32> to vector<1x32xf32>
    %764 = vector.broadcast %762 : vector<8x1xf32> to vector<8x32xf32>
    %765 = vector.broadcast %763 : vector<1x32xf32> to vector<8x32xf32>
    %766 = arith.mulf %764, %765 : vector<8x32xf32>
    %767 = arith.addf %761, %766 : vector<8x32xf32>
    %768 = vector.extract_strided_slice %610 {offsets = [0, 26], sizes = [8, 1], strides = [1, 1]} : vector<8x32xf32> to vector<8x1xf32>
    %769 = vector.extract_strided_slice %612 {offsets = [26, 0], sizes = [1, 32], strides = [1, 1]} : vector<32x32xf32> to vector<1x32xf32>
    %770 = vector.broadcast %768 : vector<8x1xf32> to vector<8x32xf32>
    %771 = vector.broadcast %769 : vector<1x32xf32> to vector<8x32xf32>
    %772 = arith.mulf %770, %771 : vector<8x32xf32>
    %773 = arith.addf %767, %772 : vector<8x32xf32>
    %774 = vector.extract_strided_slice %610 {offsets = [0, 27], sizes = [8, 1], strides = [1, 1]} : vector<8x32xf32> to vector<8x1xf32>
    %775 = vector.extract_strided_slice %612 {offsets = [27, 0], sizes = [1, 32], strides = [1, 1]} : vector<32x32xf32> to vector<1x32xf32>
    %776 = vector.broadcast %774 : vector<8x1xf32> to vector<8x32xf32>
    %777 = vector.broadcast %775 : vector<1x32xf32> to vector<8x32xf32>
    %778 = arith.mulf %776, %777 : vector<8x32xf32>
    %779 = arith.addf %773, %778 : vector<8x32xf32>
    %780 = vector.extract_strided_slice %610 {offsets = [0, 28], sizes = [8, 1], strides = [1, 1]} : vector<8x32xf32> to vector<8x1xf32>
    %781 = vector.extract_strided_slice %612 {offsets = [28, 0], sizes = [1, 32], strides = [1, 1]} : vector<32x32xf32> to vector<1x32xf32>
    %782 = vector.broadcast %780 : vector<8x1xf32> to vector<8x32xf32>
    %783 = vector.broadcast %781 : vector<1x32xf32> to vector<8x32xf32>
    %784 = arith.mulf %782, %783 : vector<8x32xf32>
    %785 = arith.addf %779, %784 : vector<8x32xf32>
    %786 = vector.extract_strided_slice %610 {offsets = [0, 29], sizes = [8, 1], strides = [1, 1]} : vector<8x32xf32> to vector<8x1xf32>
    %787 = vector.extract_strided_slice %612 {offsets = [29, 0], sizes = [1, 32], strides = [1, 1]} : vector<32x32xf32> to vector<1x32xf32>
    %788 = vector.broadcast %786 : vector<8x1xf32> to vector<8x32xf32>
    %789 = vector.broadcast %787 : vector<1x32xf32> to vector<8x32xf32>
    %790 = arith.mulf %788, %789 : vector<8x32xf32>
    %791 = arith.addf %785, %790 : vector<8x32xf32>
    %792 = vector.extract_strided_slice %610 {offsets = [0, 30], sizes = [8, 1], strides = [1, 1]} : vector<8x32xf32> to vector<8x1xf32>
    %793 = vector.extract_strided_slice %612 {offsets = [30, 0], sizes = [1, 32], strides = [1, 1]} : vector<32x32xf32> to vector<1x32xf32>
    %794 = vector.broadcast %792 : vector<8x1xf32> to vector<8x32xf32>
    %795 = vector.broadcast %793 : vector<1x32xf32> to vector<8x32xf32>
    %796 = arith.mulf %794, %795 : vector<8x32xf32>
    %797 = arith.addf %791, %796 : vector<8x32xf32>
    %798 = vector.extract_strided_slice %610 {offsets = [0, 31], sizes = [8, 1], strides = [1, 1]} : vector<8x32xf32> to vector<8x1xf32>
    %799 = vector.extract_strided_slice %612 {offsets = [31, 0], sizes = [1, 32], strides = [1, 1]} : vector<32x32xf32> to vector<1x32xf32>
    %800 = vector.broadcast %798 : vector<8x1xf32> to vector<8x32xf32>
    %801 = vector.broadcast %799 : vector<1x32xf32> to vector<8x32xf32>
    %802 = arith.mulf %800, %801 : vector<8x32xf32>
    %803 = arith.addf %797, %802 : vector<8x32xf32>
    %c3_24 = arith.constant 3 : index
    %c0_25 = arith.constant 0 : index
    %c0_26 = arith.constant 0 : index
    %804 = vector.load %arg3[%c3_24, %c0_25, %c0_26] : memref<4x1x32xf32, #tpu.memory_space<vmem>>, vector<1x1x32xf32>
    %805 = vector.shape_cast %804 : vector<1x1x32xf32> to vector<1x32xf32>
    %806 = vector.broadcast %805 : vector<1x32xf32> to vector<8x32xf32>
    %807 = arith.addf %803, %806 : vector<8x32xf32>
    %cst_27 = arith.constant 2.000000e-01 : f32
    %808 = vector.broadcast %cst_27 : f32 to vector<8x32xf32>
    %809 = arith.mulf %808, %807 : vector<8x32xf32>
    %810 = arith.maximumf %807, %809 : vector<8x32xf32>
    %c0_28 = arith.constant 0 : index
    %c0_29 = arith.constant 0 : index
    %811 = vector.load %arg4[%c0_28, %c0_29] : memref<8x32xf32, #tpu.memory_space<vmem>>, vector<8x32xf32>
    tpu.vector_store %arg4[%c0_28, %c0_29], %810 {strides = array<i32>} : memref<8x32xf32, #tpu.memory_space<vmem>>, vector<8x32xf32>,
    return
  }
  func.func @transform_0(%arg0: i32) -> (i32, i32) {
    %c0_i32 = arith.constant 0 : i32
    %c0_i32_0 = arith.constant 0 : i32
    return %arg0, %c0_i32 : i32, i32
  }
  func.func @transform_1(%arg0: i32) -> (i32, i32, i32) {
    %c0_i32 = arith.constant 0 : i32
    %c0_i32_0 = arith.constant 0 : i32
    %c0_i32_1 = arith.constant 0 : i32
    %c0_i32_2 = arith.constant 0 : i32
    return %c0_i32, %c0_i32_0, %c0_i32_1 : i32, i32, i32
  }
  func.func @transform_2(%arg0: i32) -> (i32, i32, i32) {
    %c0_i32 = arith.constant 0 : i32
    %c0_i32_0 = arith.constant 0 : i32
    %c0_i32_1 = arith.constant 0 : i32
    %c0_i32_2 = arith.constant 0 : i32
    return %c0_i32, %c0_i32_0, %c0_i32_1 : i32, i32, i32
  }
  func.func @transform_3(%arg0: i32) -> (i32, i32) {
    %c0_i32 = arith.constant 0 : i32
    %c0_i32_0 = arith.constant 0 : i32
    return %arg0, %c0_i32 : i32, i32
  }
}

</mosaic_0001>

<bundles_post_ra>
// kernel: tpu_custom_call.1
= control target key start
LH: loop header
LB: loop body
LE: loop exit
PB: predicated region body
PF: predicated region fallthrough
CT: control target
= control target key end

     0   :  { %8 = vsyncpa [#allocation3], 0  ;;  %s2076_s0 = inlined_call_operand.hbm [shape: f32[8,32], index: 0, kind: input, shape index: {}]   ;;  %s2077_s1 = inlined_call_operand.hbm [shape: f32[4,32,32], index: 1, kind: input, shape index: {}]   ;;  %s2078_s2 = inlined_call_operand.vmem [shape: f32[4,1,32], index: 2, kind: input, shape index: {}]   ;;  %s2079_s3 = inlined_call_operand.hbm [shape: f32[8,32], index: 3, kind: output, shape index: {}]  }
   0x1   :  { %9 = vsyncpa [#allocation6], 0 }
   0x2   :  { %10 = vsyncpa [#allocation4], 0  ;;  %s1656_s12 = smov [#allocation2]   ;;  %s1657_s14 = smov [#allocation5]  }
   0x3   :  { %s17_s13 = sshll.u32 %s1656_s12, 4  ;;  %s26_s15 = sshll.u32 %s1657_s14, 4  ;;  %s18_s13 = int_to_ptr.vmem [resolvable:$true] %s17_s13  ;;  %s1713_s15 = int_to_ptr.vmem [resolvable:$true] %s26_s15 }
   0x4   :  { %s1584_s18 = scalar_lea.hbm %s2076_s0, 128 }
   0x5   :  { %p1585_p0 = scmp.ne.s32.totalorder %s2076_s0, %s1584_s18  ;;  %p1588_p1 = scmp.lt.u32.totalorder %s1584_s18, %s2076_s0 }
   0x7   :  { %p1590_p2 = pnand %p1588_p1, %p1585_p0 }
   0x9   :  { %1593 = shalt.err (!%p1590_p2)
}
   0xa   :  { %s1594_s23 = scalar_lea.vmem %s18_s13, 128  ;;  %p1599_p4 = scmp.lt.s32.totalorder %s18_s13, %s18_s13 }
   0xb   :  { %p1595_p3 = scmp.ne.s32.totalorder %s18_s13, %s1594_s23  ;;  %p1600_p5 = scmp.lt.s32.totalorder %s1594_s23, %s1594_s23 }
   0xd   :  { %p1601_p6 = por %p1600_p5, %p1599_p4 }
   0xf   :  { %p1602_p7 = pnand %p1601_p6, %p1595_p3 }
  0x11   :  { %1605 = shalt.err (!%p1602_p7)
}
  0x12   :  { %20 = dma.hbm_to_vmem [thread:$0]  %s2076_s0, 128, %s18_s13, [#allocation3]  }
  0x13   :  { %s1606_s28 = scalar_lea.hbm %s2077_s1, 2048 }
  0x14   :  { %p1607_p8 = scmp.ne.s32.totalorder %s2077_s1, %s1606_s28  ;;  %p1610_p9 = scmp.lt.u32.totalorder %s1606_s28, %s2077_s1 }
  0x16   :  { %p1612_p10 = pnand %p1610_p9, %p1607_p8 }
  0x18   :  { %1615 = shalt.err (!%p1612_p10)
}
  0x19   :  { %s1616_s6 = scalar_lea.vmem %s1713_s15, 2048  ;;  %p1621_p12 = scmp.lt.s32.totalorder %s1713_s15, %s1713_s15 }
  0x1a   :  { %p1617_p11 = scmp.ne.s32.totalorder %s1713_s15, %s1616_s6  ;;  %p1622_p13 = scmp.lt.s32.totalorder %s1616_s6, %s1616_s6 }
  0x1c   :  { %p1623_p0 = por %p1622_p13, %p1621_p12 }
  0x1e   :  { %p1624_p1 = pnand %p1623_p0, %p1617_p11 }
  0x20   :  { %1627 = shalt.err (!%p1624_p1)
}
  0x21   :  { %s1658_s0 = smov 128   ;;  %s1659_s7 = smov 8  }
  0x22   :  { %32 = dma.hbm_to_vmem [thread:$0]  %s2077_s1, 2048, %s1713_s15, [#allocation6], %s1658_s0, %s1658_s0, %s1659_s7  }
  0x23   :  { %1650 = dma.done.wait [#allocation3], 128  }
  0x24   :  { %1651 = vsyncadd [#allocation3], 4294967168 }
  0x25   :  { %1652 = dma.done.wait [#allocation6], 2048  }
  0x26   :  { %1653 = vsyncadd [#allocation6], 4294965248  ;;  %v41_v0 = vld [vmem:[#allocation2] sm:$0xff]  ;;  %vm43_vm0 = vcmask 261120   ;;  %v1660_v3 = vmov 1   ;;  %v1661_v4 = vmov 0   ;;  %v60_v44 = vlaneseq }
  0x27   :  { %v42_v1 = vmul.f32 %v41_v0, %v41_v0  ;;  %1455 = vset.pattern.permute.xlu1 %v1660_v3  ;;  %1454 = vset.pattern.permute.xlu0 %v1661_v4  ;;  %v2080_v10 = vmov 2   ;;  %v1663_v11 = vmov 13   ;;  %v1664_v12 = vmov 3   ;;  %v51_v49 = vld [vmem:[#allocation5] sm:$0xff]  ;;  %s1692_s17 = smov [#allocation7]  }
  0x28   :  { %v1665_v13 = vmov 16   ;;  %v1666_v14 = vmov 4   ;;  %v1667_v15 = vmov 19   ;;  %v1668_v16 = vmov 5   ;;  %s1400_s18 = sshll.u32 %s1692_s17, 4  ;;  %s1401_s18 = int_to_ptr.vmem [resolvable:$true] %s1400_s18 }
  0x29   :  { %v44_v2 = vsel %vm43_vm0, %v42_v1, 0.0  ;;  %v1669_v17 = vmov 22   ;;  %v1670_v18 = vmov 6   ;;  %v1671_v19 = vmov 25   ;;  %s1628_s19 = scalar_lea.vmem %s1401_s18, 128  ;;  %p1633_p3 = scmp.lt.s32.totalorder %s1401_s18, %s1401_s18 }
  0x2a   :  { %45 = vadd.xlane.f32.xlu0 %v44_v2  ;;  %v1672_v20 = vmov 7   ;;  %v1673_v21 = vmov 28   ;;  %v1674_v22 = vmov 8   ;;  %v2082_v23 = vmov 31   ;;  %p1629_p2 = scmp.ne.s32.totalorder %s1401_s18, %s1628_s19  ;;  %p1634_p4 = scmp.lt.s32.totalorder %s1628_s19, %s1628_s19 }
  0x2b   :  { %v1676_v24 = vmov 9   ;;  %v1677_v25 = vmov 10   ;;  %v1678_v26 = vmov 11   ;;  %v1679_v27 = vmov 12  }
  0x2c   :  { %v1680_v28 = vmov 14   ;;  %v1681_v29 = vmov 15   ;;  %v1682_v30 = vmov 17   ;;  %v1683_v31 = vmov 18   ;;  %p1635_p5 = por %p1634_p4, %p1633_p3 }
  0x2d   :  { %v1684_v32 = vmov 20   ;;  %v1685_v33 = vmov 21   ;;  %v1686_v34 = vmov 23   ;;  %v1687_v35 = vmov 24  }
  0x2e   :  { %v1688_v36 = vmov 26   ;;  %v1689_v37 = vmov 27   ;;  %v1690_v38 = vmov 29   ;;  %v2084_v39 = vmov 30   ;;  %p1636_p6 = pnand %p1635_p5, %p1629_p2 }
  0x2f   :  { %v61_v45 = vshrl.u32 %v60_v44, 7 }
  0x31   :  { %v1813_v47 = vsub.s32 1, %v61_v45  ;;  %v1815_v48 = vsub.s32 0, %v61_v45  ;;  %v1817_v51 = vsub.s32 2, %v61_v45  ;;  %v1821_v54 = vsub.s32 3, %v61_v45 }
  0x32   :  { %v1824_v57 = vsub.s32 4, %v61_v45  ;;  %v1827_v63 = vsub.s32 5, %v61_v45  ;;  %v1830_v1 = vsub.s32 6, %v61_v45 }
  0x33   :  { %v72_v52 = vrot.slane %v51_v49, %v1813_v47  ;;  %v63_v53 = vrot.slane %v51_v49, %v1815_v48  ;;  %v82_v56 = vrot.slane %v51_v49, %v1817_v51  ;;  %v92_v61 = vrot.slane %v51_v49, %v1821_v54 }
  0xb7   :  { %v46_v5 = vpop.xlane.xlu0 %45 }
  0xb8   :  { %v47_v6 = vmul.f32 0.03125, %v46_v5 }
  0xba   :  { %v48_v7 = vadd.f32 1e-08, %v47_v6 }
  0xbc   :  { %1582 = vrsqrt.f32 %v48_v7  ;;  %v112_v7 = vrot.slane %v51_v49, %v1827_v63 }
  0xc6   :  { %v1583_v8 = vpop.eup %1582 }
  0xc7   :  { %v1747_v9 = vmul.f32 %v1583_v8, %v41_v0  ;;  %v102_v0 = vrot.slane %v51_v49, %v1824_v57  ;;  %v1833_v8 = vsub.s32 7, %v61_v45 }
  0xc9   :  { %66 = vperm.xlu1 %1455, %v1747_v9   ;;  %57 = vperm.xlu0 %1454, %v1747_v9  }
  0xcd   :  { %1456 = vset.pattern.permute.xlu1 %v2080_v10  ;;  %1467 = vset.pattern.permute.xlu0 %v1663_v11 }
  0xce   :  { %76 = vperm.xlu1 %1456, %v1747_v9   ;;  %186 = vperm.xlu0 %1467, %v1747_v9  }
  0xd2   :  { %1457 = vset.pattern.permute.xlu1 %v1664_v12  ;;  %1470 = vset.pattern.permute.xlu0 %v1665_v13 }
  0xd3   :  { %86 = vperm.xlu1 %1457, %v1747_v9   ;;  %216 = vperm.xlu0 %1470, %v1747_v9  }
  0xd7   :  { %1458 = vset.pattern.permute.xlu1 %v1666_v14  ;;  %1473 = vset.pattern.permute.xlu0 %v1667_v15 }
  0xd8   :  { %96 = vperm.xlu1 %1458, %v1747_v9   ;;  %246 = vperm.xlu0 %1473, %v1747_v9  }
  0xdc   :  { %1459 = vset.pattern.permute.xlu1 %v1668_v16  ;;  %1476 = vset.pattern.permute.xlu0 %v1669_v17 }
  0xdd   :  { %106 = vperm.xlu1 %1459, %v1747_v9   ;;  %276 = vperm.xlu0 %1476, %v1747_v9  }
  0xe1   :  { %1460 = vset.pattern.permute.xlu1 %v1670_v18  ;;  %1479 = vset.pattern.permute.xlu0 %v1671_v19 }
  0xe2   :  { %116 = vperm.xlu1 %1460, %v1747_v9   ;;  %306 = vperm.xlu0 %1479, %v1747_v9  }
  0xe6   :  { %1461 = vset.pattern.permute.xlu1 %v1672_v20  ;;  %1482 = vset.pattern.permute.xlu0 %v1673_v21 }
  0xe7   :  { %126 = vperm.xlu1 %1461, %v1747_v9   ;;  %336 = vperm.xlu0 %1482, %v1747_v9  }
  0xeb   :  { %1462 = vset.pattern.permute.xlu1 %v1674_v22  ;;  %1485 = vset.pattern.permute.xlu0 %v2082_v23 }
  0xec   :  { %136 = vperm.xlu1 %1462, %v1747_v9   ;;  %366 = vperm.xlu0 %1485, %v1747_v9  }
  0xf0   :  { %1463 = vset.pattern.permute.xlu1 %v1676_v24  ;;  %1488 = vset.pattern.permute.xlu0 %v2080_v10 }
  0xf1   :  { %146 = vperm.xlu1 %1463, %v1747_v9  }
  0xf5   :  { %1464 = vset.pattern.permute.xlu1 %v1677_v25 }
  0xf6   :  { %156 = vperm.xlu1 %1464, %v1747_v9  }
  0xfa   :  { %1465 = vset.pattern.permute.xlu1 %v1678_v26 }
  0xfb   :  { %166 = vperm.xlu1 %1465, %v1747_v9  }
  0xff   :  { %1466 = vset.pattern.permute.xlu1 %v1679_v27 }
 0x100   :  { %176 = vperm.xlu1 %1466, %v1747_v9  }
 0x104   :  { %1468 = vset.pattern.permute.xlu1 %v1680_v28 }
 0x105   :  { %196 = vperm.xlu1 %1468, %v1747_v9  }
 0x109   :  { %1469 = vset.pattern.permute.xlu1 %v1681_v29 }
 0x10a   :  { %206 = vperm.xlu1 %1469, %v1747_v9  }
 0x10e   :  { %1471 = vset.pattern.permute.xlu1 %v1682_v30 }
 0x10f   :  { %226 = vperm.xlu1 %1471, %v1747_v9  }
 0x113   :  { %1472 = vset.pattern.permute.xlu1 %v1683_v31 }
 0x114   :  { %236 = vperm.xlu1 %1472, %v1747_v9  }
 0x118   :  { %1474 = vset.pattern.permute.xlu1 %v1684_v32 }
 0x119   :  { %256 = vperm.xlu1 %1474, %v1747_v9  }
 0x11d   :  { %1475 = vset.pattern.permute.xlu1 %v1685_v33 }
 0x11e   :  { %266 = vperm.xlu1 %1475, %v1747_v9  }
 0x122   :  { %1477 = vset.pattern.permute.xlu1 %v1686_v34 }
 0x123   :  { %286 = vperm.xlu1 %1477, %v1747_v9  }
 0x127   :  { %1478 = vset.pattern.permute.xlu1 %v1687_v35 }
 0x128   :  { %296 = vperm.xlu1 %1478, %v1747_v9  }
 0x12c   :  { %1480 = vset.pattern.permute.xlu1 %v1688_v36 }
 0x12d   :  { %316 = vperm.xlu1 %1480, %v1747_v9  }
 0x131   :  { %1481 = vset.pattern.permute.xlu1 %v1689_v37 }
 0x132   :  { %326 = vperm.xlu1 %1481, %v1747_v9  }
 0x136   :  { %1483 = vset.pattern.permute.xlu1 %v1690_v38 }
 0x137   :  { %346 = vperm.xlu1 %1483, %v1747_v9  }
 0x13b   :  { %1484 = vset.pattern.permute.xlu1 %v2084_v39 }
 0x13c   :  { %356 = vperm.xlu1 %1484, %v1747_v9  }
 0x140   :  { %1486 = vset.pattern.permute.xlu1 %v1661_v4 }
 0x148   :  { %v67_v40 = vpop.permute.xlu1 %66  ;;  %v58_v55 = vpop.permute.xlu0 %57 }
 0x149   :  { %v73_v59 = vmul.f32 %v72_v52, %v67_v40  ;;  %v64_v60 = vmul.f32 %v63_v53, %v58_v55  ;;  %v122_v40 = vrot.slane %v51_v49, %v1830_v1 }
 0x14b   :  { %v74_v5 = vadd.f32 %v73_v59, %v64_v60 }
 0x14d   :  { %v77_v41 = vpop.permute.xlu1 %76 }
 0x14e   :  { %v83_v62 = vmul.f32 %v82_v56, %v77_v41  ;;  %v132_v41 = vrot.slane %v51_v49, %v1833_v8  ;;  %v52_v56 = vld [vmem:[#allocation5 + $0x8] sm:$0xff] }
 0x14f   :  { %v142_v39 = vrot.slane %v52_v56, %v1815_v48  ;;  %v152_v60 = vrot.slane %v52_v56, %v1813_v47 }
 0x150   :  { %v84_v9 = vadd.f32 %v83_v62, %v74_v5 }
 0x152   :  { %v87_v42 = vpop.permute.xlu1 %86 }
 0x153   :  { %v93_v6 = vmul.f32 %v92_v61, %v87_v42 }
 0x155   :  { %v94_v52 = vadd.f32 %v93_v6, %v84_v9 }
 0x157   :  { %v97_v43 = vpop.permute.xlu1 %96 }
 0x158   :  { %v103_v44 = vmul.f32 %v102_v0, %v97_v43  ;;  %v162_v43 = vrot.slane %v52_v56, %v1817_v51 }
 0x15a   :  { %v104_v10 = vadd.f32 %v103_v44, %v94_v52  ;;  %v182_v44 = vrot.slane %v52_v56, %v1824_v57 }
 0x15c   :  { %v107_v46 = vpop.permute.xlu1 %106 }
 0x15d   :  { %v113_v53 = vmul.f32 %v112_v7, %v107_v46  ;;  %v172_v46 = vrot.slane %v52_v56, %v1821_v54 }
 0x15f   :  { %v114_v59 = vadd.f32 %v113_v53, %v104_v10  ;;  %v202_v53 = vrot.slane %v52_v56, %v1830_v1 }
 0x161   :  { %v117_v50 = vpop.permute.xlu1 %116 }
 0x162   :  { %v123_v23 = vmul.f32 %v122_v40, %v117_v50  ;;  %v192_v40 = vrot.slane %v52_v56, %v1827_v63 }
 0x164   :  { %v124_v61 = vadd.f32 %v123_v23, %v114_v59 }
 0x166   :  { %v127_v58 = vpop.permute.xlu1 %126 }
 0x167   :  { %v133_v42 = vmul.f32 %v132_v41, %v127_v58 }
 0x169   :  { %v134_v0 = vadd.f32 %v133_v42, %v124_v61 }
 0x16b   :  { %v137_v2 = vpop.permute.xlu1 %136 }
 0x16c   :  { %v143_v62 = vmul.f32 %v142_v39, %v137_v2  ;;  %v187_v39 = vpop.permute.xlu0 %186 }
 0x16d   :  { %v193_v41 = vmul.f32 %v192_v40, %v187_v39 }
 0x16e   :  { %v144_v49 = vadd.f32 %v143_v62, %v134_v0 }
 0x170   :  { %v147_v55 = vpop.permute.xlu1 %146 }
 0x171   :  { %v153_v5 = vmul.f32 %v152_v60, %v147_v55  ;;  %v212_v60 = vrot.slane %v52_v56, %v1833_v8 }
 0x173   :  { %v154_v9 = vadd.f32 %v153_v5, %v144_v49  ;;  %v217_v5 = vpop.permute.xlu0 %216 }
 0x175   :  { %v157_v45 = vpop.permute.xlu1 %156 }
 0x176   :  { %v163_v6 = vmul.f32 %v162_v43, %v157_v45  ;;  %v53_v45 = vld [vmem:[#allocation5 + $0x10] sm:$0xff] }
 0x177   :  { %v222_v62 = vrot.slane %v53_v45, %v1815_v48  ;;  %v232_v49 = vrot.slane %v53_v45, %v1813_v47  ;;  %v262_v39 = vrot.slane %v53_v45, %v1824_v57 }
 0x178   :  { %v164_v10 = vadd.f32 %v163_v6, %v154_v9 }
 0x179   :  { %v223_v6 = vmul.f32 %v222_v62, %v217_v5  ;;  %v292_v5 = vrot.slane %v53_v45, %v1833_v8 }
 0x17a   :  { %v167_v7 = vpop.permute.xlu1 %166 }
 0x17b   :  { %v173_v50 = vmul.f32 %v172_v46, %v167_v7 }
 0x17d   :  { %v174_v52 = vadd.f32 %v173_v50, %v164_v10 }
 0x17f   :  { %v177_v58 = vpop.permute.xlu1 %176 }
 0x180   :  { %v183_v23 = vmul.f32 %v182_v44, %v177_v58  ;;  %v242_v44 = vrot.slane %v53_v45, %v1817_v51  ;;  %v252_v58 = vrot.slane %v53_v45, %v1821_v54 }
 0x182   :  { %v184_v2 = vadd.f32 %v183_v23, %v174_v52  ;;  %v247_v52 = vpop.permute.xlu0 %246 }
 0x184   :  { %v197_v55 = vpop.permute.xlu1 %196  ;;  %v194_v59 = vadd.f32 %v193_v41, %v184_v2  ;;  %v253_v2 = vmul.f32 %v252_v58, %v247_v52 }
 0x185   :  { %v203_v42 = vmul.f32 %v202_v53, %v197_v55 }
 0x187   :  { %v204_v43 = vadd.f32 %v203_v42, %v194_v59  ;;  %v272_v59 = vrot.slane %v53_v45, %v1827_v63 }
 0x189   :  { %v207_v61 = vpop.permute.xlu1 %206 }
 0x18a   :  { %v213_v0 = vmul.f32 %v212_v60, %v207_v61  ;;  %v282_v60 = vrot.slane %v53_v45, %v1830_v1 }
 0x18c   :  { %v214_v46 = vadd.f32 %v213_v0, %v204_v43  ;;  %v277_v43 = vpop.permute.xlu0 %276 }
 0x18e   :  { %v227_v7 = vpop.permute.xlu1 %226  ;;  %v224_v9 = vadd.f32 %v223_v6, %v214_v46  ;;  %v283_v46 = vmul.f32 %v282_v60, %v277_v43  ;;  %v54_v6 = vld [vmem:[#allocation5 + $0x18] sm:$0xff] }
 0x18f   :  { %v233_v50 = vmul.f32 %v232_v49, %v227_v7  ;;  %v352_v43 = vrot.slane %v54_v6, %v1827_v63 }
 0x191   :  { %v234_v56 = vadd.f32 %v233_v50, %v224_v9  ;;  %v302_v50 = vrot.slane %v54_v6, %v1815_v48 }
 0x193   :  { %v237_v10 = vpop.permute.xlu1 %236 }
 0x194   :  { %v243_v40 = vmul.f32 %v242_v44, %v237_v10  ;;  %v312_v10 = vrot.slane %v54_v6, %v1813_v47 }
 0x196   :  { %v244_v23 = vadd.f32 %v243_v40, %v234_v56  ;;  %v307_v40 = vpop.permute.xlu0 %306 }
 0x198   :  { %v257_v53 = vpop.permute.xlu1 %256  ;;  %v254_v41 = vadd.f32 %v253_v2, %v244_v23  ;;  %v322_v23 = vrot.slane %v54_v6, %v1817_v51 }
 0x199   :  { %v263_v55 = vmul.f32 %v262_v39, %v257_v53  ;;  %v313_v39 = vmul.f32 %v312_v10, %v307_v40 }
 0x19b   :  { %v264_v61 = vadd.f32 %v263_v55, %v254_v41  ;;  %v332_v41 = vrot.slane %v54_v6, %v1821_v54 }
 0x19d   :  { %v267_v42 = vpop.permute.xlu1 %266 }
 0x19e   :  { %v273_v62 = vmul.f32 %v272_v59, %v267_v42  ;;  %v342_v59 = vrot.slane %v54_v6, %v1824_v57 }
 0x1a0   :  { %v274_v0 = vadd.f32 %v273_v62, %v264_v61  ;;  %v337_v61 = vpop.permute.xlu0 %336 }
 0x1a2   :  { %v287_v49 = vpop.permute.xlu1 %286  ;;  %v284_v7 = vadd.f32 %v283_v46, %v274_v0  ;;  %v343_v0 = vmul.f32 %v342_v59, %v337_v61 }
 0x1a3   :  { %v293_v9 = vmul.f32 %v292_v5, %v287_v49 }
 0x1a5   :  { %v294_v58 = vadd.f32 %v293_v9, %v284_v7  ;;  %v362_v7 = vrot.slane %v54_v6, %v1830_v1  ;;  %v372_v9 = vrot.slane %v54_v6, %v1833_v8  ;;  %v2086_v6 = vmov 30  }
 0x1a7   :  { %v297_v44 = vpop.permute.xlu1 %296 }
 0x1a8   :  { %v303_v56 = vmul.f32 %v302_v50, %v297_v44  ;;  %v367_v50 = vpop.permute.xlu0 %366 }
 0x1aa   :  { %v304_v52 = vadd.f32 %v303_v56, %v294_v58  ;;  %v373_v56 = vmul.f32 %v372_v9, %v367_v50 }
 0x1ac   :  { %v317_v2 = vpop.permute.xlu1 %316  ;;  %v314_v53 = vadd.f32 %v313_v39, %v304_v52  ;;  %v1410_v52 = vld [vmem:[%s2078_s2] ss:$0 sm:$0xff] }
 0x1ad   :  { %v323_v45 = vmul.f32 %v322_v23, %v317_v2 }
 0x1af   :  { %v324_v42 = vadd.f32 %v323_v45, %v314_v53  ;;  %v2087_v45 = vmov 31  }
 0x1b1   :  { %v327_v55 = vpop.permute.xlu1 %326 }
 0x1b2   :  { %v333_v60 = vmul.f32 %v332_v41, %v327_v55  ;;  %v386_v41 = vld [vmem:[#allocation5 + $0x20] sm:$0xff] }
 0x1b3   :  { %v398_v59 = vrot.slane %v386_v41, %v1815_v48  ;;  %v417_v61 = vrot.slane %v386_v41, %v1817_v51 }
 0x1b4   :  { %v334_v62 = vadd.f32 %v333_v60, %v324_v42  ;;  %v407_v42 = vrot.slane %v386_v41, %v1813_v47 }
 0x1b6   :  { %v347_v5 = vpop.permute.xlu1 %346  ;;  %v344_v46 = vadd.f32 %v343_v0, %v334_v62 }
 0x1b7   :  { %v353_v49 = vmul.f32 %v352_v43, %v347_v5 }
 0x1b9   :  { %v354_v10 = vadd.f32 %v353_v49, %v344_v46  ;;  %v427_v46 = vrot.slane %v386_v41, %v1821_v54 }
 0x1bb   :  { %v357_v44 = vpop.permute.xlu1 %356 }
 0x1bc   :  { %v363_v58 = vmul.f32 %v362_v7, %v357_v44  ;;  %v437_v44 = vrot.slane %v386_v41, %v1824_v57 }
 0x1be   :  { %v364_v40 = vadd.f32 %v363_v58, %v354_v10  ;;  %v447_v58 = vrot.slane %v386_v41, %v1827_v63 }
 0x1c0   :  { %v374_v23 = vadd.f32 %v373_v56, %v364_v40 }
 0x1c2   :  { %v382_v39 = vadd.f32 %v1410_v52, %v374_v23 }
 0x1c4   :  { %v383_v2 = vmul.f32 0.2, %v382_v39 }
 0x1c6   :  { %v384_v53 = vmax.f32 %v382_v39, %v383_v2  ;;  %v457_v39 = vrot.slane %v386_v41, %v1830_v1 }
 0x1c8   :  { %411 = vperm.xlu0 %1488, %v384_v53   ;;  %392 = vperm.xlu1 %1486, %v384_v53  }
 0x1cc   :  { %1491 = vset.pattern.permute.xlu0 %v1668_v16  ;;  %1487 = vset.pattern.permute.xlu1 %v1660_v3 }
 0x1cd   :  { %441 = vperm.xlu0 %1491, %v384_v53   ;;  %401 = vperm.xlu1 %1487, %v384_v53  }
 0x1d1   :  { %1494 = vset.pattern.permute.xlu0 %v1674_v22  ;;  %1489 = vset.pattern.permute.xlu1 %v1664_v12 }
 0x1d2   :  { %471 = vperm.xlu0 %1494, %v384_v53   ;;  %421 = vperm.xlu1 %1489, %v384_v53  }
 0x1d6   :  { %1497 = vset.pattern.permute.xlu0 %v1678_v26  ;;  %1490 = vset.pattern.permute.xlu1 %v1666_v14 }
 0x1d7   :  { %501 = vperm.xlu0 %1497, %v384_v53   ;;  %431 = vperm.xlu1 %1490, %v384_v53  }
 0x1db   :  { %1500 = vset.pattern.permute.xlu0 %v1680_v28  ;;  %1492 = vset.pattern.permute.xlu1 %v1670_v18 }
 0x1dc   :  { %531 = vperm.xlu0 %1500, %v384_v53   ;;  %451 = vperm.xlu1 %1492, %v384_v53  }
 0x1e0   :  { %1503 = vset.pattern.permute.xlu0 %v1682_v30  ;;  %1493 = vset.pattern.permute.xlu1 %v1672_v20 }
 0x1e1   :  { %561 = vperm.xlu0 %1503, %v384_v53   ;;  %461 = vperm.xlu1 %1493, %v384_v53  }
 0x1e5   :  { %1506 = vset.pattern.permute.xlu0 %v1684_v32  ;;  %1495 = vset.pattern.permute.xlu1 %v1676_v24 }
 0x1e6   :  { %591 = vperm.xlu0 %1506, %v384_v53   ;;  %481 = vperm.xlu1 %1495, %v384_v53  }
 0x1ea   :  { %1509 = vset.pattern.permute.xlu0 %v1686_v34  ;;  %1496 = vset.pattern.permute.xlu1 %v1677_v25 }
 0x1eb   :  { %621 = vperm.xlu0 %1509, %v384_v53   ;;  %491 = vperm.xlu1 %1496, %v384_v53  }
 0x1ef   :  { %1512 = vset.pattern.permute.xlu0 %v1688_v36  ;;  %1498 = vset.pattern.permute.xlu1 %v1679_v27 }
 0x1f0   :  { %651 = vperm.xlu0 %1512, %v384_v53   ;;  %511 = vperm.xlu1 %1498, %v384_v53  }
 0x1f4   :  { %1515 = vset.pattern.permute.xlu0 %v1690_v38  ;;  %1499 = vset.pattern.permute.xlu1 %v1663_v11 }
 0x1f5   :  { %681 = vperm.xlu0 %1515, %v384_v53   ;;  %521 = vperm.xlu1 %1499, %v384_v53  }
 0x1f9   :  { %1501 = vset.pattern.permute.xlu1 %v1681_v29  ;;  %1518 = vset.pattern.permute.xlu0 %v1661_v4 }
 0x1fa   :  { %541 = vperm.xlu1 %1501, %v384_v53  }
 0x1fe   :  { %1502 = vset.pattern.permute.xlu1 %v1665_v13 }
 0x1ff   :  { %551 = vperm.xlu1 %1502, %v384_v53  }
 0x203   :  { %1504 = vset.pattern.permute.xlu1 %v1683_v31 }
 0x204   :  { %571 = vperm.xlu1 %1504, %v384_v53  }
 0x208   :  { %1505 = vset.pattern.permute.xlu1 %v1667_v15 }
 0x209   :  { %581 = vperm.xlu1 %1505, %v384_v53  }
 0x20d   :  { %1507 = vset.pattern.permute.xlu1 %v1685_v33 }
 0x20e   :  { %601 = vperm.xlu1 %1507, %v384_v53  }
 0x212   :  { %1508 = vset.pattern.permute.xlu1 %v1669_v17 }
 0x213   :  { %611 = vperm.xlu1 %1508, %v384_v53  }
 0x217   :  { %1510 = vset.pattern.permute.xlu1 %v1687_v35 }
 0x218   :  { %631 = vperm.xlu1 %1510, %v384_v53  }
 0x21c   :  { %1511 = vset.pattern.permute.xlu1 %v1671_v19 }
 0x21d   :  { %641 = vperm.xlu1 %1511, %v384_v53  }
 0x221   :  { %1513 = vset.pattern.permute.xlu1 %v1689_v37 }
 0x222   :  { %661 = vperm.xlu1 %1513, %v384_v53  }
 0x226   :  { %1514 = vset.pattern.permute.xlu1 %v1673_v21 }
 0x227   :  { %671 = vperm.xlu1 %1514, %v384_v53  }
 0x22b   :  { %1516 = vset.pattern.permute.xlu1 %v2086_v6 }
 0x22c   :  { %691 = vperm.xlu1 %1516, %v384_v53  }
 0x230   :  { %1517 = vset.pattern.permute.xlu1 %v2087_v45 }
 0x231   :  { %701 = vperm.xlu1 %1517, %v384_v53  }
 0x235   :  { %1519 = vset.pattern.permute.xlu1 %v1660_v3 }
 0x247   :  { %v393_v55 = vpop.permute.xlu1 %392  ;;  %v412_v0 = vpop.permute.xlu0 %411 }
 0x248   :  { %v399_v62 = vmul.f32 %v398_v59, %v393_v55  ;;  %v418_v49 = vmul.f32 %v417_v61, %v412_v0 }
 0x24c   :  { %v402_v60 = vpop.permute.xlu1 %401  ;;  %v442_v52 = vpop.permute.xlu0 %441 }
 0x24d   :  { %v408_v43 = vmul.f32 %v407_v42, %v402_v60  ;;  %v448_v2 = vmul.f32 %v447_v58, %v442_v52  ;;  %v467_v42 = vrot.slane %v386_v41, %v1833_v8  ;;  %v387_v60 = vld [vmem:[#allocation5 + $0x28] sm:$0xff] }
 0x24f   :  { %v409_v5 = vadd.f32 %v408_v43, %v399_v62  ;;  %v477_v62 = vrot.slane %v387_v60, %v1815_v48 }
 0x251   :  { %v422_v7 = vpop.permute.xlu1 %421  ;;  %v419_v9 = vadd.f32 %v418_v49, %v409_v5  ;;  %v472_v5 = vpop.permute.xlu0 %471  ;;  %v487_v49 = vrot.slane %v387_v60, %v1813_v47 }
 0x252   :  { %v428_v50 = vmul.f32 %v427_v46, %v422_v7  ;;  %v478_v7 = vmul.f32 %v477_v62, %v472_v5  ;;  %v537_v62 = vrot.slane %v387_v60, %v1830_v1 }
 0x254   :  { %v429_v56 = vadd.f32 %v428_v50, %v419_v9 }
 0x256   :  { %v432_v10 = vpop.permute.xlu1 %431  ;;  %v502_v52 = vpop.permute.xlu0 %501 }
 0x257   :  { %v438_v40 = vmul.f32 %v437_v44, %v432_v10  ;;  %v497_v10 = vrot.slane %v387_v60, %v1817_v51 }
 0x259   :  { %v439_v23 = vadd.f32 %v438_v40, %v429_v56  ;;  %v507_v56 = vrot.slane %v387_v60, %v1821_v54 }
 0x25b   :  { %v452_v53 = vpop.permute.xlu1 %451  ;;  %v449_v55 = vadd.f32 %v448_v2, %v439_v23  ;;  %v508_v2 = vmul.f32 %v507_v56, %v502_v52  ;;  %v532_v5 = vpop.permute.xlu0 %531 }
 0x25c   :  { %v458_v59 = vmul.f32 %v457_v39, %v452_v53  ;;  %v517_v39 = vrot.slane %v387_v60, %v1824_v57 }
 0x25e   :  { %v459_v43 = vadd.f32 %v458_v59, %v449_v55 }
 0x260   :  { %v462_v61 = vpop.permute.xlu1 %461 }
 0x261   :  { %v468_v0 = vmul.f32 %v467_v42, %v462_v61  ;;  %v527_v42 = vrot.slane %v387_v60, %v1827_v63 }
 0x263   :  { %v469_v46 = vadd.f32 %v468_v0, %v459_v43 }
 0x265   :  { %v482_v9 = vpop.permute.xlu1 %481  ;;  %v479_v50 = vadd.f32 %v478_v7, %v469_v46  ;;  %v538_v7 = vmul.f32 %v537_v62, %v532_v5 }
 0x266   :  { %v488_v44 = vmul.f32 %v487_v49, %v482_v9  ;;  %v547_v49 = vrot.slane %v387_v60, %v1833_v8 }
 0x268   :  { %v489_v41 = vadd.f32 %v488_v44, %v479_v50  ;;  %v388_v50 = vld [vmem:[#allocation5 + $0x30] sm:$0xff] }
 0x269   :  { %v597_v62 = vrot.slane %v388_v50, %v1824_v57 }
 0x26a   :  { %v492_v58 = vpop.permute.xlu1 %491 }
 0x26b   :  { %v498_v40 = vmul.f32 %v497_v10, %v492_v58  ;;  %v557_v58 = vrot.slane %v388_v50, %v1815_v48 }
 0x26d   :  { %v499_v23 = vadd.f32 %v498_v40, %v489_v41  ;;  %v567_v41 = vrot.slane %v388_v50, %v1813_v47 }
 0x26f   :  { %v512_v53 = vpop.permute.xlu1 %511  ;;  %v509_v55 = vadd.f32 %v508_v2, %v499_v23  ;;  %v562_v23 = vpop.permute.xlu0 %561  ;;  %v577_v2 = vrot.slane %v388_v50, %v1817_v51 }
 0x270   :  { %v518_v59 = vmul.f32 %v517_v39, %v512_v53  ;;  %v568_v53 = vmul.f32 %v567_v41, %v562_v23  ;;  %v627_v41 = vrot.slane %v388_v50, %v1833_v8 }
 0x272   :  { %v519_v43 = vadd.f32 %v518_v59, %v509_v55 }
 0x273   :  { %v592_v5 = vpop.permute.xlu0 %591 }
 0x274   :  { %v522_v61 = vpop.permute.xlu1 %521 }
 0x275   :  { %v528_v0 = vmul.f32 %v527_v42, %v522_v61  ;;  %v587_v42 = vrot.slane %v388_v50, %v1821_v54 }
 0x277   :  { %v529_v46 = vadd.f32 %v528_v0, %v519_v43  ;;  %v622_v23 = vpop.permute.xlu0 %621 }
 0x279   :  { %v542_v9 = vpop.permute.xlu1 %541  ;;  %v539_v44 = vadd.f32 %v538_v7, %v529_v46  ;;  %v598_v7 = vmul.f32 %v597_v62, %v592_v5 }
 0x27a   :  { %v548_v10 = vmul.f32 %v547_v49, %v542_v9  ;;  %v607_v49 = vrot.slane %v388_v50, %v1827_v63 }
 0x27c   :  { %v549_v40 = vadd.f32 %v548_v10, %v539_v44 }
 0x27e   :  { %v552_v56 = vpop.permute.xlu1 %551 }
 0x27f   :  { %v558_v52 = vmul.f32 %v557_v58, %v552_v56  ;;  %v617_v58 = vrot.slane %v388_v50, %v1830_v1 }
 0x281   :  { %v559_v39 = vadd.f32 %v558_v52, %v549_v40 }
 0x283   :  { %v572_v55 = vpop.permute.xlu1 %571  ;;  %v569_v59 = vadd.f32 %v568_v53, %v559_v39  ;;  %v389_v39 = vld [vmem:[#allocation5 + $0x38] sm:$0xff] }
 0x284   :  { %v578_v60 = vmul.f32 %v577_v2, %v572_v55  ;;  %v637_v53 = vrot.slane %v389_v39, %v1815_v48  ;;  %v628_v55 = vmul.f32 %v627_v41, %v622_v23  ;;  %v687_v41 = vrot.slane %v389_v39, %v1827_v63 }
 0x286   :  { %v579_v43 = vadd.f32 %v578_v60, %v569_v59 }
 0x288   :  { %v582_v61 = vpop.permute.xlu1 %581 }
 0x289   :  { %v588_v0 = vmul.f32 %v587_v42, %v582_v61  ;;  %v647_v61 = vrot.slane %v389_v39, %v1813_v47 }
 0x28b   :  { %v589_v46 = vadd.f32 %v588_v0, %v579_v43  ;;  %v657_v43 = vrot.slane %v389_v39, %v1817_v51 }
 0x28d   :  { %v602_v9 = vpop.permute.xlu1 %601  ;;  %v599_v44 = vadd.f32 %v598_v7, %v589_v46  ;;  %v652_v46 = vpop.permute.xlu0 %651 }
 0x28e   :  { %v608_v10 = vmul.f32 %v607_v49, %v602_v9  ;;  %v667_v49 = vrot.slane %v389_v39, %v1821_v54  ;;  %v658_v7 = vmul.f32 %v657_v43, %v652_v46 }
 0x290   :  { %v609_v40 = vadd.f32 %v608_v10, %v599_v44 }
 0x291   :  { %v682_v23 = vpop.permute.xlu0 %681 }
 0x292   :  { %v612_v56 = vpop.permute.xlu1 %611 }
 0x293   :  { %v618_v52 = vmul.f32 %v617_v58, %v612_v56  ;;  %v677_v58 = vrot.slane %v389_v39, %v1824_v57 }
 0x295   :  { %v619_v2 = vadd.f32 %v618_v52, %v609_v40 }
 0x297   :  { %v632_v59 = vpop.permute.xlu1 %631  ;;  %v629_v60 = vadd.f32 %v628_v55, %v619_v2  ;;  %v688_v55 = vmul.f32 %v687_v41, %v682_v23 }
 0x298   :  { %v638_v42 = vmul.f32 %v637_v53, %v632_v59  ;;  %v697_v53 = vrot.slane %v389_v39, %v1830_v1 }
 0x29a   :  { %v639_v0 = vadd.f32 %v638_v42, %v629_v60 }
 0x29c   :  { %v642_v62 = vpop.permute.xlu1 %641 }
 0x29d   :  { %v648_v5 = vmul.f32 %v647_v61, %v642_v62  ;;  %v707_v61 = vrot.slane %v389_v39, %v1833_v8 }
 0x29f   :  { %v649_v50 = vadd.f32 %v648_v5, %v639_v0  ;;  %v1412_v5 = vld [vmem:[%s2078_s2 + $0x1] ss:$0 sm:$0xff] }
 0x2a1   :  { %v662_v9 = vpop.permute.xlu1 %661  ;;  %v659_v44 = vadd.f32 %v658_v7, %v649_v50 }
 0x2a2   :  { %v668_v10 = vmul.f32 %v667_v49, %v662_v9  ;;  %v2088_v9 = vmov 2  }
 0x2a4   :  { %v669_v40 = vadd.f32 %v668_v10, %v659_v44 }
 0x2a6   :  { %v672_v56 = vpop.permute.xlu1 %671 }
 0x2a7   :  { %v678_v52 = vmul.f32 %v677_v58, %v672_v56 }
 0x2a9   :  { %v679_v2 = vadd.f32 %v678_v52, %v669_v40 }
 0x2ab   :  { %v692_v59 = vpop.permute.xlu1 %691  ;;  %v689_v60 = vadd.f32 %v688_v55, %v679_v2 }
 0x2ac   :  { %v698_v42 = vmul.f32 %v697_v53, %v692_v59 }
 0x2ae   :  { %v699_v43 = vadd.f32 %v698_v42, %v689_v60 }
 0x2b0   :  { %v702_v62 = vpop.permute.xlu1 %701 }
 0x2b1   :  { %v708_v0 = vmul.f32 %v707_v61, %v702_v62 }
 0x2b3   :  { %v709_v46 = vadd.f32 %v708_v0, %v699_v43 }
 0x2b5   :  { %v718_v50 = vadd.f32 %v1412_v5, %v709_v46 }
 0x2b7   :  { %v719_v49 = vmul.f32 0.2, %v718_v50 }
 0x2b9   :  { %v720_v7 = vmax.f32 %v718_v50, %v719_v49 }
 0x2bb   :  { %737 = vperm.xlu1 %1519, %v720_v7   ;;  %728 = vperm.xlu0 %1518, %v720_v7  }
 0x2bf   :  { %1520 = vset.pattern.permute.xlu1 %v2088_v9  ;;  %1521 = vset.pattern.permute.xlu0 %v1664_v12 }
 0x2c0   :  { %747 = vperm.xlu1 %1520, %v720_v7   ;;  %757 = vperm.xlu0 %1521, %v720_v7  }
 0x2c4   :  { %1522 = vset.pattern.permute.xlu1 %v1666_v14  ;;  %1524 = vset.pattern.permute.xlu0 %v1670_v18 }
 0x2c5   :  { %767 = vperm.xlu1 %1522, %v720_v7   ;;  %787 = vperm.xlu0 %1524, %v720_v7  }
 0x2c9   :  { %1523 = vset.pattern.permute.xlu1 %v1668_v16  ;;  %1527 = vset.pattern.permute.xlu0 %v1676_v24 }
 0x2ca   :  { %777 = vperm.xlu1 %1523, %v720_v7   ;;  %817 = vperm.xlu0 %1527, %v720_v7  }
 0x2ce   :  { %1525 = vset.pattern.permute.xlu1 %v1672_v20  ;;  %1530 = vset.pattern.permute.xlu0 %v1679_v27 }
 0x2cf   :  { %797 = vperm.xlu1 %1525, %v720_v7   ;;  %847 = vperm.xlu0 %1530, %v720_v7  }
 0x2d3   :  { %1526 = vset.pattern.permute.xlu1 %v1674_v22  ;;  %1533 = vset.pattern.permute.xlu0 %v1681_v29 }
 0x2d4   :  { %807 = vperm.xlu1 %1526, %v720_v7   ;;  %877 = vperm.xlu0 %1533, %v720_v7  }
 0x2d8   :  { %1528 = vset.pattern.permute.xlu1 %v1677_v25  ;;  %1536 = vset.pattern.permute.xlu0 %v1683_v31 }
 0x2d9   :  { %827 = vperm.xlu1 %1528, %v720_v7   ;;  %907 = vperm.xlu0 %1536, %v720_v7  }
 0x2dd   :  { %1529 = vset.pattern.permute.xlu1 %v1678_v26  ;;  %1539 = vset.pattern.permute.xlu0 %v1685_v33 }
 0x2de   :  { %837 = vperm.xlu1 %1529, %v720_v7   ;;  %937 = vperm.xlu0 %1539, %v720_v7  }
 0x2e2   :  { %1531 = vset.pattern.permute.xlu1 %v1663_v11  ;;  %1542 = vset.pattern.permute.xlu0 %v1687_v35 }
 0x2e3   :  { %857 = vperm.xlu1 %1531, %v720_v7   ;;  %967 = vperm.xlu0 %1542, %v720_v7  }
 0x2e7   :  { %1532 = vset.pattern.permute.xlu1 %v1680_v28  ;;  %1545 = vset.pattern.permute.xlu0 %v1689_v37 }
 0x2e8   :  { %867 = vperm.xlu1 %1532, %v720_v7   ;;  %997 = vperm.xlu0 %1545, %v720_v7  }
 0x2ec   :  { %1534 = vset.pattern.permute.xlu1 %v1665_v13  ;;  %1548 = vset.pattern.permute.xlu0 %v2086_v6 }
 0x2ed   :  { %887 = vperm.xlu1 %1534, %v720_v7   ;;  %1027 = vperm.xlu0 %1548, %v720_v7  }
 0x2f1   :  { %1535 = vset.pattern.permute.xlu1 %v1682_v30  ;;  %1551 = vset.pattern.permute.xlu0 %v1660_v3  ;;  %v722_v3 = vld [vmem:[#allocation5 + $0x40] sm:$0xff] }
 0x2f2   :  { %897 = vperm.xlu1 %1535, %v720_v7   ;;  %v743_v39 = vrot.slane %v722_v3, %v1813_v47  ;;  %v734_v44 = vrot.slane %v722_v3, %v1815_v48  ;;  %v753_v40 = vrot.slane %v722_v3, %v1817_v51  ;;  %v763_v53 = vrot.slane %v722_v3, %v1821_v54 }
 0x2f3   :  { %v783_v43 = vrot.slane %v722_v3, %v1827_v63  ;;  %v793_v46 = vrot.slane %v722_v3, %v1830_v1 }
 0x2f6   :  { %1537 = vset.pattern.permute.xlu1 %v1667_v15 }
 0x2f7   :  { %917 = vperm.xlu1 %1537, %v720_v7  }
 0x2fb   :  { %1538 = vset.pattern.permute.xlu1 %v1684_v32 }
 0x2fc   :  { %927 = vperm.xlu1 %1538, %v720_v7  }
 0x300   :  { %1540 = vset.pattern.permute.xlu1 %v1669_v17 }
 0x301   :  { %947 = vperm.xlu1 %1540, %v720_v7  }
 0x305   :  { %1541 = vset.pattern.permute.xlu1 %v1686_v34 }
 0x306   :  { %957 = vperm.xlu1 %1541, %v720_v7  }
 0x30a   :  { %1543 = vset.pattern.permute.xlu1 %v1671_v19 }
 0x30b   :  { %977 = vperm.xlu1 %1543, %v720_v7  }
 0x30f   :  { %1544 = vset.pattern.permute.xlu1 %v1688_v36 }
 0x310   :  { %987 = vperm.xlu1 %1544, %v720_v7  }
 0x314   :  { %1546 = vset.pattern.permute.xlu1 %v1673_v21 }
 0x315   :  { %1007 = vperm.xlu1 %1546, %v720_v7  }
 0x319   :  { %1547 = vset.pattern.permute.xlu1 %v1690_v38 }
 0x31a   :  { %1017 = vperm.xlu1 %1547, %v720_v7  }
 0x31e   :  { %1549 = vset.pattern.permute.xlu1 %v2087_v45 }
 0x31f   :  { %1037 = vperm.xlu1 %1549, %v720_v7  }
 0x323   :  { %1550 = vset.pattern.permute.xlu1 %v1661_v4  ;;  %v773_v4 = vrot.slane %v722_v3, %v1824_v57 }
 0x33a   :  { %v738_v10 = vpop.permute.xlu1 %737  ;;  %v729_v58 = vpop.permute.xlu0 %728 }
 0x33b   :  { %v744_v56 = vmul.f32 %v743_v39, %v738_v10  ;;  %v735_v41 = vmul.f32 %v734_v44, %v729_v58  ;;  %v803_v39 = vrot.slane %v722_v3, %v1833_v8  ;;  %v723_v58 = vld [vmem:[#allocation5 + $0x48] sm:$0xff] }
 0x33d   :  { %v745_v23 = vadd.f32 %v744_v56, %v735_v41 }
 0x33f   :  { %v748_v52 = vpop.permute.xlu1 %747  ;;  %v758_v55 = vpop.permute.xlu0 %757 }
 0x340   :  { %v754_v2 = vmul.f32 %v753_v40, %v748_v52  ;;  %v764_v60 = vmul.f32 %v763_v53, %v758_v55  ;;  %v813_v40 = vrot.slane %v723_v58, %v1815_v48 }
 0x342   :  { %v755_v59 = vadd.f32 %v754_v2, %v745_v23  ;;  %v823_v23 = vrot.slane %v723_v58, %v1813_v47 }
 0x344   :  { %v768_v42 = vpop.permute.xlu1 %767  ;;  %v765_v61 = vadd.f32 %v764_v60, %v755_v59  ;;  %v788_v49 = vpop.permute.xlu0 %787 }
 0x345   :  { %v774_v62 = vmul.f32 %v773_v4, %v768_v42  ;;  %v794_v44 = vmul.f32 %v793_v46, %v788_v49  ;;  %v833_v4 = vrot.slane %v723_v58, %v1817_v51 }
 0x347   :  { %v775_v5 = vadd.f32 %v774_v62, %v765_v61  ;;  %v843_v62 = vrot.slane %v723_v58, %v1821_v54 }
 0x349   :  { %v778_v0 = vpop.permute.xlu1 %777  ;;  %v818_v55 = vpop.permute.xlu0 %817 }
 0x34a   :  { %v784_v50 = vmul.f32 %v783_v43, %v778_v0  ;;  %v824_v60 = vmul.f32 %v823_v23, %v818_v55  ;;  %v853_v0 = vrot.slane %v723_v58, %v1824_v57  ;;  %v724_v55 = vld [vmem:[#allocation5 + $0x50] sm:$0xff] }
 0x34c   :  { %v785_v7 = vadd.f32 %v784_v50, %v775_v5 }
 0x34e   :  { %v798_v10 = vpop.permute.xlu1 %797  ;;  %v795_v56 = vadd.f32 %v794_v44, %v785_v7  ;;  %v848_v50 = vpop.permute.xlu0 %847  ;;  %v863_v7 = vrot.slane %v723_v58, %v1827_v63 }
 0x34f   :  { %v804_v41 = vmul.f32 %v803_v39, %v798_v10  ;;  %v854_v39 = vmul.f32 %v853_v0, %v848_v50  ;;  %v913_v0 = vrot.slane %v724_v55, %v1817_v51 }
 0x351   :  { %v805_v2 = vadd.f32 %v804_v41, %v795_v56  ;;  %v873_v41 = vrot.slane %v723_v58, %v1830_v1 }
 0x353   :  { %v808_v52 = vpop.permute.xlu1 %807 }
 0x354   :  { %v814_v53 = vmul.f32 %v813_v40, %v808_v52  ;;  %v883_v52 = vrot.slane %v723_v58, %v1833_v8 }
 0x356   :  { %v815_v59 = vadd.f32 %v814_v53, %v805_v2  ;;  %v878_v53 = vpop.permute.xlu0 %877 }
 0x358   :  { %v828_v42 = vpop.permute.xlu1 %827  ;;  %v825_v61 = vadd.f32 %v824_v60, %v815_v59  ;;  %v884_v60 = vmul.f32 %v883_v52, %v878_v53 }
 0x359   :  { %v834_v3 = vmul.f32 %v833_v4, %v828_v42  ;;  %v893_v4 = vrot.slane %v724_v55, %v1815_v48 }
 0x35a   :  { %v908_v50 = vpop.permute.xlu0 %907 }
 0x35b   :  { %v835_v5 = vadd.f32 %v834_v3, %v825_v61 }
 0x35d   :  { %v838_v43 = vpop.permute.xlu1 %837 }
 0x35e   :  { %v844_v46 = vmul.f32 %v843_v62, %v838_v43  ;;  %v903_v62 = vrot.slane %v724_v55, %v1813_v47 }
 0x360   :  { %v845_v49 = vadd.f32 %v844_v46, %v835_v5 }
 0x362   :  { %v858_v44 = vpop.permute.xlu1 %857  ;;  %v855_v10 = vadd.f32 %v854_v39, %v845_v49  ;;  %v923_v49 = vrot.slane %v724_v55, %v1821_v54 }
 0x363   :  { %v864_v56 = vmul.f32 %v863_v7, %v858_v44  ;;  %v914_v7 = vmul.f32 %v913_v0, %v908_v50 }
 0x365   :  { %v865_v23 = vadd.f32 %v864_v56, %v855_v10  ;;  %v933_v56 = vrot.slane %v724_v55, %v1824_v57 }
 0x367   :  { %v868_v40 = vpop.permute.xlu1 %867 }
 0x368   :  { %v874_v2 = vmul.f32 %v873_v41, %v868_v40  ;;  %v943_v40 = vrot.slane %v724_v55, %v1827_v63 }
 0x36a   :  { %v875_v59 = vadd.f32 %v874_v2, %v865_v23  ;;  %v938_v2 = vpop.permute.xlu0 %937 }
 0x36c   :  { %v888_v42 = vpop.permute.xlu1 %887  ;;  %v885_v61 = vadd.f32 %v884_v60, %v875_v59  ;;  %v953_v59 = vrot.slane %v724_v55, %v1830_v1 }
 0x36d   :  { %v894_v3 = vmul.f32 %v893_v4, %v888_v42  ;;  %v944_v4 = vmul.f32 %v943_v40, %v938_v2 }
 0x36e   :  { %v968_v50 = vpop.permute.xlu0 %967 }
 0x36f   :  { %v895_v5 = vadd.f32 %v894_v3, %v885_v61  ;;  %v963_v3 = vrot.slane %v724_v55, %v1833_v8 }
 0x371   :  { %v898_v43 = vpop.permute.xlu1 %897 }
 0x372   :  { %v904_v46 = vmul.f32 %v903_v62, %v898_v43  ;;  %v725_v62 = vld [vmem:[#allocation5 + $0x58] sm:$0xff] }
 0x373   :  { %v973_v0 = vrot.slane %v725_v62, %v1815_v48  ;;  %v1003_v40 = vrot.slane %v725_v62, %v1821_v54 }
 0x374   :  { %v905_v58 = vadd.f32 %v904_v46, %v895_v5 }
 0x376   :  { %v918_v39 = vpop.permute.xlu1 %917  ;;  %v915_v44 = vadd.f32 %v914_v7, %v905_v58  ;;  %v974_v7 = vmul.f32 %v973_v0, %v968_v50  ;;  %v1043_v50 = vrot.slane %v725_v62, %v1833_v8 }
 0x377   :  { %v924_v10 = vmul.f32 %v923_v49, %v918_v39  ;;  %v983_v49 = vrot.slane %v725_v62, %v1813_v47 }
 0x379   :  { %v925_v52 = vadd.f32 %v924_v10, %v915_v44 }
 0x37b   :  { %v928_v41 = vpop.permute.xlu1 %927 }
 0x37c   :  { %v934_v23 = vmul.f32 %v933_v56, %v928_v41  ;;  %v993_v56 = vrot.slane %v725_v62, %v1817_v51 }
 0x37e   :  { %v935_v53 = vadd.f32 %v934_v23, %v925_v52  ;;  %v998_v23 = vpop.permute.xlu0 %997 }
 0x380   :  { %v948_v60 = vpop.permute.xlu1 %947  ;;  %v945_v42 = vadd.f32 %v944_v4, %v935_v53  ;;  %v1013_v53 = vrot.slane %v725_v62, %v1824_v57 }
 0x381   :  { %v954_v61 = vmul.f32 %v953_v59, %v948_v60  ;;  %v1004_v59 = vmul.f32 %v1003_v40, %v998_v23 }
 0x383   :  { %v955_v5 = vadd.f32 %v954_v61, %v945_v42  ;;  %v1023_v61 = vrot.slane %v725_v62, %v1827_v63 }
 0x385   :  { %v958_v43 = vpop.permute.xlu1 %957 }
 0x386   :  { %v964_v46 = vmul.f32 %v963_v3, %v958_v43  ;;  %v1033_v3 = vrot.slane %v725_v62, %v1830_v1  ;;  %v1028_v43 = vpop.permute.xlu0 %1027 }
 0x388   :  { %v965_v58 = vadd.f32 %v964_v46, %v955_v5 }
 0x38a   :  { %v978_v39 = vpop.permute.xlu1 %977  ;;  %v975_v44 = vadd.f32 %v974_v7, %v965_v58  ;;  %v1034_v58 = vmul.f32 %v1033_v3, %v1028_v43 }
 0x38b   :  { %v984_v10 = vmul.f32 %v983_v49, %v978_v39 }
 0x38d   :  { %v985_v55 = vadd.f32 %v984_v10, %v975_v44  ;;  %v1414_v10 = vld [vmem:[%s2078_s2 + $0x2] ss:$0 sm:$0xff] }
 0x38f   :  { %v988_v41 = vpop.permute.xlu1 %987 }
 0x390   :  { %v994_v52 = vmul.f32 %v993_v56, %v988_v41 }
 0x392   :  { %v995_v2 = vadd.f32 %v994_v52, %v985_v55 }
 0x394   :  { %v1008_v4 = vpop.permute.xlu1 %1007  ;;  %v1005_v60 = vadd.f32 %v1004_v59, %v995_v2 }
 0x395   :  { %v1014_v42 = vmul.f32 %v1013_v53, %v1008_v4 }
 0x397   :  { %v1015_v5 = vadd.f32 %v1014_v42, %v1005_v60 }
 0x399   :  { %v1018_v0 = vpop.permute.xlu1 %1017 }
 0x39a   :  { %v1024_v46 = vmul.f32 %v1023_v61, %v1018_v0 }
 0x39c   :  { %v1025_v49 = vadd.f32 %v1024_v46, %v1015_v5 }
 0x39e   :  { %v1038_v7 = vpop.permute.xlu1 %1037  ;;  %v1035_v39 = vadd.f32 %v1034_v58, %v1025_v49 }
 0x39f   :  { %v1044_v44 = vmul.f32 %v1043_v50, %v1038_v7 }
 0x3a1   :  { %v1045_v56 = vadd.f32 %v1044_v44, %v1035_v39 }
 0x3a3   :  { %v1054_v41 = vadd.f32 %v1414_v10, %v1045_v56 }
 0x3a5   :  { %v1055_v40 = vmul.f32 0.2, %v1054_v41 }
 0x3a7   :  { %v1056_v55 = vmax.f32 %v1054_v41, %v1055_v40 }
 0x3a9   :  { %1073 = vperm.xlu0 %1551, %v1056_v55   ;;  %1064 = vperm.xlu1 %1550, %v1056_v55  }
 0x3ad   :  { %1554 = vset.pattern.permute.xlu0 %v1666_v14  ;;  %1552 = vset.pattern.permute.xlu1 %v2088_v9  ;;  %v1059_v9 = vld [vmem:[#allocation5 + $0x68] sm:$0xff] }
 0x3ae   :  { %1103 = vperm.xlu0 %1554, %v1056_v55   ;;  %1083 = vperm.xlu1 %1552, %v1056_v55   ;;  %v1149_v52 = vrot.slane %v1059_v9, %v1815_v48  ;;  %v1159_v4 = vrot.slane %v1059_v9, %v1813_v47  ;;  %v1169_v42 = vrot.slane %v1059_v9, %v1817_v51 }
 0x3af   :  { %v1179_v5 = vrot.slane %v1059_v9, %v1821_v54  ;;  %v1189_v7 = vrot.slane %v1059_v9, %v1824_v57  ;;  %v1199_v44 = vrot.slane %v1059_v9, %v1827_v63 }
 0x3b2   :  { %1557 = vset.pattern.permute.xlu0 %v1672_v20  ;;  %1553 = vset.pattern.permute.xlu1 %v1664_v12 }
 0x3b3   :  { %1133 = vperm.xlu0 %1557, %v1056_v55   ;;  %1093 = vperm.xlu1 %1553, %v1056_v55  }
 0x3b7   :  { %1560 = vset.pattern.permute.xlu0 %v1677_v25  ;;  %1555 = vset.pattern.permute.xlu1 %v1668_v16 }
 0x3b8   :  { %1163 = vperm.xlu0 %1560, %v1056_v55   ;;  %1113 = vperm.xlu1 %1555, %v1056_v55  }
 0x3bc   :  { %1563 = vset.pattern.permute.xlu0 %v1663_v11  ;;  %1556 = vset.pattern.permute.xlu1 %v1670_v18  ;;  %v1058_v11 = vld [vmem:[#allocation5 + $0x60] sm:$0xff] }
 0x3bd   :  { %1193 = vperm.xlu0 %1563, %v1056_v55   ;;  %1123 = vperm.xlu1 %1556, %v1056_v55   ;;  %v1070_v14 = vrot.slane %v1058_v11, %v1815_v48  ;;  %v1089_v16 = vrot.slane %v1058_v11, %v1817_v51  ;;  %v1109_v25 = vrot.slane %v1058_v11, %v1824_v57 }
 0x3c1   :  { %1566 = vset.pattern.permute.xlu0 %v1665_v13  ;;  %1558 = vset.pattern.permute.xlu1 %v1674_v22  ;;  %v1079_v13 = vrot.slane %v1058_v11, %v1813_v47 }
 0x3c2   :  { %1223 = vperm.xlu0 %1566, %v1056_v55   ;;  %1143 = vperm.xlu1 %1558, %v1056_v55  }
 0x3c6   :  { %1569 = vset.pattern.permute.xlu0 %v1667_v15  ;;  %1559 = vset.pattern.permute.xlu1 %v1676_v24 }
 0x3c7   :  { %1253 = vperm.xlu0 %1569, %v1056_v55   ;;  %1153 = vperm.xlu1 %1559, %v1056_v55  }
 0x3cb   :  { %1572 = vset.pattern.permute.xlu0 %v1669_v17  ;;  %1561 = vset.pattern.permute.xlu1 %v1678_v26 }
 0x3cc   :  { %1283 = vperm.xlu0 %1572, %v1056_v55   ;;  %1173 = vperm.xlu1 %1561, %v1056_v55  }
 0x3d0   :  { %1575 = vset.pattern.permute.xlu0 %v1671_v19  ;;  %1562 = vset.pattern.permute.xlu1 %v1679_v27 }
 0x3d1   :  { %1313 = vperm.xlu0 %1575, %v1056_v55   ;;  %1183 = vperm.xlu1 %1562, %v1056_v55  }
 0x3d5   :  { %1578 = vset.pattern.permute.xlu0 %v1673_v21  ;;  %1564 = vset.pattern.permute.xlu1 %v1680_v28  ;;  %v1099_v21 = vrot.slane %v1058_v11, %v1821_v54 }
 0x3d6   :  { %1343 = vperm.xlu0 %1578, %v1056_v55   ;;  %1203 = vperm.xlu1 %1564, %v1056_v55  }
 0x3da   :  { %1581 = vset.pattern.permute.xlu0 %v2087_v45  ;;  %1565 = vset.pattern.permute.xlu1 %v1681_v29 }
 0x3db   :  { %1373 = vperm.xlu0 %1581, %v1056_v55   ;;  %1213 = vperm.xlu1 %1565, %v1056_v55  }
 0x3df   :  { %1567 = vset.pattern.permute.xlu1 %v1682_v30  ;;  %v1119_v30 = vrot.slane %v1058_v11, %v1827_v63 }
 0x3e0   :  { %1233 = vperm.xlu1 %1567, %v1056_v55  }
 0x3e4   :  { %1568 = vset.pattern.permute.xlu1 %v1683_v31 }
 0x3e5   :  { %1243 = vperm.xlu1 %1568, %v1056_v55  }
 0x3e9   :  { %1570 = vset.pattern.permute.xlu1 %v1684_v32 }
 0x3ea   :  { %1263 = vperm.xlu1 %1570, %v1056_v55  }
 0x3ee   :  { %1571 = vset.pattern.permute.xlu1 %v1685_v33 }
 0x3ef   :  { %1273 = vperm.xlu1 %1571, %v1056_v55  }
 0x3f3   :  { %1573 = vset.pattern.permute.xlu1 %v1686_v34 }
 0x3f4   :  { %1293 = vperm.xlu1 %1573, %v1056_v55  }
 0x3f8   :  { %1574 = vset.pattern.permute.xlu1 %v1687_v35  ;;  %v1129_v35 = vrot.slane %v1058_v11, %v1830_v1 }
 0x3f9   :  { %1303 = vperm.xlu1 %1574, %v1056_v55  }
 0x3fd   :  { %1576 = vset.pattern.permute.xlu1 %v1688_v36 }
 0x3fe   :  { %1323 = vperm.xlu1 %1576, %v1056_v55  }
 0x402   :  { %1577 = vset.pattern.permute.xlu1 %v1689_v37  ;;  %v1139_v37 = vrot.slane %v1058_v11, %v1833_v8 }
 0x403   :  { %1333 = vperm.xlu1 %1577, %v1056_v55  }
 0x407   :  { %1579 = vset.pattern.permute.xlu1 %v1690_v38 }
 0x408   :  { %1353 = vperm.xlu1 %1579, %v1056_v55  }
 0x40c   :  { %1580 = vset.pattern.permute.xlu1 %v2086_v6 }
 0x40d   :  { %1363 = vperm.xlu1 %1580, %v1056_v55   ;;  %v1209_v55 = vrot.slane %v1059_v9, %v1830_v1 }
 0x428   :  { %v1065_v12 = vpop.permute.xlu1 %1064  ;;  %v1074_v15 = vpop.permute.xlu0 %1073 }
 0x429   :  { %v1080_v17 = vmul.f32 %v1079_v13, %v1074_v15  ;;  %v1071_v18 = vmul.f32 %v1070_v14, %v1065_v12  ;;  %v1219_v15 = vrot.slane %v1059_v9, %v1833_v8 }
 0x42b   :  { %v1081_v22 = vadd.f32 %v1080_v17, %v1071_v18 }
 0x42d   :  { %v1084_v19 = vpop.permute.xlu1 %1083  ;;  %v1104_v28 = vpop.permute.xlu0 %1103 }
 0x42e   :  { %v1090_v20 = vmul.f32 %v1089_v16, %v1084_v19  ;;  %v1110_v31 = vmul.f32 %v1109_v25, %v1104_v28  ;;  %v1060_v16 = vld [vmem:[#allocation5 + $0x70] sm:$0xff] }
 0x42f   :  { %v1229_v18 = vrot.slane %v1060_v16, %v1815_v48  ;;  %v1279_v9 = vrot.slane %v1060_v16, %v1827_v63 }
 0x430   :  { %v1091_v26 = vadd.f32 %v1090_v20, %v1081_v22 }
 0x432   :  { %v1094_v24 = vpop.permute.xlu1 %1093  ;;  %v1134_v45 = vpop.permute.xlu0 %1133 }
 0x433   :  { %v1100_v27 = vmul.f32 %v1099_v21, %v1094_v24  ;;  %v1140_v23 = vmul.f32 %v1139_v37, %v1134_v45  ;;  %v1239_v24 = vrot.slane %v1060_v16, %v1813_v47 }
 0x435   :  { %v1101_v29 = vadd.f32 %v1100_v27, %v1091_v26 }
 0x437   :  { %v1114_v32 = vpop.permute.xlu1 %1113  ;;  %v1111_v33 = vadd.f32 %v1110_v31, %v1101_v29  ;;  %v1164_v43 = vpop.permute.xlu0 %1163  ;;  %v1249_v29 = vrot.slane %v1060_v16, %v1817_v51  ;;  %v1259_v31 = vrot.slane %v1060_v16, %v1821_v54 }
 0x438   :  { %v1120_v34 = vmul.f32 %v1119_v30, %v1114_v32  ;;  %v1170_v46 = vmul.f32 %v1169_v42, %v1164_v43 }
 0x43a   :  { %v1121_v38 = vadd.f32 %v1120_v34, %v1111_v33 }
 0x43c   :  { %v1124_v36 = vpop.permute.xlu1 %1123  ;;  %v1194_v41 = vpop.permute.xlu0 %1193 }
 0x43d   :  { %v1130_v6 = vmul.f32 %v1129_v35, %v1124_v36  ;;  %v1200_v11 = vmul.f32 %v1199_v44, %v1194_v41  ;;  %v1269_v36 = vrot.slane %v1060_v16, %v1824_v57 }
 0x43f   :  { %v1131_v62 = vadd.f32 %v1130_v6, %v1121_v38 }
 0x441   :  { %v1144_v2 = vpop.permute.xlu1 %1143  ;;  %v1141_v53 = vadd.f32 %v1140_v23, %v1131_v62  ;;  %v1224_v21 = vpop.permute.xlu0 %1223 }
 0x442   :  { %v1150_v59 = vmul.f32 %v1149_v52, %v1144_v2  ;;  %v1230_v25 = vmul.f32 %v1229_v18, %v1224_v21  ;;  %v1289_v52 = vrot.slane %v1060_v16, %v1830_v1 }
 0x444   :  { %v1151_v61 = vadd.f32 %v1150_v59, %v1141_v53 }
 0x446   :  { %v1154_v60 = vpop.permute.xlu1 %1153  ;;  %v1254_v34 = vpop.permute.xlu0 %1253 }
 0x447   :  { %v1160_v3 = vmul.f32 %v1159_v4, %v1154_v60  ;;  %v1260_v37 = vmul.f32 %v1259_v31, %v1254_v34  ;;  %v1299_v4 = vrot.slane %v1060_v16, %v1833_v8 }
 0x449   :  { %v1161_v0 = vadd.f32 %v1160_v3, %v1151_v61  ;;  %v1061_v61 = vld [vmem:[#allocation5 + $0x78] sm:$0xff] }
 0x44b   :  { %v1174_v50 = vpop.permute.xlu1 %1173  ;;  %v1171_v58 = vadd.f32 %v1170_v46, %v1161_v0  ;;  %v1284_v53 = vpop.permute.xlu0 %1283  ;;  %v1309_v0 = vrot.slane %v1061_v61, %v1815_v48  ;;  %v1319_v46 = vrot.slane %v1061_v61, %v1813_v47  ;;  %v1359_v47 = vrot.slane %v1061_v61, %v1827_v63 }
 0x44c   :  { %v1180_v49 = vmul.f32 %v1179_v5, %v1174_v50  ;;  %v1290_v60 = vmul.f32 %v1289_v52, %v1284_v53 }
 0x44e   :  { %v1181_v10 = vadd.f32 %v1180_v49, %v1171_v58 }
 0x450   :  { %v1184_v39 = vpop.permute.xlu1 %1183  ;;  %v1314_v49 = vpop.permute.xlu0 %1313 }
 0x451   :  { %v1190_v56 = vmul.f32 %v1189_v7, %v1184_v39  ;;  %v1329_v39 = vrot.slane %v1061_v61, %v1817_v51  ;;  %v1320_v44 = vmul.f32 %v1319_v46, %v1314_v49  ;;  %v1369_v51 = vrot.slane %v1061_v61, %v1830_v1 }
 0x453   :  { %v1191_v40 = vadd.f32 %v1190_v56, %v1181_v10 }
 0x455   :  { %v1204_v12 = vpop.permute.xlu1 %1203  ;;  %v1201_v13 = vadd.f32 %v1200_v11, %v1191_v40  ;;  %v1339_v40 = vrot.slane %v1061_v61, %v1821_v54  ;;  %v1349_v11 = vrot.slane %v1061_v61, %v1824_v57 }
 0x456   :  { %v1210_v14 = vmul.f32 %v1209_v55, %v1204_v12 }
 0x458   :  { %v1211_v19 = vadd.f32 %v1210_v14, %v1201_v13  ;;  %v1344_v13 = vpop.permute.xlu0 %1343 }
 0x45a   :  { %v1214_v17 = vpop.permute.xlu1 %1213 }
 0x45b   :  { %v1220_v20 = vmul.f32 %v1219_v15, %v1214_v17  ;;  %v1350_v15 = vmul.f32 %v1349_v11, %v1344_v13 }
 0x45d   :  { %v1221_v22 = vadd.f32 %v1220_v20, %v1211_v19  ;;  %v1379_v19 = vrot.slane %v1061_v61, %v1833_v8  ;;  %v1374_v20 = vpop.permute.xlu0 %1373 }
 0x45f   :  { %v1234_v26 = vpop.permute.xlu1 %1233  ;;  %v1231_v27 = vadd.f32 %v1230_v25, %v1221_v22  ;;  %v1416_v25 = vld [vmem:[%s2078_s2 + $0x3] ss:$0 sm:$0xff] }
 0x460   :  { %v1240_v28 = vmul.f32 %v1239_v24, %v1234_v26  ;;  %v1380_v24 = vmul.f32 %v1379_v19, %v1374_v20 }
 0x462   :  { %v1241_v32 = vadd.f32 %v1240_v28, %v1231_v27 }
 0x464   :  { %v1244_v30 = vpop.permute.xlu1 %1243 }
 0x465   :  { %v1250_v33 = vmul.f32 %v1249_v29, %v1244_v30 }
 0x467   :  { %v1251_v35 = vadd.f32 %v1250_v33, %v1241_v32 }
 0x469   :  { %v1264_v38 = vpop.permute.xlu1 %1263  ;;  %v1261_v6 = vadd.f32 %v1260_v37, %v1251_v35 }
 0x46a   :  { %v1270_v45 = vmul.f32 %v1269_v36, %v1264_v38 }
 0x46c   :  { %v1271_v23 = vadd.f32 %v1270_v45, %v1261_v6 }
 0x46e   :  { %v1274_v62 = vpop.permute.xlu1 %1273 }
 0x46f   :  { %v1280_v2 = vmul.f32 %v1279_v9, %v1274_v62 }
 0x471   :  { %v1281_v59 = vadd.f32 %v1280_v2, %v1271_v23 }
 0x473   :  { %v1294_v42 = vpop.permute.xlu1 %1293  ;;  %v1291_v3 = vadd.f32 %v1290_v60, %v1281_v59 }
 0x474   :  { %v1300_v43 = vmul.f32 %v1299_v4, %v1294_v42 }
 0x476   :  { %v1301_v50 = vadd.f32 %v1300_v43, %v1291_v3 }
 0x478   :  { %v1304_v5 = vpop.permute.xlu1 %1303 }
 0x479   :  { %v1310_v58 = vmul.f32 %v1309_v0, %v1304_v5 }
 0x47b   :  { %v1311_v7 = vadd.f32 %v1310_v58, %v1301_v50 }
 0x47d   :  { %v1324_v10 = vpop.permute.xlu1 %1323  ;;  %v1321_v56 = vadd.f32 %v1320_v44, %v1311_v7 }
 0x47e   :  { %v1330_v41 = vmul.f32 %v1329_v39, %v1324_v10 }
 0x480   :  { %v1331_v12 = vadd.f32 %v1330_v41, %v1321_v56 }
 0x482   :  { %v1334_v55 = vpop.permute.xlu1 %1333 }
 0x483   :  { %v1340_v48 = vmul.f32 %v1339_v40, %v1334_v55 }
 0x485   :  { %v1341_v14 = vadd.f32 %v1340_v48, %v1331_v12 }
 0x487   :  { %v1354_v16 = vpop.permute.xlu1 %1353  ;;  %v1351_v17 = vadd.f32 %v1350_v15, %v1341_v14 }
 0x488   :  { %v1360_v18 = vmul.f32 %v1359_v47, %v1354_v16 }
 0x48a   :  { %v1361_v54 = vadd.f32 %v1360_v18, %v1351_v17 }
 0x48c   :  { %v1364_v21 = vpop.permute.xlu1 %1363 }
 0x48d   :  { %v1370_v22 = vmul.f32 %v1369_v51, %v1364_v21 }
 0x48f   :  { %v1371_v57 = vadd.f32 %v1370_v22, %v1361_v54 }
 0x491   :  { %v1381_v26 = vadd.f32 %v1380_v24, %v1371_v57 }
 0x493   :  { %v1390_v63 = vadd.f32 %v1416_v25, %v1381_v26 }
 0x495   :  { %v1391_v27 = vmul.f32 0.2, %v1390_v63 }
 0x497   :  { %v1392_v28 = vmax.f32 %v1390_v63, %v1391_v27 }
 0x499   :  { %1393 = vst.msk [vmem:[#allocation7] sm:$0xff] %vm43_vm0, %v1392_v28 }
 0x49a   :  { %1639 = shalt.err (!%p1636_p6)
}
 0x49b   :  { %s1640_s2 = scalar_lea.hbm %s2079_s3, 128 }
 0x49c   :  { %p1641_p7 = scmp.ne.s32.totalorder %s2079_s3, %s1640_s2  ;;  %p1644_p8 = scmp.lt.u32.totalorder %s1640_s2, %s2079_s3 }
 0x49e   :  { %p1646_p9 = pnand %p1644_p8, %p1641_p7 }
 0x4a0   :  { %1649 = shalt.err (!%p1646_p9)
}
 0x4a1   :  { %1403 = dma.vmem_to_hbm [thread:$0]  %s1401_s18, 128, %s2079_s3, [#allocation4]  }
 0x4a2   :  { %1654 = dma.done.wait [#allocation4], 128  }
 0x4a3   :  { %1655 = vsyncadd [#allocation4], 4294967168 }
 0x4a4   :  { %1407 = vsyncpa [#allocation3], 1 }
 0x4a5   :  { %1408 = vsyncpa [#allocation6], 1 }
 0x4a6   :  { %1409 = vsyncpa [#allocation4], 1 }

// kernel: tpu_custom_call.1
= control target key start
LH: loop header
LB: loop body
LE: loop exit
PB: predicated region body
PF: predicated region fallthrough
CT: control target
= control target key end

     0   :  { %8 = vsyncpa [#allocation3], 0  ;;  %s2076_s0 = inlined_call_operand.hbm [shape: f32[8,32], index: 0, kind: input, shape index: {}]   ;;  %s2077_s1 = inlined_call_operand.hbm [shape: f32[4,32,32], index: 1, kind: input, shape index: {}]   ;;  %s2078_s2 = inlined_call_operand.vmem [shape: f32[4,1,32], index: 2, kind: input, shape index: {}]   ;;  %s2079_s3 = inlined_call_operand.hbm [shape: f32[8,32], index: 3, kind: output, shape index: {}]  }
   0x1   :  { %9 = vsyncpa [#allocation6], 0 }
   0x2   :  { %10 = vsyncpa [#allocation4], 0  ;;  %s1656_s12 = smov [#allocation2]   ;;  %s1657_s14 = smov [#allocation5]  }
   0x3   :  { %s17_s13 = sshll.u32 %s1656_s12, 4  ;;  %s26_s15 = sshll.u32 %s1657_s14, 4  ;;  %s18_s13 = int_to_ptr.vmem [resolvable:$true] %s17_s13  ;;  %s1713_s15 = int_to_ptr.vmem [resolvable:$true] %s26_s15 }
   0x4   :  { %s1584_s18 = scalar_lea.hbm %s2076_s0, 128 }
   0x5   :  { %p1585_p0 = scmp.ne.s32.totalorder %s2076_s0, %s1584_s18  ;;  %p1588_p1 = scmp.lt.u32.totalorder %s1584_s18, %s2076_s0 }
   0x7   :  { %p1590_p2 = pnand %p1588_p1, %p1585_p0 }
   0x9   :  { %1593 = shalt.err (!%p1590_p2)
}
   0xa   :  { %s1594_s23 = scalar_lea.vmem %s18_s13, 128  ;;  %p1599_p4 = scmp.lt.s32.totalorder %s18_s13, %s18_s13 }
   0xb   :  { %p1595_p3 = scmp.ne.s32.totalorder %s18_s13, %s1594_s23  ;;  %p1600_p5 = scmp.lt.s32.totalorder %s1594_s23, %s1594_s23 }
   0xd   :  { %p1601_p6 = por %p1600_p5, %p1599_p4 }
   0xf   :  { %p1602_p7 = pnand %p1601_p6, %p1595_p3 }
  0x11   :  { %1605 = shalt.err (!%p1602_p7)
}
  0x12   :  { %20 = dma.hbm_to_vmem [thread:$0]  %s2076_s0, 128, %s18_s13, [#allocation3]  }
  0x13   :  { %s1606_s28 = scalar_lea.hbm %s2077_s1, 2048 }
  0x14   :  { %p1607_p8 = scmp.ne.s32.totalorder %s2077_s1, %s1606_s28  ;;  %p1610_p9 = scmp.lt.u32.totalorder %s1606_s28, %s2077_s1 }
  0x16   :  { %p1612_p10 = pnand %p1610_p9, %p1607_p8 }
  0x18   :  { %1615 = shalt.err (!%p1612_p10)
}
  0x19   :  { %s1616_s6 = scalar_lea.vmem %s1713_s15, 2048  ;;  %p1621_p12 = scmp.lt.s32.totalorder %s1713_s15, %s1713_s15 }
  0x1a   :  { %p1617_p11 = scmp.ne.s32.totalorder %s1713_s15, %s1616_s6  ;;  %p1622_p13 = scmp.lt.s32.totalorder %s1616_s6, %s1616_s6 }
  0x1c   :  { %p1623_p0 = por %p1622_p13, %p1621_p12 }
  0x1e   :  { %p1624_p1 = pnand %p1623_p0, %p1617_p11 }
  0x20   :  { %1627 = shalt.err (!%p1624_p1)
}
  0x21   :  { %s1658_s0 = smov 128   ;;  %s1659_s7 = smov 8  }
  0x22   :  { %32 = dma.hbm_to_vmem [thread:$0]  %s2077_s1, 2048, %s1713_s15, [#allocation6], %s1658_s0, %s1658_s0, %s1659_s7  }
  0x23   :  { %1650 = dma.done.wait [#allocation3], 128  }
  0x24   :  { %1651 = vsyncadd [#allocation3], 4294967168 }
  0x25   :  { %1652 = dma.done.wait [#allocation6], 2048  }
  0x26   :  { %1653 = vsyncadd [#allocation6], 4294965248  ;;  %v41_v0 = vld [vmem:[#allocation2] sm:$0xff]  ;;  %vm43_vm0 = vcmask 261120   ;;  %v1660_v3 = vmov 1   ;;  %v1661_v4 = vmov 0   ;;  %v60_v44 = vlaneseq }
  0x27   :  { %v42_v1 = vmul.f32 %v41_v0, %v41_v0  ;;  %1455 = vset.pattern.permute.xlu1 %v1660_v3  ;;  %1454 = vset.pattern.permute.xlu0 %v1661_v4  ;;  %v2080_v10 = vmov 2   ;;  %v1663_v11 = vmov 13   ;;  %v1664_v12 = vmov 3   ;;  %v51_v49 = vld [vmem:[#allocation5] sm:$0xff]  ;;  %s1692_s17 = smov [#allocation7]  }
  0x28   :  { %v1665_v13 = vmov 16   ;;  %v1666_v14 = vmov 4   ;;  %v1667_v15 = vmov 19   ;;  %v1668_v16 = vmov 5   ;;  %s1400_s18 = sshll.u32 %s1692_s17, 4  ;;  %s1401_s18 = int_to_ptr.vmem [resolvable:$true] %s1400_s18 }
  0x29   :  { %v44_v2 = vsel %vm43_vm0, %v42_v1, 0.0  ;;  %v1669_v17 = vmov 22   ;;  %v1670_v18 = vmov 6   ;;  %v1671_v19 = vmov 25   ;;  %s1628_s19 = scalar_lea.vmem %s1401_s18, 128  ;;  %p1633_p3 = scmp.lt.s32.totalorder %s1401_s18, %s1401_s18 }
  0x2a   :  { %45 = vadd.xlane.f32.xlu0 %v44_v2  ;;  %v1672_v20 = vmov 7   ;;  %v1673_v21 = vmov 28   ;;  %v1674_v22 = vmov 8   ;;  %v2082_v23 = vmov 31   ;;  %p1629_p2 = scmp.ne.s32.totalorder %s1401_s18, %s1628_s19  ;;  %p1634_p4 = scmp.lt.s32.totalorder %s1628_s19, %s1628_s19 }
  0x2b   :  { %v1676_v24 = vmov 9   ;;  %v1677_v25 = vmov 10   ;;  %v1678_v26 = vmov 11   ;;  %v1679_v27 = vmov 12  }
  0x2c   :  { %v1680_v28 = vmov 14   ;;  %v1681_v29 = vmov 15   ;;  %v1682_v30 = vmov 17   ;;  %v1683_v31 = vmov 18   ;;  %p1635_p5 = por %p1634_p4, %p1633_p3 }
  0x2d   :  { %v1684_v32 = vmov 20   ;;  %v1685_v33 = vmov 21   ;;  %v1686_v34 = vmov 23   ;;  %v1687_v35 = vmov 24  }
  0x2e   :  { %v1688_v36 = vmov 26   ;;  %v1689_v37 = vmov 27   ;;  %v1690_v38 = vmov 29   ;;  %v2084_v39 = vmov 30   ;;  %p1636_p6 = pnand %p1635_p5, %p1629_p2 }
  0x2f   :  { %v61_v45 = vshrl.u32 %v60_v44, 7 }
  0x31   :  { %v1813_v47 = vsub.s32 1, %v61_v45  ;;  %v1815_v48 = vsub.s32 0, %v61_v45  ;;  %v1817_v51 = vsub.s32 2, %v61_v45  ;;  %v1821_v54 = vsub.s32 3, %v61_v45 }
  0x32   :  { %v1824_v57 = vsub.s32 4, %v61_v45  ;;  %v1827_v63 = vsub.s32 5, %v61_v45  ;;  %v1830_v1 = vsub.s32 6, %v61_v45 }
  0x33   :  { %v72_v52 = vrot.slane %v51_v49, %v1813_v47  ;;  %v63_v53 = vrot.slane %v51_v49, %v1815_v48  ;;  %v82_v56 = vrot.slane %v51_v49, %v1817_v51  ;;  %v92_v61 = vrot.slane %v51_v49, %v1821_v54 }
  0xb7   :  { %v46_v5 = vpop.xlane.xlu0 %45 }
  0xb8   :  { %v47_v6 = vmul.f32 0.03125, %v46_v5 }
  0xba   :  { %v48_v7 = vadd.f32 1e-08, %v47_v6 }
  0xbc   :  { %1582 = vrsqrt.f32 %v48_v7  ;;  %v112_v7 = vrot.slane %v51_v49, %v1827_v63 }
  0xc6   :  { %v1583_v8 = vpop.eup %1582 }
  0xc7   :  { %v1747_v9 = vmul.f32 %v1583_v8, %v41_v0  ;;  %v102_v0 = vrot.slane %v51_v49, %v1824_v57  ;;  %v1833_v8 = vsub.s32 7, %v61_v45 }
  0xc9   :  { %66 = vperm.xlu1 %1455, %v1747_v9   ;;  %57 = vperm.xlu0 %1454, %v1747_v9  }
  0xcd   :  { %1456 = vset.pattern.permute.xlu1 %v2080_v10  ;;  %1467 = vset.pattern.permute.xlu0 %v1663_v11 }
  0xce   :  { %76 = vperm.xlu1 %1456, %v1747_v9   ;;  %186 = vperm.xlu0 %1467, %v1747_v9  }
  0xd2   :  { %1457 = vset.pattern.permute.xlu1 %v1664_v12  ;;  %1470 = vset.pattern.permute.xlu0 %v1665_v13 }
  0xd3   :  { %86 = vperm.xlu1 %1457, %v1747_v9   ;;  %216 = vperm.xlu0 %1470, %v1747_v9  }
  0xd7   :  { %1458 = vset.pattern.permute.xlu1 %v1666_v14  ;;  %1473 = vset.pattern.permute.xlu0 %v1667_v15 }
  0xd8   :  { %96 = vperm.xlu1 %1458, %v1747_v9   ;;  %246 = vperm.xlu0 %1473, %v1747_v9  }
  0xdc   :  { %1459 = vset.pattern.permute.xlu1 %v1668_v16  ;;  %1476 = vset.pattern.permute.xlu0 %v1669_v17 }
  0xdd   :  { %106 = vperm.xlu1 %1459, %v1747_v9   ;;  %276 = vperm.xlu0 %1476, %v1747_v9  }
  0xe1   :  { %1460 = vset.pattern.permute.xlu1 %v1670_v18  ;;  %1479 = vset.pattern.permute.xlu0 %v1671_v19 }
  0xe2   :  { %116 = vperm.xlu1 %1460, %v1747_v9   ;;  %306 = vperm.xlu0 %1479, %v1747_v9  }
  0xe6   :  { %1461 = vset.pattern.permute.xlu1 %v1672_v20  ;;  %1482 = vset.pattern.permute.xlu0 %v1673_v21 }
  0xe7   :  { %126 = vperm.xlu1 %1461, %v1747_v9   ;;  %336 = vperm.xlu0 %1482, %v1747_v9  }
  0xeb   :  { %1462 = vset.pattern.permute.xlu1 %v1674_v22  ;;  %1485 = vset.pattern.permute.xlu0 %v2082_v23 }
  0xec   :  { %136 = vperm.xlu1 %1462, %v1747_v9   ;;  %366 = vperm.xlu0 %1485, %v1747_v9  }
  0xf0   :  { %1463 = vset.pattern.permute.xlu1 %v1676_v24  ;;  %1488 = vset.pattern.permute.xlu0 %v2080_v10 }
  0xf1   :  { %146 = vperm.xlu1 %1463, %v1747_v9  }
  0xf5   :  { %1464 = vset.pattern.permute.xlu1 %v1677_v25 }
  0xf6   :  { %156 = vperm.xlu1 %1464, %v1747_v9  }
  0xfa   :  { %1465 = vset.pattern.permute.xlu1 %v1678_v26 }
  0xfb   :  { %166 = vperm.xlu1 %1465, %v1747_v9  }
  0xff   :  { %1466 = vset.pattern.permute.xlu1 %v1679_v27 }
 0x100   :  { %176 = vperm.xlu1 %1466, %v1747_v9  }
 0x104   :  { %1468 = vset.pattern.permute.xlu1 %v1680_v28 }
 0x105   :  { %196 = vperm.xlu1 %1468, %v1747_v9  }
 0x109   :  { %1469 = vset.pattern.permute.xlu1 %v1681_v29 }
 0x10a   :  { %206 = vperm.xlu1 %1469, %v1747_v9  }
 0x10e   :  { %1471 = vset.pattern.permute.xlu1 %v1682_v30 }
 0x10f   :  { %226 = vperm.xlu1 %1471, %v1747_v9  }
 0x113   :  { %1472 = vset.pattern.permute.xlu1 %v1683_v31 }
 0x114   :  { %236 = vperm.xlu1 %1472, %v1747_v9  }
 0x118   :  { %1474 = vset.pattern.permute.xlu1 %v1684_v32 }
 0x119   :  { %256 = vperm.xlu1 %1474, %v1747_v9  }
 0x11d   :  { %1475 = vset.pattern.permute.xlu1 %v1685_v33 }
 0x11e   :  { %266 = vperm.xlu1 %1475, %v1747_v9  }
 0x122   :  { %1477 = vset.pattern.permute.xlu1 %v1686_v34 }
 0x123   :  { %286 = vperm.xlu1 %1477, %v1747_v9  }
 0x127   :  { %1478 = vset.pattern.permute.xlu1 %v1687_v35 }
 0x128   :  { %296 = vperm.xlu1 %1478, %v1747_v9  }
 0x12c   :  { %1480 = vset.pattern.permute.xlu1 %v1688_v36 }
 0x12d   :  { %316 = vperm.xlu1 %1480, %v1747_v9  }
 0x131   :  { %1481 = vset.pattern.permute.xlu1 %v1689_v37 }
 0x132   :  { %326 = vperm.xlu1 %1481, %v1747_v9  }
 0x136   :  { %1483 = vset.pattern.permute.xlu1 %v1690_v38 }
 0x137   :  { %346 = vperm.xlu1 %1483, %v1747_v9  }
 0x13b   :  { %1484 = vset.pattern.permute.xlu1 %v2084_v39 }
 0x13c   :  { %356 = vperm.xlu1 %1484, %v1747_v9  }
 0x140   :  { %1486 = vset.pattern.permute.xlu1 %v1661_v4 }
 0x148   :  { %v67_v40 = vpop.permute.xlu1 %66  ;;  %v58_v55 = vpop.permute.xlu0 %57 }
 0x149   :  { %v73_v59 = vmul.f32 %v72_v52, %v67_v40  ;;  %v64_v60 = vmul.f32 %v63_v53, %v58_v55  ;;  %v122_v40 = vrot.slane %v51_v49, %v1830_v1 }
 0x14b   :  { %v74_v5 = vadd.f32 %v73_v59, %v64_v60 }
 0x14d   :  { %v77_v41 = vpop.permute.xlu1 %76 }
 0x14e   :  { %v83_v62 = vmul.f32 %v82_v56, %v77_v41  ;;  %v132_v41 = vrot.slane %v51_v49, %v1833_v8  ;;  %v52_v56 = vld [vmem:[#allocation5 + $0x8] sm:$0xff] }
 0x14f   :  { %v142_v39 = vrot.slane %v52_v56, %v1815_v48  ;;  %v152_v60 = vrot.slane %v52_v56, %v1813_v47 }
 0x150   :  { %v84_v9 = vadd.f32 %v83_v62, %v74_v5 }
 0x152   :  { %v87_v42 = vpop.permute.xlu1 %86 }
 0x153   :  { %v93_v6 = vmul.f32 %v92_v61, %v87_v42 }
 0x155   :  { %v94_v52 = vadd.f32 %v93_v6, %v84_v9 }
 0x157   :  { %v97_v43 = vpop.permute.xlu1 %96 }
 0x158   :  { %v103_v44 = vmul.f32 %v102_v0, %v97_v43  ;;  %v162_v43 = vrot.slane %v52_v56, %v1817_v51 }
 0x15a   :  { %v104_v10 = vadd.f32 %v103_v44, %v94_v52  ;;  %v182_v44 = vrot.slane %v52_v56, %v1824_v57 }
 0x15c   :  { %v107_v46 = vpop.permute.xlu1 %106 }
 0x15d   :  { %v113_v53 = vmul.f32 %v112_v7, %v107_v46  ;;  %v172_v46 = vrot.slane %v52_v56, %v1821_v54 }
 0x15f   :  { %v114_v59 = vadd.f32 %v113_v53, %v104_v10  ;;  %v202_v53 = vrot.slane %v52_v56, %v1830_v1 }
 0x161   :  { %v117_v50 = vpop.permute.xlu1 %116 }
 0x162   :  { %v123_v23 = vmul.f32 %v122_v40, %v117_v50  ;;  %v192_v40 = vrot.slane %v52_v56, %v1827_v63 }
 0x164   :  { %v124_v61 = vadd.f32 %v123_v23, %v114_v59 }
 0x166   :  { %v127_v58 = vpop.permute.xlu1 %126 }
 0x167   :  { %v133_v42 = vmul.f32 %v132_v41, %v127_v58 }
 0x169   :  { %v134_v0 = vadd.f32 %v133_v42, %v124_v61 }
 0x16b   :  { %v137_v2 = vpop.permute.xlu1 %136 }
 0x16c   :  { %v143_v62 = vmul.f32 %v142_v39, %v137_v2  ;;  %v187_v39 = vpop.permute.xlu0 %186 }
 0x16d   :  { %v193_v41 = vmul.f32 %v192_v40, %v187_v39 }
 0x16e   :  { %v144_v49 = vadd.f32 %v143_v62, %v134_v0 }
 0x170   :  { %v147_v55 = vpop.permute.xlu1 %146 }
 0x171   :  { %v153_v5 = vmul.f32 %v152_v60, %v147_v55  ;;  %v212_v60 = vrot.slane %v52_v56, %v1833_v8 }
 0x173   :  { %v154_v9 = vadd.f32 %v153_v5, %v144_v49  ;;  %v217_v5 = vpop.permute.xlu0 %216 }
 0x175   :  { %v157_v45 = vpop.permute.xlu1 %156 }
 0x176   :  { %v163_v6 = vmul.f32 %v162_v43, %v157_v45  ;;  %v53_v45 = vld [vmem:[#allocation5 + $0x10] sm:$0xff] }
 0x177   :  { %v222_v62 = vrot.slane %v53_v45, %v1815_v48  ;;  %v232_v49 = vrot.slane %v53_v45, %v1813_v47  ;;  %v262_v39 = vrot.slane %v53_v45, %v1824_v57 }
 0x178   :  { %v164_v10 = vadd.f32 %v163_v6, %v154_v9 }
 0x179   :  { %v223_v6 = vmul.f32 %v222_v62, %v217_v5  ;;  %v292_v5 = vrot.slane %v53_v45, %v1833_v8 }
 0x17a   :  { %v167_v7 = vpop.permute.xlu1 %166 }
 0x17b   :  { %v173_v50 = vmul.f32 %v172_v46, %v167_v7 }
 0x17d   :  { %v174_v52 = vadd.f32 %v173_v50, %v164_v10 }
 0x17f   :  { %v177_v58 = vpop.permute.xlu1 %176 }
 0x180   :  { %v183_v23 = vmul.f32 %v182_v44, %v177_v58  ;;  %v242_v44 = vrot.slane %v53_v45, %v1817_v51  ;;  %v252_v58 = vrot.slane %v53_v45, %v1821_v54 }
 0x182   :  { %v184_v2 = vadd.f32 %v183_v23, %v174_v52  ;;  %v247_v52 = vpop.permute.xlu0 %246 }
 0x184   :  { %v197_v55 = vpop.permute.xlu1 %196  ;;  %v194_v59 = vadd.f32 %v193_v41, %v184_v2  ;;  %v253_v2 = vmul.f32 %v252_v58, %v247_v52 }
 0x185   :  { %v203_v42 = vmul.f32 %v202_v53, %v197_v55 }
 0x187   :  { %v204_v43 = vadd.f32 %v203_v42, %v194_v59  ;;  %v272_v59 = vrot.slane %v53_v45, %v1827_v63 }
 0x189   :  { %v207_v61 = vpop.permute.xlu1 %206 }
 0x18a   :  { %v213_v0 = vmul.f32 %v212_v60, %v207_v61  ;;  %v282_v60 = vrot.slane %v53_v45, %v1830_v1 }
 0x18c   :  { %v214_v46 = vadd.f32 %v213_v0, %v204_v43  ;;  %v277_v43 = vpop.permute.xlu0 %276 }
 0x18e   :  { %v227_v7 = vpop.permute.xlu1 %226  ;;  %v224_v9 = vadd.f32 %v223_v6, %v214_v46  ;;  %v283_v46 = vmul.f32 %v282_v60, %v277_v43  ;;  %v54_v6 = vld [vmem:[#allocation5 + $0x18] sm:$0xff] }
 0x18f   :  { %v233_v50 = vmul.f32 %v232_v49, %v227_v7  ;;  %v352_v43 = vrot.slane %v54_v6, %v1827_v63 }
 0x191   :  { %v234_v56 = vadd.f32 %v233_v50, %v224_v9  ;;  %v302_v50 = vrot.slane %v54_v6, %v1815_v48 }
 0x193   :  { %v237_v10 = vpop.permute.xlu1 %236 }
 0x194   :  { %v243_v40 = vmul.f32 %v242_v44, %v237_v10  ;;  %v312_v10 = vrot.slane %v54_v6, %v1813_v47 }
 0x196   :  { %v244_v23 = vadd.f32 %v243_v40, %v234_v56  ;;  %v307_v40 = vpop.permute.xlu0 %306 }
 0x198   :  { %v257_v53 = vpop.permute.xlu1 %256  ;;  %v254_v41 = vadd.f32 %v253_v2, %v244_v23  ;;  %v322_v23 = vrot.slane %v54_v6, %v1817_v51 }
 0x199   :  { %v263_v55 = vmul.f32 %v262_v39, %v257_v53  ;;  %v313_v39 = vmul.f32 %v312_v10, %v307_v40 }
 0x19b   :  { %v264_v61 = vadd.f32 %v263_v55, %v254_v41  ;;  %v332_v41 = vrot.slane %v54_v6, %v1821_v54 }
 0x19d   :  { %v267_v42 = vpop.permute.xlu1 %266 }
 0x19e   :  { %v273_v62 = vmul.f32 %v272_v59, %v267_v42  ;;  %v342_v59 = vrot.slane %v54_v6, %v1824_v57 }
 0x1a0   :  { %v274_v0 = vadd.f32 %v273_v62, %v264_v61  ;;  %v337_v61 = vpop.permute.xlu0 %336 }
 0x1a2   :  { %v287_v49 = vpop.permute.xlu1 %286  ;;  %v284_v7 = vadd.f32 %v283_v46, %v274_v0  ;;  %v343_v0 = vmul.f32 %v342_v59, %v337_v61 }
 0x1a3   :  { %v293_v9 = vmul.f32 %v292_v5, %v287_v49 }
 0x1a5   :  { %v294_v58 = vadd.f32 %v293_v9, %v284_v7  ;;  %v362_v7 = vrot.slane %v54_v6, %v1830_v1  ;;  %v372_v9 = vrot.slane %v54_v6, %v1833_v8  ;;  %v2086_v6 = vmov 30  }
 0x1a7   :  { %v297_v44 = vpop.permute.xlu1 %296 }
 0x1a8   :  { %v303_v56 = vmul.f32 %v302_v50, %v297_v44  ;;  %v367_v50 = vpop.permute.xlu0 %366 }
 0x1aa   :  { %v304_v52 = vadd.f32 %v303_v56, %v294_v58  ;;  %v373_v56 = vmul.f32 %v372_v9, %v367_v50 }
 0x1ac   :  { %v317_v2 = vpop.permute.xlu1 %316  ;;  %v314_v53 = vadd.f32 %v313_v39, %v304_v52  ;;  %v1410_v52 = vld [vmem:[%s2078_s2] ss:$0 sm:$0xff] }
 0x1ad   :  { %v323_v45 = vmul.f32 %v322_v23, %v317_v2 }
 0x1af   :  { %v324_v42 = vadd.f32 %v323_v45, %v314_v53  ;;  %v2087_v45 = vmov 31  }
 0x1b1   :  { %v327_v55 = vpop.permute.xlu1 %326 }
 0x1b2   :  { %v333_v60 = vmul.f32 %v332_v41, %v327_v55  ;;  %v386_v41 = vld [vmem:[#allocation5 + $0x20] sm:$0xff] }
 0x1b3   :  { %v398_v59 = vrot.slane %v386_v41, %v1815_v48  ;;  %v417_v61 = vrot.slane %v386_v41, %v1817_v51 }
 0x1b4   :  { %v334_v62 = vadd.f32 %v333_v60, %v324_v42  ;;  %v407_v42 = vrot.slane %v386_v41, %v1813_v47 }
 0x1b6   :  { %v347_v5 = vpop.permute.xlu1 %346  ;;  %v344_v46 = vadd.f32 %v343_v0, %v334_v62 }
 0x1b7   :  { %v353_v49 = vmul.f32 %v352_v43, %v347_v5 }
 0x1b9   :  { %v354_v10 = vadd.f32 %v353_v49, %v344_v46  ;;  %v427_v46 = vrot.slane %v386_v41, %v1821_v54 }
 0x1bb   :  { %v357_v44 = vpop.permute.xlu1 %356 }
 0x1bc   :  { %v363_v58 = vmul.f32 %v362_v7, %v357_v44  ;;  %v437_v44 = vrot.slane %v386_v41, %v1824_v57 }
 0x1be   :  { %v364_v40 = vadd.f32 %v363_v58, %v354_v10  ;;  %v447_v58 = vrot.slane %v386_v41, %v1827_v63 }
 0x1c0   :  { %v374_v23 = vadd.f32 %v373_v56, %v364_v40 }
 0x1c2   :  { %v382_v39 = vadd.f32 %v1410_v52, %v374_v23 }
 0x1c4   :  { %v383_v2 = vmul.f32 0.2, %v382_v39 }
 0x1c6   :  { %v384_v53 = vmax.f32 %v382_v39, %v383_v2  ;;  %v457_v39 = vrot.slane %v386_v41, %v1830_v1 }
 0x1c8   :  { %411 = vperm.xlu0 %1488, %v384_v53   ;;  %392 = vperm.xlu1 %1486, %v384_v53  }
 0x1cc   :  { %1491 = vset.pattern.permute.xlu0 %v1668_v16  ;;  %1487 = vset.pattern.permute.xlu1 %v1660_v3 }
 0x1cd   :  { %441 = vperm.xlu0 %1491, %v384_v53   ;;  %401 = vperm.xlu1 %1487, %v384_v53  }
 0x1d1   :  { %1494 = vset.pattern.permute.xlu0 %v1674_v22  ;;  %1489 = vset.pattern.permute.xlu1 %v1664_v12 }
 0x1d2   :  { %471 = vperm.xlu0 %1494, %v384_v53   ;;  %421 = vperm.xlu1 %1489, %v384_v53  }
 0x1d6   :  { %1497 = vset.pattern.permute.xlu0 %v1678_v26  ;;  %1490 = vset.pattern.permute.xlu1 %v1666_v14 }
 0x1d7   :  { %501 = vperm.xlu0 %1497, %v384_v53   ;;  %431 = vperm.xlu1 %1490, %v384_v53  }
 0x1db   :  { %1500 = vset.pattern.permute.xlu0 %v1680_v28  ;;  %1492 = vset.pattern.permute.xlu1 %v1670_v18 }
 0x1dc   :  { %531 = vperm.xlu0 %1500, %v384_v53   ;;  %451 = vperm.xlu1 %1492, %v384_v53  }
 0x1e0   :  { %1503 = vset.pattern.permute.xlu0 %v1682_v30  ;;  %1493 = vset.pattern.permute.xlu1 %v1672_v20 }
 0x1e1   :  { %561 = vperm.xlu0 %1503, %v384_v53   ;;  %461 = vperm.xlu1 %1493, %v384_v53  }
 0x1e5   :  { %1506 = vset.pattern.permute.xlu0 %v1684_v32  ;;  %1495 = vset.pattern.permute.xlu1 %v1676_v24 }
 0x1e6   :  { %591 = vperm.xlu0 %1506, %v384_v53   ;;  %481 = vperm.xlu1 %1495, %v384_v53  }
 0x1ea   :  { %1509 = vset.pattern.permute.xlu0 %v1686_v34  ;;  %1496 = vset.pattern.permute.xlu1 %v1677_v25 }
 0x1eb   :  { %621 = vperm.xlu0 %1509, %v384_v53   ;;  %491 = vperm.xlu1 %1496, %v384_v53  }
 0x1ef   :  { %1512 = vset.pattern.permute.xlu0 %v1688_v36  ;;  %1498 = vset.pattern.permute.xlu1 %v1679_v27 }
 0x1f0   :  { %651 = vperm.xlu0 %1512, %v384_v53   ;;  %511 = vperm.xlu1 %1498, %v384_v53  }
 0x1f4   :  { %1515 = vset.pattern.permute.xlu0 %v1690_v38  ;;  %1499 = vset.pattern.permute.xlu1 %v1663_v11 }
 0x1f5   :  { %681 = vperm.xlu0 %1515, %v384_v53   ;;  %521 = vperm.xlu1 %1499, %v384_v53  }
 0x1f9   :  { %1501 = vset.pattern.permute.xlu1 %v1681_v29  ;;  %1518 = vset.pattern.permute.xlu0 %v1661_v4 }
 0x1fa   :  { %541 = vperm.xlu1 %1501, %v384_v53  }
 0x1fe   :  { %1502 = vset.pattern.permute.xlu1 %v1665_v13 }
 0x1ff   :  { %551 = vperm.xlu1 %1502, %v384_v53  }
 0x203   :  { %1504 = vset.pattern.permute.xlu1 %v1683_v31 }
 0x204   :  { %571 = vperm.xlu1 %1504, %v384_v53  }
 0x208   :  { %1505 = vset.pattern.permute.xlu1 %v1667_v15 }
 0x209   :  { %581 = vperm.xlu1 %1505, %v384_v53  }
 0x20d   :  { %1507 = vset.pattern.permute.xlu1 %v1685_v33 }
 0x20e   :  { %601 = vperm.xlu1 %1507, %v384_v53  }
 0x212   :  { %1508 = vset.pattern.permute.xlu1 %v1669_v17 }
 0x213   :  { %611 = vperm.xlu1 %1508, %v384_v53  }
 0x217   :  { %1510 = vset.pattern.permute.xlu1 %v1687_v35 }
 0x218   :  { %631 = vperm.xlu1 %1510, %v384_v53  }
 0x21c   :  { %1511 = vset.pattern.permute.xlu1 %v1671_v19 }
 0x21d   :  { %641 = vperm.xlu1 %1511, %v384_v53  }
 0x221   :  { %1513 = vset.pattern.permute.xlu1 %v1689_v37 }
 0x222   :  { %661 = vperm.xlu1 %1513, %v384_v53  }
 0x226   :  { %1514 = vset.pattern.permute.xlu1 %v1673_v21 }
 0x227   :  { %671 = vperm.xlu1 %1514, %v384_v53  }
 0x22b   :  { %1516 = vset.pattern.permute.xlu1 %v2086_v6 }
 0x22c   :  { %691 = vperm.xlu1 %1516, %v384_v53  }
 0x230   :  { %1517 = vset.pattern.permute.xlu1 %v2087_v45 }
 0x231   :  { %701 = vperm.xlu1 %1517, %v384_v53  }
 0x235   :  { %1519 = vset.pattern.permute.xlu1 %v1660_v3 }
 0x247   :  { %v393_v55 = vpop.permute.xlu1 %392  ;;  %v412_v0 = vpop.permute.xlu0 %411 }
 0x248   :  { %v399_v62 = vmul.f32 %v398_v59, %v393_v55  ;;  %v418_v49 = vmul.f32 %v417_v61, %v412_v0 }
 0x24c   :  { %v402_v60 = vpop.permute.xlu1 %401  ;;  %v442_v52 = vpop.permute.xlu0 %441 }
 0x24d   :  { %v408_v43 = vmul.f32 %v407_v42, %v402_v60  ;;  %v448_v2 = vmul.f32 %v447_v58, %v442_v52  ;;  %v467_v42 = vrot.slane %v386_v41, %v1833_v8  ;;  %v387_v60 = vld [vmem:[#allocation5 + $0x28] sm:$0xff] }
 0x24f   :  { %v409_v5 = vadd.f32 %v408_v43, %v399_v62  ;;  %v477_v62 = vrot.slane %v387_v60, %v1815_v48 }
 0x251   :  { %v422_v7 = vpop.permute.xlu1 %421  ;;  %v419_v9 = vadd.f32 %v418_v49, %v409_v5  ;;  %v472_v5 = vpop.permute.xlu0 %471  ;;  %v487_v49 = vrot.slane %v387_v60, %v1813_v47 }
 0x252   :  { %v428_v50 = vmul.f32 %v427_v46, %v422_v7  ;;  %v478_v7 = vmul.f32 %v477_v62, %v472_v5  ;;  %v537_v62 = vrot.slane %v387_v60, %v1830_v1 }
 0x254   :  { %v429_v56 = vadd.f32 %v428_v50, %v419_v9 }
 0x256   :  { %v432_v10 = vpop.permute.xlu1 %431  ;;  %v502_v52 = vpop.permute.xlu0 %501 }
 0x257   :  { %v438_v40 = vmul.f32 %v437_v44, %v432_v10  ;;  %v497_v10 = vrot.slane %v387_v60, %v1817_v51 }
 0x259   :  { %v439_v23 = vadd.f32 %v438_v40, %v429_v56  ;;  %v507_v56 = vrot.slane %v387_v60, %v1821_v54 }
 0x25b   :  { %v452_v53 = vpop.permute.xlu1 %451  ;;  %v449_v55 = vadd.f32 %v448_v2, %v439_v23  ;;  %v508_v2 = vmul.f32 %v507_v56, %v502_v52  ;;  %v532_v5 = vpop.permute.xlu0 %531 }
 0x25c   :  { %v458_v59 = vmul.f32 %v457_v39, %v452_v53  ;;  %v517_v39 = vrot.slane %v387_v60, %v1824_v57 }
 0x25e   :  { %v459_v43 = vadd.f32 %v458_v59, %v449_v55 }
 0x260   :  { %v462_v61 = vpop.permute.xlu1 %461 }
 0x261   :  { %v468_v0 = vmul.f32 %v467_v42, %v462_v61  ;;  %v527_v42 = vrot.slane %v387_v60, %v1827_v63 }
 0x263   :  { %v469_v46 = vadd.f32 %v468_v0, %v459_v43 }
 0x265   :  { %v482_v9 = vpop.permute.xlu1 %481  ;;  %v479_v50 = vadd.f32 %v478_v7, %v469_v46  ;;  %v538_v7 = vmul.f32 %v537_v62, %v532_v5 }
 0x266   :  { %v488_v44 = vmul.f32 %v487_v49, %v482_v9  ;;  %v547_v49 = vrot.slane %v387_v60, %v1833_v8 }
 0x268   :  { %v489_v41 = vadd.f32 %v488_v44, %v479_v50  ;;  %v388_v50 = vld [vmem:[#allocation5 + $0x30] sm:$0xff] }
 0x269   :  { %v597_v62 = vrot.slane %v388_v50, %v1824_v57 }
 0x26a   :  { %v492_v58 = vpop.permute.xlu1 %491 }
 0x26b   :  { %v498_v40 = vmul.f32 %v497_v10, %v492_v58  ;;  %v557_v58 = vrot.slane %v388_v50, %v1815_v48 }
 0x26d   :  { %v499_v23 = vadd.f32 %v498_v40, %v489_v41  ;;  %v567_v41 = vrot.slane %v388_v50, %v1813_v47 }
 0x26f   :  { %v512_v53 = vpop.permute.xlu1 %511  ;;  %v509_v55 = vadd.f32 %v508_v2, %v499_v23  ;;  %v562_v23 = vpop.permute.xlu0 %561  ;;  %v577_v2 = vrot.slane %v388_v50, %v1817_v51 }
 0x270   :  { %v518_v59 = vmul.f32 %v517_v39, %v512_v53  ;;  %v568_v53 = vmul.f32 %v567_v41, %v562_v23  ;;  %v627_v41 = vrot.slane %v388_v50, %v1833_v8 }
 0x272   :  { %v519_v43 = vadd.f32 %v518_v59, %v509_v55 }
 0x273   :  { %v592_v5 = vpop.permute.xlu0 %591 }
 0x274   :  { %v522_v61 = vpop.permute.xlu1 %521 }
 0x275   :  { %v528_v0 = vmul.f32 %v527_v42, %v522_v61  ;;  %v587_v42 = vrot.slane %v388_v50, %v1821_v54 }
 0x277   :  { %v529_v46 = vadd.f32 %v528_v0, %v519_v43  ;;  %v622_v23 = vpop.permute.xlu0 %621 }
 0x279   :  { %v542_v9 = vpop.permute.xlu1 %541  ;;  %v539_v44 = vadd.f32 %v538_v7, %v529_v46  ;;  %v598_v7 = vmul.f32 %v597_v62, %v592_v5 }
 0x27a   :  { %v548_v10 = vmul.f32 %v547_v49, %v542_v9  ;;  %v607_v49 = vrot.slane %v388_v50, %v1827_v63 }
 0x27c   :  { %v549_v40 = vadd.f32 %v548_v10, %v539_v44 }
 0x27e   :  { %v552_v56 = vpop.permute.xlu1 %551 }
 0x27f   :  { %v558_v52 = vmul.f32 %v557_v58, %v552_v56  ;;  %v617_v58 = vrot.slane %v388_v50, %v1830_v1 }
 0x281   :  { %v559_v39 = vadd.f32 %v558_v52, %v549_v40 }
 0x283   :  { %v572_v55 = vpop.permute.xlu1 %571  ;;  %v569_v59 = vadd.f32 %v568_v53, %v559_v39  ;;  %v389_v39 = vld [vmem:[#allocation5 + $0x38] sm:$0xff] }
 0x284   :  { %v578_v60 = vmul.f32 %v577_v2, %v572_v55  ;;  %v637_v53 = vrot.slane %v389_v39, %v1815_v48  ;;  %v628_v55 = vmul.f32 %v627_v41, %v622_v23  ;;  %v687_v41 = vrot.slane %v389_v39, %v1827_v63 }
 0x286   :  { %v579_v43 = vadd.f32 %v578_v60, %v569_v59 }
 0x288   :  { %v582_v61 = vpop.permute.xlu1 %581 }
 0x289   :  { %v588_v0 = vmul.f32 %v587_v42, %v582_v61  ;;  %v647_v61 = vrot.slane %v389_v39, %v1813_v47 }
 0x28b   :  { %v589_v46 = vadd.f32 %v588_v0, %v579_v43  ;;  %v657_v43 = vrot.slane %v389_v39, %v1817_v51 }
 0x28d   :  { %v602_v9 = vpop.permute.xlu1 %601  ;;  %v599_v44 = vadd.f32 %v598_v7, %v589_v46  ;;  %v652_v46 = vpop.permute.xlu0 %651 }
 0x28e   :  { %v608_v10 = vmul.f32 %v607_v49, %v602_v9  ;;  %v667_v49 = vrot.slane %v389_v39, %v1821_v54  ;;  %v658_v7 = vmul.f32 %v657_v43, %v652_v46 }
 0x290   :  { %v609_v40 = vadd.f32 %v608_v10, %v599_v44 }
 0x291   :  { %v682_v23 = vpop.permute.xlu0 %681 }
 0x292   :  { %v612_v56 = vpop.permute.xlu1 %611 }
 0x293   :  { %v618_v52 = vmul.f32 %v617_v58, %v612_v56  ;;  %v677_v58 = vrot.slane %v389_v39, %v1824_v57 }
 0x295   :  { %v619_v2 = vadd.f32 %v618_v52, %v609_v40 }
 0x297   :  { %v632_v59 = vpop.permute.xlu1 %631  ;;  %v629_v60 = vadd.f32 %v628_v55, %v619_v2  ;;  %v688_v55 = vmul.f32 %v687_v41, %v682_v23 }
 0x298   :  { %v638_v42 = vmul.f32 %v637_v53, %v632_v59  ;;  %v697_v53 = vrot.slane %v389_v39, %v1830_v1 }
 0x29a   :  { %v639_v0 = vadd.f32 %v638_v42, %v629_v60 }
 0x29c   :  { %v642_v62 = vpop.permute.xlu1 %641 }
 0x29d   :  { %v648_v5 = vmul.f32 %v647_v61, %v642_v62  ;;  %v707_v61 = vrot.slane %v389_v39, %v1833_v8 }
 0x29f   :  { %v649_v50 = vadd.f32 %v648_v5, %v639_v0  ;;  %v1412_v5 = vld [vmem:[%s2078_s2 + $0x1] ss:$0 sm:$0xff] }
 0x2a1   :  { %v662_v9 = vpop.permute.xlu1 %661  ;;  %v659_v44 = vadd.f32 %v658_v7, %v649_v50 }
 0x2a2   :  { %v668_v10 = vmul.f32 %v667_v49, %v662_v9  ;;  %v2088_v9 = vmov 2  }
 0x2a4   :  { %v669_v40 = vadd.f32 %v668_v10, %v659_v44 }
 0x2a6   :  { %v672_v56 = vpop.permute.xlu1 %671 }
 0x2a7   :  { %v678_v52 = vmul.f32 %v677_v58, %v672_v56 }
 0x2a9   :  { %v679_v2 = vadd.f32 %v678_v52, %v669_v40 }
 0x2ab   :  { %v692_v59 = vpop.permute.xlu1 %691  ;;  %v689_v60 = vadd.f32 %v688_v55, %v679_v2 }
 0x2ac   :  { %v698_v42 = vmul.f32 %v697_v53, %v692_v59 }
 0x2ae   :  { %v699_v43 = vadd.f32 %v698_v42, %v689_v60 }
 0x2b0   :  { %v702_v62 = vpop.permute.xlu1 %701 }
 0x2b1   :  { %v708_v0 = vmul.f32 %v707_v61, %v702_v62 }
 0x2b3   :  { %v709_v46 = vadd.f32 %v708_v0, %v699_v43 }
 0x2b5   :  { %v718_v50 = vadd.f32 %v1412_v5, %v709_v46 }
 0x2b7   :  { %v719_v49 = vmul.f32 0.2, %v718_v50 }
 0x2b9   :  { %v720_v7 = vmax.f32 %v718_v50, %v719_v49 }
 0x2bb   :  { %737 = vperm.xlu1 %1519, %v720_v7   ;;  %728 = vperm.xlu0 %1518, %v720_v7  }
 0x2bf   :  { %1520 = vset.pattern.permute.xlu1 %v2088_v9  ;;  %1521 = vset.pattern.permute.xlu0 %v1664_v12 }
 0x2c0   :  { %747 = vperm.xlu1 %1520, %v720_v7   ;;  %757 = vperm.xlu0 %1521, %v720_v7  }
 0x2c4   :  { %1522 = vset.pattern.permute.xlu1 %v1666_v14  ;;  %1524 = vset.pattern.permute.xlu0 %v1670_v18 }
 0x2c5   :  { %767 = vperm.xlu1 %1522, %v720_v7   ;;  %787 = vperm.xlu0 %1524, %v720_v7  }
 0x2c9   :  { %1523 = vset.pattern.permute.xlu1 %v1668_v16  ;;  %1527 = vset.pattern.permute.xlu0 %v1676_v24 }
 0x2ca   :  { %777 = vperm.xlu1 %1523, %v720_v7   ;;  %817 = vperm.xlu0 %1527, %v720_v7  }
 0x2ce   :  { %1525 = vset.pattern.permute.xlu1 %v1672_v20  ;;  %1530 = vset.pattern.permute.xlu0 %v1679_v27 }
 0x2cf   :  { %797 = vperm.xlu1 %1525, %v720_v7   ;;  %847 = vperm.xlu0 %1530, %v720_v7  }
 0x2d3   :  { %1526 = vset.pattern.permute.xlu1 %v1674_v22  ;;  %1533 = vset.pattern.permute.xlu0 %v1681_v29 }
 0x2d4   :  { %807 = vperm.xlu1 %1526, %v720_v7   ;;  %877 = vperm.xlu0 %1533, %v720_v7  }
 0x2d8   :  { %1528 = vset.pattern.permute.xlu1 %v1677_v25  ;;  %1536 = vset.pattern.permute.xlu0 %v1683_v31 }
 0x2d9   :  { %827 = vperm.xlu1 %1528, %v720_v7   ;;  %907 = vperm.xlu0 %1536, %v720_v7  }
 0x2dd   :  { %1529 = vset.pattern.permute.xlu1 %v1678_v26  ;;  %1539 = vset.pattern.permute.xlu0 %v1685_v33 }
 0x2de   :  { %837 = vperm.xlu1 %1529, %v720_v7   ;;  %937 = vperm.xlu0 %1539, %v720_v7  }
 0x2e2   :  { %1531 = vset.pattern.permute.xlu1 %v1663_v11  ;;  %1542 = vset.pattern.permute.xlu0 %v1687_v35 }
 0x2e3   :  { %857 = vperm.xlu1 %1531, %v720_v7   ;;  %967 = vperm.xlu0 %1542, %v720_v7  }
 0x2e7   :  { %1532 = vset.pattern.permute.xlu1 %v1680_v28  ;;  %1545 = vset.pattern.permute.xlu0 %v1689_v37 }
 0x2e8   :  { %867 = vperm.xlu1 %1532, %v720_v7   ;;  %997 = vperm.xlu0 %1545, %v720_v7  }
 0x2ec   :  { %1534 = vset.pattern.permute.xlu1 %v1665_v13  ;;  %1548 = vset.pattern.permute.xlu0 %v2086_v6 }
 0x2ed   :  { %887 = vperm.xlu1 %1534, %v720_v7   ;;  %1027 = vperm.xlu0 %1548, %v720_v7  }
 0x2f1   :  { %1535 = vset.pattern.permute.xlu1 %v1682_v30  ;;  %1551 = vset.pattern.permute.xlu0 %v1660_v3  ;;  %v722_v3 = vld [vmem:[#allocation5 + $0x40] sm:$0xff] }
 0x2f2   :  { %897 = vperm.xlu1 %1535, %v720_v7   ;;  %v743_v39 = vrot.slane %v722_v3, %v1813_v47  ;;  %v734_v44 = vrot.slane %v722_v3, %v1815_v48  ;;  %v753_v40 = vrot.slane %v722_v3, %v1817_v51  ;;  %v763_v53 = vrot.slane %v722_v3, %v1821_v54 }
 0x2f3   :  { %v783_v43 = vrot.slane %v722_v3, %v1827_v63  ;;  %v793_v46 = vrot.slane %v722_v3, %v1830_v1 }
 0x2f6   :  { %1537 = vset.pattern.permute.xlu1 %v1667_v15 }
 0x2f7   :  { %917 = vperm.xlu1 %1537, %v720_v7  }
 0x2fb   :  { %1538 = vset.pattern.permute.xlu1 %v1684_v32 }
 0x2fc   :  { %927 = vperm.xlu1 %1538, %v720_v7  }
 0x300   :  { %1540 = vset.pattern.permute.xlu1 %v1669_v17 }
 0x301   :  { %947 = vperm.xlu1 %1540, %v720_v7  }
 0x305   :  { %1541 = vset.pattern.permute.xlu1 %v1686_v34 }
 0x306   :  { %957 = vperm.xlu1 %1541, %v720_v7  }
 0x30a   :  { %1543 = vset.pattern.permute.xlu1 %v1671_v19 }
 0x30b   :  { %977 = vperm.xlu1 %1543, %v720_v7  }
 0x30f   :  { %1544 = vset.pattern.permute.xlu1 %v1688_v36 }
 0x310   :  { %987 = vperm.xlu1 %1544, %v720_v7  }
 0x314   :  { %1546 = vset.pattern.permute.xlu1 %v1673_v21 }
 0x315   :  { %1007 = vperm.xlu1 %1546, %v720_v7  }
 0x319   :  { %1547 = vset.pattern.permute.xlu1 %v1690_v38 }
 0x31a   :  { %1017 = vperm.xlu1 %1547, %v720_v7  }
 0x31e   :  { %1549 = vset.pattern.permute.xlu1 %v2087_v45 }
 0x31f   :  { %1037 = vperm.xlu1 %1549, %v720_v7  }
 0x323   :  { %1550 = vset.pattern.permute.xlu1 %v1661_v4  ;;  %v773_v4 = vrot.slane %v722_v3, %v1824_v57 }
 0x33a   :  { %v738_v10 = vpop.permute.xlu1 %737  ;;  %v729_v58 = vpop.permute.xlu0 %728 }
 0x33b   :  { %v744_v56 = vmul.f32 %v743_v39, %v738_v10  ;;  %v735_v41 = vmul.f32 %v734_v44, %v729_v58  ;;  %v803_v39 = vrot.slane %v722_v3, %v1833_v8  ;;  %v723_v58 = vld [vmem:[#allocation5 + $0x48] sm:$0xff] }
 0x33d   :  { %v745_v23 = vadd.f32 %v744_v56, %v735_v41 }
 0x33f   :  { %v748_v52 = vpop.permute.xlu1 %747  ;;  %v758_v55 = vpop.permute.xlu0 %757 }
 0x340   :  { %v754_v2 = vmul.f32 %v753_v40, %v748_v52  ;;  %v764_v60 = vmul.f32 %v763_v53, %v758_v55  ;;  %v813_v40 = vrot.slane %v723_v58, %v1815_v48 }
 0x342   :  { %v755_v59 = vadd.f32 %v754_v2, %v745_v23  ;;  %v823_v23 = vrot.slane %v723_v58, %v1813_v47 }
 0x344   :  { %v768_v42 = vpop.permute.xlu1 %767  ;;  %v765_v61 = vadd.f32 %v764_v60, %v755_v59  ;;  %v788_v49 = vpop.permute.xlu0 %787 }
 0x345   :  { %v774_v62 = vmul.f32 %v773_v4, %v768_v42  ;;  %v794_v44 = vmul.f32 %v793_v46, %v788_v49  ;;  %v833_v4 = vrot.slane %v723_v58, %v1817_v51 }
 0x347   :  { %v775_v5 = vadd.f32 %v774_v62, %v765_v61  ;;  %v843_v62 = vrot.slane %v723_v58, %v1821_v54 }
 0x349   :  { %v778_v0 = vpop.permute.xlu1 %777  ;;  %v818_v55 = vpop.permute.xlu0 %817 }
 0x34a   :  { %v784_v50 = vmul.f32 %v783_v43, %v778_v0  ;;  %v824_v60 = vmul.f32 %v823_v23, %v818_v55  ;;  %v853_v0 = vrot.slane %v723_v58, %v1824_v57  ;;  %v724_v55 = vld [vmem:[#allocation5 + $0x50] sm:$0xff] }
 0x34c   :  { %v785_v7 = vadd.f32 %v784_v50, %v775_v5 }
 0x34e   :  { %v798_v10 = vpop.permute.xlu1 %797  ;;  %v795_v56 = vadd.f32 %v794_v44, %v785_v7  ;;  %v848_v50 = vpop.permute.xlu0 %847  ;;  %v863_v7 = vrot.slane %v723_v58, %v1827_v63 }
 0x34f   :  { %v804_v41 = vmul.f32 %v803_v39, %v798_v10  ;;  %v854_v39 = vmul.f32 %v853_v0, %v848_v50  ;;  %v913_v0 = vrot.slane %v724_v55, %v1817_v51 }
 0x351   :  { %v805_v2 = vadd.f32 %v804_v41, %v795_v56  ;;  %v873_v41 = vrot.slane %v723_v58, %v1830_v1 }
 0x353   :  { %v808_v52 = vpop.permute.xlu1 %807 }
 0x354   :  { %v814_v53 = vmul.f32 %v813_v40, %v808_v52  ;;  %v883_v52 = vrot.slane %v723_v58, %v1833_v8 }
 0x356   :  { %v815_v59 = vadd.f32 %v814_v53, %v805_v2  ;;  %v878_v53 = vpop.permute.xlu0 %877 }
 0x358   :  { %v828_v42 = vpop.permute.xlu1 %827  ;;  %v825_v61 = vadd.f32 %v824_v60, %v815_v59  ;;  %v884_v60 = vmul.f32 %v883_v52, %v878_v53 }
 0x359   :  { %v834_v3 = vmul.f32 %v833_v4, %v828_v42  ;;  %v893_v4 = vrot.slane %v724_v55, %v1815_v48 }
 0x35a   :  { %v908_v50 = vpop.permute.xlu0 %907 }
 0x35b   :  { %v835_v5 = vadd.f32 %v834_v3, %v825_v61 }
 0x35d   :  { %v838_v43 = vpop.permute.xlu1 %837 }
 0x35e   :  { %v844_v46 = vmul.f32 %v843_v62, %v838_v43  ;;  %v903_v62 = vrot.slane %v724_v55, %v1813_v47 }
 0x360   :  { %v845_v49 = vadd.f32 %v844_v46, %v835_v5 }
 0x362   :  { %v858_v44 = vpop.permute.xlu1 %857  ;;  %v855_v10 = vadd.f32 %v854_v39, %v845_v49  ;;  %v923_v49 = vrot.slane %v724_v55, %v1821_v54 }
 0x363   :  { %v864_v56 = vmul.f32 %v863_v7, %v858_v44  ;;  %v914_v7 = vmul.f32 %v913_v0, %v908_v50 }
 0x365   :  { %v865_v23 = vadd.f32 %v864_v56, %v855_v10  ;;  %v933_v56 = vrot.slane %v724_v55, %v1824_v57 }
 0x367   :  { %v868_v40 = vpop.permute.xlu1 %867 }
 0x368   :  { %v874_v2 = vmul.f32 %v873_v41, %v868_v40  ;;  %v943_v40 = vrot.slane %v724_v55, %v1827_v63 }
 0x36a   :  { %v875_v59 = vadd.f32 %v874_v2, %v865_v23  ;;  %v938_v2 = vpop.permute.xlu0 %937 }
 0x36c   :  { %v888_v42 = vpop.permute.xlu1 %887  ;;  %v885_v61 = vadd.f32 %v884_v60, %v875_v59  ;;  %v953_v59 = vrot.slane %v724_v55, %v1830_v1 }
 0x36d   :  { %v894_v3 = vmul.f32 %v893_v4, %v888_v42  ;;  %v944_v4 = vmul.f32 %v943_v40, %v938_v2 }
 0x36e   :  { %v968_v50 = vpop.permute.xlu0 %967 }
 0x36f   :  { %v895_v5 = vadd.f32 %v894_v3, %v885_v61  ;;  %v963_v3 = vrot.slane %v724_v55, %v1833_v8 }
 0x371   :  { %v898_v43 = vpop.permute.xlu1 %897 }
 0x372   :  { %v904_v46 = vmul.f32 %v903_v62, %v898_v43  ;;  %v725_v62 = vld [vmem:[#allocation5 + $0x58] sm:$0xff] }
 0x373   :  { %v973_v0 = vrot.slane %v725_v62, %v1815_v48  ;;  %v1003_v40 = vrot.slane %v725_v62, %v1821_v54 }
 0x374   :  { %v905_v58 = vadd.f32 %v904_v46, %v895_v5 }
 0x376   :  { %v918_v39 = vpop.permute.xlu1 %917  ;;  %v915_v44 = vadd.f32 %v914_v7, %v905_v58  ;;  %v974_v7 = vmul.f32 %v973_v0, %v968_v50  ;;  %v1043_v50 = vrot.slane %v725_v62, %v1833_v8 }
 0x377   :  { %v924_v10 = vmul.f32 %v923_v49, %v918_v39  ;;  %v983_v49 = vrot.slane %v725_v62, %v1813_v47 }
 0x379   :  { %v925_v52 = vadd.f32 %v924_v10, %v915_v44 }
 0x37b   :  { %v928_v41 = vpop.permute.xlu1 %927 }
 0x37c   :  { %v934_v23 = vmul.f32 %v933_v56, %v928_v41  ;;  %v993_v56 = vrot.slane %v725_v62, %v1817_v51 }
 0x37e   :  { %v935_v53 = vadd.f32 %v934_v23, %v925_v52  ;;  %v998_v23 = vpop.permute.xlu0 %997 }
 0x380   :  { %v948_v60 = vpop.permute.xlu1 %947  ;;  %v945_v42 = vadd.f32 %v944_v4, %v935_v53  ;;  %v1013_v53 = vrot.slane %v725_v62, %v1824_v57 }
 0x381   :  { %v954_v61 = vmul.f32 %v953_v59, %v948_v60  ;;  %v1004_v59 = vmul.f32 %v1003_v40, %v998_v23 }
 0x383   :  { %v955_v5 = vadd.f32 %v954_v61, %v945_v42  ;;  %v1023_v61 = vrot.slane %v725_v62, %v1827_v63 }
 0x385   :  { %v958_v43 = vpop.permute.xlu1 %957 }
 0x386   :  { %v964_v46 = vmul.f32 %v963_v3, %v958_v43  ;;  %v1033_v3 = vrot.slane %v725_v62, %v1830_v1  ;;  %v1028_v43 = vpop.permute.xlu0 %1027 }
 0x388   :  { %v965_v58 = vadd.f32 %v964_v46, %v955_v5 }
 0x38a   :  { %v978_v39 = vpop.permute.xlu1 %977  ;;  %v975_v44 = vadd.f32 %v974_v7, %v965_v58  ;;  %v1034_v58 = vmul.f32 %v1033_v3, %v1028_v43 }
 0x38b   :  { %v984_v10 = vmul.f32 %v983_v49, %v978_v39 }
 0x38d   :  { %v985_v55 = vadd.f32 %v984_v10, %v975_v44  ;;  %v1414_v10 = vld [vmem:[%s2078_s2 + $0x2] ss:$0 sm:$0xff] }
 0x38f   :  { %v988_v41 = vpop.permute.xlu1 %987 }
 0x390   :  { %v994_v52 = vmul.f32 %v993_v56, %v988_v41 }
 0x392   :  { %v995_v2 = vadd.f32 %v994_v52, %v985_v55 }
 0x394   :  { %v1008_v4 = vpop.permute.xlu1 %1007  ;;  %v1005_v60 = vadd.f32 %v1004_v59, %v995_v2 }
 0x395   :  { %v1014_v42 = vmul.f32 %v1013_v53, %v1008_v4 }
 0x397   :  { %v1015_v5 = vadd.f32 %v1014_v42, %v1005_v60 }
 0x399   :  { %v1018_v0 = vpop.permute.xlu1 %1017 }
 0x39a   :  { %v1024_v46 = vmul.f32 %v1023_v61, %v1018_v0 }
 0x39c   :  { %v1025_v49 = vadd.f32 %v1024_v46, %v1015_v5 }
 0x39e   :  { %v1038_v7 = vpop.permute.xlu1 %1037  ;;  %v1035_v39 = vadd.f32 %v1034_v58, %v1025_v49 }
 0x39f   :  { %v1044_v44 = vmul.f32 %v1043_v50, %v1038_v7 }
 0x3a1   :  { %v1045_v56 = vadd.f32 %v1044_v44, %v1035_v39 }
 0x3a3   :  { %v1054_v41 = vadd.f32 %v1414_v10, %v1045_v56 }
 0x3a5   :  { %v1055_v40 = vmul.f32 0.2, %v1054_v41 }
 0x3a7   :  { %v1056_v55 = vmax.f32 %v1054_v41, %v1055_v40 }
 0x3a9   :  { %1073 = vperm.xlu0 %1551, %v1056_v55   ;;  %1064 = vperm.xlu1 %1550, %v1056_v55  }
 0x3ad   :  { %1554 = vset.pattern.permute.xlu0 %v1666_v14  ;;  %1552 = vset.pattern.permute.xlu1 %v2088_v9  ;;  %v1059_v9 = vld [vmem:[#allocation5 + $0x68] sm:$0xff] }
 0x3ae   :  { %1103 = vperm.xlu0 %1554, %v1056_v55   ;;  %1083 = vperm.xlu1 %1552, %v1056_v55   ;;  %v1149_v52 = vrot.slane %v1059_v9, %v1815_v48  ;;  %v1159_v4 = vrot.slane %v1059_v9, %v1813_v47  ;;  %v1169_v42 = vrot.slane %v1059_v9, %v1817_v51 }
 0x3af   :  { %v1179_v5 = vrot.slane %v1059_v9, %v1821_v54  ;;  %v1189_v7 = vrot.slane %v1059_v9, %v1824_v57  ;;  %v1199_v44 = vrot.slane %v1059_v9, %v1827_v63 }
 0x3b2   :  { %1557 = vset.pattern.permute.xlu0 %v1672_v20  ;;  %1553 = vset.pattern.permute.xlu1 %v1664_v12 }
 0x3b3   :  { %1133 = vperm.xlu0 %1557, %v1056_v55   ;;  %1093 = vperm.xlu1 %1553, %v1056_v55  }
 0x3b7   :  { %1560 = vset.pattern.permute.xlu0 %v1677_v25  ;;  %1555 = vset.pattern.permute.xlu1 %v1668_v16 }
 0x3b8   :  { %1163 = vperm.xlu0 %1560, %v1056_v55   ;;  %1113 = vperm.xlu1 %1555, %v1056_v55  }
 0x3bc   :  { %1563 = vset.pattern.permute.xlu0 %v1663_v11  ;;  %1556 = vset.pattern.permute.xlu1 %v1670_v18  ;;  %v1058_v11 = vld [vmem:[#allocation5 + $0x60] sm:$0xff] }
 0x3bd   :  { %1193 = vperm.xlu0 %1563, %v1056_v55   ;;  %1123 = vperm.xlu1 %1556, %v1056_v55   ;;  %v1070_v14 = vrot.slane %v1058_v11, %v1815_v48  ;;  %v1089_v16 = vrot.slane %v1058_v11, %v1817_v51  ;;  %v1109_v25 = vrot.slane %v1058_v11, %v1824_v57 }
 0x3c1   :  { %1566 = vset.pattern.permute.xlu0 %v1665_v13  ;;  %1558 = vset.pattern.permute.xlu1 %v1674_v22  ;;  %v1079_v13 = vrot.slane %v1058_v11, %v1813_v47 }
 0x3c2   :  { %1223 = vperm.xlu0 %1566, %v1056_v55   ;;  %1143 = vperm.xlu1 %1558, %v1056_v55  }
 0x3c6   :  { %1569 = vset.pattern.permute.xlu0 %v1667_v15  ;;  %1559 = vset.pattern.permute.xlu1 %v1676_v24 }
 0x3c7   :  { %1253 = vperm.xlu0 %1569, %v1056_v55   ;;  %1153 = vperm.xlu1 %1559, %v1056_v55  }
 0x3cb   :  { %1572 = vset.pattern.permute.xlu0 %v1669_v17  ;;  %1561 = vset.pattern.permute.xlu1 %v1678_v26 }
 0x3cc   :  { %1283 = vperm.xlu0 %1572, %v1056_v55   ;;  %1173 = vperm.xlu1 %1561, %v1056_v55  }
 0x3d0   :  { %1575 = vset.pattern.permute.xlu0 %v1671_v19  ;;  %1562 = vset.pattern.permute.xlu1 %v1679_v27 }
 0x3d1   :  { %1313 = vperm.xlu0 %1575, %v1056_v55   ;;  %1183 = vperm.xlu1 %1562, %v1056_v55  }
 0x3d5   :  { %1578 = vset.pattern.permute.xlu0 %v1673_v21  ;;  %1564 = vset.pattern.permute.xlu1 %v1680_v28  ;;  %v1099_v21 = vrot.slane %v1058_v11, %v1821_v54 }
 0x3d6   :  { %1343 = vperm.xlu0 %1578, %v1056_v55   ;;  %1203 = vperm.xlu1 %1564, %v1056_v55  }
 0x3da   :  { %1581 = vset.pattern.permute.xlu0 %v2087_v45  ;;  %1565 = vset.pattern.permute.xlu1 %v1681_v29 }
 0x3db   :  { %1373 = vperm.xlu0 %1581, %v1056_v55   ;;  %1213 = vperm.xlu1 %1565, %v1056_v55  }
 0x3df   :  { %1567 = vset.pattern.permute.xlu1 %v1682_v30  ;;  %v1119_v30 = vrot.slane %v1058_v11, %v1827_v63 }
 0x3e0   :  { %1233 = vperm.xlu1 %1567, %v1056_v55  }
 0x3e4   :  { %1568 = vset.pattern.permute.xlu1 %v1683_v31 }
 0x3e5   :  { %1243 = vperm.xlu1 %1568, %v1056_v55  }
 0x3e9   :  { %1570 = vset.pattern.permute.xlu1 %v1684_v32 }
 0x3ea   :  { %1263 = vperm.xlu1 %1570, %v1056_v55  }
 0x3ee   :  { %1571 = vset.pattern.permute.xlu1 %v1685_v33 }
 0x3ef   :  { %1273 = vperm.xlu1 %1571, %v1056_v55  }
 0x3f3   :  { %1573 = vset.pattern.permute.xlu1 %v1686_v34 }
 0x3f4   :  { %1293 = vperm.xlu1 %1573, %v1056_v55  }
 0x3f8   :  { %1574 = vset.pattern.permute.xlu1 %v1687_v35  ;;  %v1129_v35 = vrot.slane %v1058_v11, %v1830_v1 }
 0x3f9   :  { %1303 = vperm.xlu1 %1574, %v1056_v55  }
 0x3fd   :  { %1576 = vset.pattern.permute.xlu1 %v1688_v36 }
 0x3fe   :  { %1323 = vperm.xlu1 %1576, %v1056_v55  }
 0x402   :  { %1577 = vset.pattern.permute.xlu1 %v1689_v37  ;;  %v1139_v37 = vrot.slane %v1058_v11, %v1833_v8 }
 0x403   :  { %1333 = vperm.xlu1 %1577, %v1056_v55  }
 0x407   :  { %1579 = vset.pattern.permute.xlu1 %v1690_v38 }
 0x408   :  { %1353 = vperm.xlu1 %1579, %v1056_v55  }
 0x40c   :  { %1580 = vset.pattern.permute.xlu1 %v2086_v6 }
 0x40d   :  { %1363 = vperm.xlu1 %1580, %v1056_v55   ;;  %v1209_v55 = vrot.slane %v1059_v9, %v1830_v1 }
 0x428   :  { %v1065_v12 = vpop.permute.xlu1 %1064  ;;  %v1074_v15 = vpop.permute.xlu0 %1073 }
 0x429   :  { %v1080_v17 = vmul.f32 %v1079_v13, %v1074_v15  ;;  %v1071_v18 = vmul.f32 %v1070_v14, %v1065_v12  ;;  %v1219_v15 = vrot.slane %v1059_v9, %v1833_v8 }
 0x42b   :  { %v1081_v22 = vadd.f32 %v1080_v17, %v1071_v18 }
 0x42d   :  { %v1084_v19 = vpop.permute.xlu1 %1083  ;;  %v1104_v28 = vpop.permute.xlu0 %1103 }
 0x42e   :  { %v1090_v20 = vmul.f32 %v1089_v16, %v1084_v19  ;;  %v1110_v31 = vmul.f32 %v1109_v25, %v1104_v28  ;;  %v1060_v16 = vld [vmem:[#allocation5 + $0x70] sm:$0xff] }
 0x42f   :  { %v1229_v18 = vrot.slane %v1060_v16, %v1815_v48  ;;  %v1279_v9 = vrot.slane %v1060_v16, %v1827_v63 }
 0x430   :  { %v1091_v26 = vadd.f32 %v1090_v20, %v1081_v22 }
 0x432   :  { %v1094_v24 = vpop.permute.xlu1 %1093  ;;  %v1134_v45 = vpop.permute.xlu0 %1133 }
 0x433   :  { %v1100_v27 = vmul.f32 %v1099_v21, %v1094_v24  ;;  %v1140_v23 = vmul.f32 %v1139_v37, %v1134_v45  ;;  %v1239_v24 = vrot.slane %v1060_v16, %v1813_v47 }
 0x435   :  { %v1101_v29 = vadd.f32 %v1100_v27, %v1091_v26 }
 0x437   :  { %v1114_v32 = vpop.permute.xlu1 %1113  ;;  %v1111_v33 = vadd.f32 %v1110_v31, %v1101_v29  ;;  %v1164_v43 = vpop.permute.xlu0 %1163  ;;  %v1249_v29 = vrot.slane %v1060_v16, %v1817_v51  ;;  %v1259_v31 = vrot.slane %v1060_v16, %v1821_v54 }
 0x438   :  { %v1120_v34 = vmul.f32 %v1119_v30, %v1114_v32  ;;  %v1170_v46 = vmul.f32 %v1169_v42, %v1164_v43 }
 0x43a   :  { %v1121_v38 = vadd.f32 %v1120_v34, %v1111_v33 }
 0x43c   :  { %v1124_v36 = vpop.permute.xlu1 %1123  ;;  %v1194_v41 = vpop.permute.xlu0 %1193 }
 0x43d   :  { %v1130_v6 = vmul.f32 %v1129_v35, %v1124_v36  ;;  %v1200_v11 = vmul.f32 %v1199_v44, %v1194_v41  ;;  %v1269_v36 = vrot.slane %v1060_v16, %v1824_v57 }
 0x43f   :  { %v1131_v62 = vadd.f32 %v1130_v6, %v1121_v38 }
 0x441   :  { %v1144_v2 = vpop.permute.xlu1 %1143  ;;  %v1141_v53 = vadd.f32 %v1140_v23, %v1131_v62  ;;  %v1224_v21 = vpop.permute.xlu0 %1223 }
 0x442   :  { %v1150_v59 = vmul.f32 %v1149_v52, %v1144_v2  ;;  %v1230_v25 = vmul.f32 %v1229_v18, %v1224_v21  ;;  %v1289_v52 = vrot.slane %v1060_v16, %v1830_v1 }
 0x444   :  { %v1151_v61 = vadd.f32 %v1150_v59, %v1141_v53 }
 0x446   :  { %v1154_v60 = vpop.permute.xlu1 %1153  ;;  %v1254_v34 = vpop.permute.xlu0 %1253 }
 0x447   :  { %v1160_v3 = vmul.f32 %v1159_v4, %v1154_v60  ;;  %v1260_v37 = vmul.f32 %v1259_v31, %v1254_v34  ;;  %v1299_v4 = vrot.slane %v1060_v16, %v1833_v8 }
 0x449   :  { %v1161_v0 = vadd.f32 %v1160_v3, %v1151_v61  ;;  %v1061_v61 = vld [vmem:[#allocation5 + $0x78] sm:$0xff] }
 0x44b   :  { %v1174_v50 = vpop.permute.xlu1 %1173  ;;  %v1171_v58 = vadd.f32 %v1170_v46, %v1161_v0  ;;  %v1284_v53 = vpop.permute.xlu0 %1283  ;;  %v1309_v0 = vrot.slane %v1061_v61, %v1815_v48  ;;  %v1319_v46 = vrot.slane %v1061_v61, %v1813_v47  ;;  %v1359_v47 = vrot.slane %v1061_v61, %v1827_v63 }
 0x44c   :  { %v1180_v49 = vmul.f32 %v1179_v5, %v1174_v50  ;;  %v1290_v60 = vmul.f32 %v1289_v52, %v1284_v53 }
 0x44e   :  { %v1181_v10 = vadd.f32 %v1180_v49, %v1171_v58 }
 0x450   :  { %v1184_v39 = vpop.permute.xlu1 %1183  ;;  %v1314_v49 = vpop.permute.xlu0 %1313 }
 0x451   :  { %v1190_v56 = vmul.f32 %v1189_v7, %v1184_v39  ;;  %v1329_v39 = vrot.slane %v1061_v61, %v1817_v51  ;;  %v1320_v44 = vmul.f32 %v1319_v46, %v1314_v49  ;;  %v1369_v51 = vrot.slane %v1061_v61, %v1830_v1 }
 0x453   :  { %v1191_v40 = vadd.f32 %v1190_v56, %v1181_v10 }
 0x455   :  { %v1204_v12 = vpop.permute.xlu1 %1203  ;;  %v1201_v13 = vadd.f32 %v1200_v11, %v1191_v40  ;;  %v1339_v40 = vrot.slane %v1061_v61, %v1821_v54  ;;  %v1349_v11 = vrot.slane %v1061_v61, %v1824_v57 }
 0x456   :  { %v1210_v14 = vmul.f32 %v1209_v55, %v1204_v12 }
 0x458   :  { %v1211_v19 = vadd.f32 %v1210_v14, %v1201_v13  ;;  %v1344_v13 = vpop.permute.xlu0 %1343 }
 0x45a   :  { %v1214_v17 = vpop.permute.xlu1 %1213 }
 0x45b   :  { %v1220_v20 = vmul.f32 %v1219_v15, %v1214_v17  ;;  %v1350_v15 = vmul.f32 %v1349_v11, %v1344_v13 }
 0x45d   :  { %v1221_v22 = vadd.f32 %v1220_v20, %v1211_v19  ;;  %v1379_v19 = vrot.slane %v1061_v61, %v1833_v8  ;;  %v1374_v20 = vpop.permute.xlu0 %1373 }
 0x45f   :  { %v1234_v26 = vpop.permute.xlu1 %1233  ;;  %v1231_v27 = vadd.f32 %v1230_v25, %v1221_v22  ;;  %v1416_v25 = vld [vmem:[%s2078_s2 + $0x3] ss:$0 sm:$0xff] }
 0x460   :  { %v1240_v28 = vmul.f32 %v1239_v24, %v1234_v26  ;;  %v1380_v24 = vmul.f32 %v1379_v19, %v1374_v20 }
 0x462   :  { %v1241_v32 = vadd.f32 %v1240_v28, %v1231_v27 }
 0x464   :  { %v1244_v30 = vpop.permute.xlu1 %1243 }
 0x465   :  { %v1250_v33 = vmul.f32 %v1249_v29, %v1244_v30 }
 0x467   :  { %v1251_v35 = vadd.f32 %v1250_v33, %v1241_v32 }
 0x469   :  { %v1264_v38 = vpop.permute.xlu1 %1263  ;;  %v1261_v6 = vadd.f32 %v1260_v37, %v1251_v35 }
 0x46a   :  { %v1270_v45 = vmul.f32 %v1269_v36, %v1264_v38 }
 0x46c   :  { %v1271_v23 = vadd.f32 %v1270_v45, %v1261_v6 }
 0x46e   :  { %v1274_v62 = vpop.permute.xlu1 %1273 }
 0x46f   :  { %v1280_v2 = vmul.f32 %v1279_v9, %v1274_v62 }
 0x471   :  { %v1281_v59 = vadd.f32 %v1280_v2, %v1271_v23 }
 0x473   :  { %v1294_v42 = vpop.permute.xlu1 %1293  ;;  %v1291_v3 = vadd.f32 %v1290_v60, %v1281_v59 }
 0x474   :  { %v1300_v43 = vmul.f32 %v1299_v4, %v1294_v42 }
 0x476   :  { %v1301_v50 = vadd.f32 %v1300_v43, %v1291_v3 }
 0x478   :  { %v1304_v5 = vpop.permute.xlu1 %1303 }
 0x479   :  { %v1310_v58 = vmul.f32 %v1309_v0, %v1304_v5 }
 0x47b   :  { %v1311_v7 = vadd.f32 %v1310_v58, %v1301_v50 }
 0x47d   :  { %v1324_v10 = vpop.permute.xlu1 %1323  ;;  %v1321_v56 = vadd.f32 %v1320_v44, %v1311_v7 }
 0x47e   :  { %v1330_v41 = vmul.f32 %v1329_v39, %v1324_v10 }
 0x480   :  { %v1331_v12 = vadd.f32 %v1330_v41, %v1321_v56 }
 0x482   :  { %v1334_v55 = vpop.permute.xlu1 %1333 }
 0x483   :  { %v1340_v48 = vmul.f32 %v1339_v40, %v1334_v55 }
 0x485   :  { %v1341_v14 = vadd.f32 %v1340_v48, %v1331_v12 }
 0x487   :  { %v1354_v16 = vpop.permute.xlu1 %1353  ;;  %v1351_v17 = vadd.f32 %v1350_v15, %v1341_v14 }
 0x488   :  { %v1360_v18 = vmul.f32 %v1359_v47, %v1354_v16 }
 0x48a   :  { %v1361_v54 = vadd.f32 %v1360_v18, %v1351_v17 }
 0x48c   :  { %v1364_v21 = vpop.permute.xlu1 %1363 }
 0x48d   :  { %v1370_v22 = vmul.f32 %v1369_v51, %v1364_v21 }
 0x48f   :  { %v1371_v57 = vadd.f32 %v1370_v22, %v1361_v54 }
 0x491   :  { %v1381_v26 = vadd.f32 %v1380_v24, %v1371_v57 }
 0x493   :  { %v1390_v63 = vadd.f32 %v1416_v25, %v1381_v26 }
 0x495   :  { %v1391_v27 = vmul.f32 0.2, %v1390_v63 }
 0x497   :  { %v1392_v28 = vmax.f32 %v1390_v63, %v1391_v27 }
 0x499   :  { %1393 = vst.msk [vmem:[#allocation7] sm:$0xff] %vm43_vm0, %v1392_v28 }
 0x49a   :  { %1639 = shalt.err (!%p1636_p6)
}
 0x49b   :  { %s1640_s2 = scalar_lea.hbm %s2079_s3, 128 }
 0x49c   :  { %p1641_p7 = scmp.ne.s32.totalorder %s2079_s3, %s1640_s2  ;;  %p1644_p8 = scmp.lt.u32.totalorder %s1640_s2, %s2079_s3 }
 0x49e   :  { %p1646_p9 = pnand %p1644_p8, %p1641_p7 }
 0x4a0   :  { %1649 = shalt.err (!%p1646_p9)
}
 0x4a1   :  { %1403 = dma.vmem_to_hbm [thread:$0]  %s1401_s18, 128, %s2079_s3, [#allocation4]  }
 0x4a2   :  { %1654 = dma.done.wait [#allocation4], 128  }
 0x4a3   :  { %1655 = vsyncadd [#allocation4], 4294967168 }
 0x4a4   :  { %1407 = vsyncpa [#allocation3], 1 }
 0x4a5   :  { %1408 = vsyncpa [#allocation6], 1 }
 0x4a6   :  { %1409 = vsyncpa [#allocation4], 1 }

</bundles_post_ra>
